<compile_context>
chip_gen: v7x
topology: tpu7x:2x2x1
jax: 0.10.0
libtpu: 0.0.40
codegen_flags: <defaults>
</compile_context>

<pallas_src>
import functools

import jax
import jax.numpy as jnp
import numpy as np
from jax.experimental import pallas as pl
from jax.experimental.pallas import tpu as pltpu

EPS = 1e-5


# ---------------------------------------------------------------------------
# helpers
# ---------------------------------------------------------------------------
def _row_tile(p, target):
    """Largest divisor of p that is <= target and a multiple of 8 (else p)."""
    for t in range(min(target, p), 7, -1):
        if p % t == 0 and t % 8 == 0:
            return t
    return p


def _nbytes(shape, dtype):
    return int(np.prod(shape)) * np.dtype(dtype).itemsize


def _mosaic_params(*block_bytes):
    """'parallel' grid + VMEM cap sized from the double-buffered block footprint."""
    need = 2 * sum(block_bytes) + (4 << 20)          # 2x: double buffering + headroom
    limit = int(min(max(need, 16 << 20), 64 << 20))  # stay within v7x's 64 MiB VMEM
    return pltpu.CompilerParams(dimension_semantics=("parallel",),
                                vmem_limit_bytes=limit)


def _bn_affine(pstats, gamma, beta, count):
    """Fold per-tile (sum, sumsq) partials into per-channel BN scale/shift (f32)."""
    s = jnp.sum(pstats[:, 0, :], axis=0)
    ss = jnp.sum(pstats[:, 1, :], axis=0)
    mean = s / count
    var = jnp.maximum(ss / count - mean * mean, 0.0)
    scale = gamma * jax.lax.rsqrt(var + EPS)
    shift = beta - mean * scale
    return scale.reshape(1, -1), shift.reshape(1, -1)


# ---------------------------------------------------------------------------
# kernels
# ---------------------------------------------------------------------------
def _affine_act_matmul_kernel(x_ref, w_ref, scale_ref, shift_ref,
                              y_ref, stats_ref, *, activate):
    """y = (relu?)(x*scale + shift) @ w  (bf16 MXU operands, f32 accumulate),
    plus this tile's per-channel sum / sum-of-squares of y."""
    x = x_ref[...].astype(jnp.float32) * scale_ref[...] + shift_ref[...]
    if activate:
        x = jnp.maximum(x, 0.0)
    y = jnp.dot(x.astype(jnp.bfloat16), w_ref[...],
                preferred_element_type=jnp.float32)
    y_ref[...] = y
    stats_ref[0] = jnp.concatenate(
        [jnp.sum(y, axis=0, keepdims=True),
         jnp.sum(y * y, axis=0, keepdims=True)], axis=0)


def _bn_relu_gconv3x3_kernel(y1_ref, scale_ref, shift_ref, w2_ref,
                             y2_ref, stats_ref, *, H, W):
    """BN+ReLU then 3x3 grouped conv (stride 1, pad 1) for one image.

    The 9 spatial taps are generated by rolling the flattened (H*W, C)
    activation along the sublane axis (pltpu.roll -> XLU) and masking the
    wrapped border positions; no padded scratch, no unaligned sublane slices.
    """
    HW = H * W
    C = y1_ref.shape[-1]
    a = jnp.maximum(y1_ref[0] * scale_ref[...] + shift_ref[...], 0.0)  # (HW, C) f32

    hh = jax.lax.broadcasted_iota(jnp.int32, (H, W, C), 0).reshape(HW, C)
    ww = jax.lax.broadcasted_iota(jnp.int32, (H, W, C), 1).reshape(HW, C)

    acc = jnp.zeros((HW, C), jnp.float32)
    for ky in range(3):
        dy = ky - 1
        for kx in range(3):
            dx = kx - 1
            if dy == 0 and dx == 0:
                patch = a
            else:
                # shifting by (dy rows, dx cols) == rolling by dy*W+dx on the
                # flattened axis; positions that wrapped are the zero padding.
                patch = pltpu.roll(a, (-(dy * W + dx)) % HW, axis=0)
                valid = ((hh + dy >= 0) & (hh + dy < H) &
                         (ww + dx >= 0) & (ww + dx < W))
                patch = jnp.where(valid, patch, 0.0)
            acc = acc + jnp.dot(patch.astype(jnp.bfloat16), w2_ref[ky, kx],
                                preferred_element_type=jnp.float32)
    y2_ref[0] = acc
    stats_ref[0] = jnp.concatenate(
        [jnp.sum(acc, axis=0, keepdims=True),
         jnp.sum(acc * acc, axis=0, keepdims=True)], axis=0)


def _bn_residual_relu_kernel(y_ref, id_ref, scale_ref, shift_ref, o_ref):
    y = y_ref[...] * scale_ref[...] + shift_ref[...]
    o_ref[...] = jnp.maximum(y + id_ref[...].astype(jnp.float32),
                             0.0).astype(o_ref.dtype)


# ---------------------------------------------------------------------------
# pallas_call wrappers
# ---------------------------------------------------------------------------
def _affine_act_conv1x1(x2d, w_bf16, scale, shift, *, activate, row_tile):
    P, Cin = x2d.shape
    Cout = w_bf16.shape[1]
    TP = _row_tile(P, row_tile)
    G = P // TP
    kern = functools.partial(_affine_act_matmul_kernel, activate=activate)
    return pl.pallas_call(
        kern,
        out_shape=(jax.ShapeDtypeStruct((P, Cout), jnp.float32),
                   jax.ShapeDtypeStruct((G, 2, Cout), jnp.float32)),
        grid=(G,),
        in_specs=[pl.BlockSpec((TP, Cin), lambda i: (i, 0)),
                  pl.BlockSpec((Cin, Cout), lambda i: (0, 0)),
                  pl.BlockSpec((1, Cin), lambda i: (0, 0)),
                  pl.BlockSpec((1, Cin), lambda i: (0, 0))],
        out_specs=(pl.BlockSpec((TP, Cout), lambda i: (i, 0)),
                   pl.BlockSpec((1, 2, Cout), lambda i: (i, 0, 0))),
        compiler_params=_mosaic_params(
            _nbytes((TP, Cin), jnp.float32),
            _nbytes((Cin, Cout), jnp.bfloat16),
            _nbytes((TP, Cout), jnp.float32),
            _nbytes((2, Cout), jnp.float32)),
    )(x2d, w_bf16, scale, shift)


def _bn_relu_gconv3x3(y1, scale, shift, w2_bf16, N, H, W):
    HW = H * W
    C = y1.shape[-1]
    y1r = y1.reshape(N, HW, C)
    kern = functools.partial(_bn_relu_gconv3x3_kernel, H=H, W=W)
    y2, pstats = pl.pallas_call(
        kern,
        out_shape=(jax.ShapeDtypeStruct((N, HW, C), jnp.float32),
                   jax.ShapeDtypeStruct((N, 2, C), jnp.float32)),
        grid=(N,),
        in_specs=[pl.BlockSpec((1, HW, C), lambda i: (i, 0, 0)),
                  pl.BlockSpec((1, C), lambda i: (0, 0)),
                  pl.BlockSpec((1, C), lambda i: (0, 0)),
                  pl.BlockSpec((3, 3, C, C), lambda i: (0, 0, 0, 0))],
        out_specs=(pl.BlockSpec((1, HW, C), lambda i: (i, 0, 0)),
                   pl.BlockSpec((1, 2, C), lambda i: (i, 0, 0))),
        compiler_params=_mosaic_params(
            2 * _nbytes((HW, C), jnp.float32),        # activation in + out block
            _nbytes((3, 3, C, C), jnp.bfloat16),
            _nbytes((2, C), jnp.float32)),
    )(y1r, scale, shift, w2_bf16)
    return y2.reshape(N * HW, C), pstats


def _bn_residual_relu(y3, x2d, scale, shift, row_tile):
    P, Cout = y3.shape
    TP = _row_tile(P, row_tile)
    G = P // TP
    return pl.pallas_call(
        _bn_residual_relu_kernel,
        out_shape=jax.ShapeDtypeStruct((P, Cout), x2d.dtype),
        grid=(G,),
        in_specs=[pl.BlockSpec((TP, Cout), lambda i: (i, 0)),
                  pl.BlockSpec((TP, Cout), lambda i: (i, 0)),
                  pl.BlockSpec((1, Cout), lambda i: (0, 0)),
                  pl.BlockSpec((1, Cout), lambda i: (0, 0))],
        out_specs=pl.BlockSpec((TP, Cout), lambda i: (i, 0)),
        compiler_params=_mosaic_params(3 * _nbytes((TP, Cout), jnp.float32)),
    )(y3, x2d, scale, shift)


# ---------------------------------------------------------------------------
# forward pass
# ---------------------------------------------------------------------------
def bottleneck_forward(x_nchw, params, *, row_tile=256):
    """ResNeXt BottleNeck forward (stride=1, down_sample=None, training-mode BN)."""
    x = jnp.transpose(x_nchw, (0, 2, 3, 1))          # NCHW -> NHWC (channels on lanes)
    N, H, W, Cin = x.shape
    width = params["w1"].shape[1]
    Cout = params["w3"].shape[1]
    if Cin != Cout:
        # TODO(synk): down_sample / stride>1 path not implemented.
        raise NotImplementedError("identity residual requires in_chans == out_chans*expansion")
    P = N * H * W
    x2d = x.reshape(P, Cin).astype(jnp.float32)

    w1 = params["w1"].astype(jnp.bfloat16)
    w2 = params["w2"].astype(jnp.bfloat16)
    w3 = params["w3"].astype(jnp.bfloat16)
    one_in = jnp.ones((1, Cin), jnp.float32)
    zero_in = jnp.zeros((1, Cin), jnp.float32)

    # stage 1: conv1 (1x1) + partial BN1 stats
    y1, ps1 = _affine_act_conv1x1(x2d, w1, one_in, zero_in,
                                  activate=False, row_tile=row_tile)
    sc1, sh1 = _bn_affine(ps1, params["g1"], params["b1"], P)

    # stage 2: BN1 + ReLU -> grouped 3x3 conv + partial BN2 stats
    y2, ps2 = _bn_relu_gconv3x3(y1, sc1, sh1, w2, N, H, W)
    sc2, sh2 = _bn_affine(ps2, params["g2"], params["b2"], P)

    # stage 3: BN2 + ReLU -> conv3 (1x1) + partial BN3 stats
    y3, ps3 = _affine_act_conv1x1(y2, w3, sc2, sh2,
                                  activate=True, row_tile=row_tile)
    sc3, sh3 = _bn_affine(ps3, params["g3"], params["b3"], P)

    # stage 4: BN3 + identity residual + ReLU
    out2d = _bn_residual_relu(y3, x2d, sc3, sh3, row_tile)
    out = out2d.reshape(N, H, W, Cout).astype(x_nchw.dtype)
    return jnp.transpose(out, (0, 3, 1, 2))          # NHWC -> NCHW


# ---------------------------------------------------------------------------
# parameter init (PyTorch layouts) + pure-JAX reference
# ---------------------------------------------------------------------------
def init_params(key, in_chans, out_chans, groups=1,
                width_per_group=64, base_width=64):
    expansion = 2
    width = int(out_chans * (width_per_group / base_width)) * groups
    cout = out_chans * expansion
    cg = width // groups
    k1, k2, k3 = jax.random.split(key, 3)

    # torch conv weights: (O, I, kH, kW)
    w1 = jax.random.normal(k1, (width, in_chans), jnp.float32) * 0.1   # (O, I) of 1x1
    w2 = jax.random.normal(k2, (width, cg, 3, 3), jnp.float32) * 0.1   # grouped 3x3
    w3 = jax.random.normal(k3, (cout, width), jnp.float32) * 0.1       # (O, I) of 1x1

    # Pack grouped conv weights into block-diagonal (3,3,width,width) matmul
    # weights: acc[:, oc] += patch[:, ic] * w2_full[ky, kx, ic, oc].
    # TODO(synk): per-group matmuls for production group counts (cg >= 128).
    w2_np = np.asarray(w2)
    w2_full = np.zeros((3, 3, width, width), np.float32)
    for g in range(groups):
        blk = np.transpose(w2_np[g * cg:(g + 1) * cg], (2, 3, 1, 0))   # (3,3,ic,oc)
        w2_full[:, :, g * cg:(g + 1) * cg, g * cg:(g + 1) * cg] = blk

    params = dict(
        w1=jnp.asarray(w1.T),                 # (in_chans, width)
        w2=jnp.asarray(w2_full),              # (3, 3, width, width) block-diagonal
        w3=jnp.asarray(w3.T),                 # (width, cout)
        g1=jnp.ones((width,), jnp.float32), b1=jnp.zeros((width,), jnp.float32),
        g2=jnp.ones((width,), jnp.float32), b2=jnp.zeros((width,), jnp.float32),
        g3=jnp.ones((cout,), jnp.float32),  b3=jnp.zeros((cout,), jnp.float32),
    )
    raw = dict(w1=w1, w2=w2, w3=w3)           # torch-layout weights for the reference
    return params, raw


def reference_forward(x_nchw, raw, groups):
    """Pure-JAX f32 reference with the PyTorch module's semantics (NCHW)."""
    def bn(y):  # training-mode BN, gamma=1, beta=0
        mu = jnp.mean(y, axis=(0, 2, 3), keepdims=True)
        var = jnp.mean((y - mu) ** 2, axis=(0, 2, 3), keepdims=True)
        return (y - mu) * jax.lax.rsqrt(var + EPS)

    dn = ("NCHW", "OIHW", "NCHW")
    y = jax.lax.conv_general_dilated(x_nchw, raw["w1"][:, :, None, None],
                                     (1, 1), "VALID", dimension_numbers=dn)
    y = jax.nn.relu(bn(y))
    y = jax.lax.conv_general_dilated(y, raw["w2"], (1, 1), ((1, 1), (1, 1)),
                                     dimension_numbers=dn,
                                     feature_group_count=groups)
    y = jax.nn.relu(bn(y))
    y = jax.lax.conv_general_dilated(y, raw["w3"][:, :, None, None],
                                     (1, 1), "VALID", dimension_numbers=dn)
    y = bn(y)
    return jax.nn.relu(y + x_nchw)


if __name__ == "__main__":
    key = jax.random.PRNGKey(0)
    kx_, kp = jax.random.split(key)

    # Small but lane-friendly config: width = 128 (3x3 stage is lane-dense),
    # in_chans == out_chans * expansion so the identity residual applies.
    in_chans, out_chans, groups = 64, 32, 4
    N, H, W = 2, 16, 16

    x = jax.random.normal(kx_, (N, in_chans, H, W), jnp.float32)
    params, raw = init_params(kp, in_chans, out_chans, groups=groups)

    fwd = jax.jit(bottleneck_forward)
    y = jax.block_until_ready(fwd(x, params))

    y_ref = reference_forward(x, raw, groups)
    # Tolerance accounts for bf16 MXU operands (f32 accumulation) in the kernel
    # vs. the all-f32 reference.
    np.testing.assert_allclose(np.asarray(y), np.asarray(y_ref),
                               rtol=5e-2, atol=5e-2)
    print("KERNEL_OK")
</pallas_src>

<mosaic_0001>
module attributes {stable_mosaic.version = 11 : i64} {
  func.func @_affine_act_matmul_kernel(%arg0: i32, %arg1: memref<256x64xf32, #tpu.memory_space<vmem>>, %arg2: memref<64x128xbf16, #tpu.memory_space<vmem>>, %arg3: memref<1x64xf32, #tpu.memory_space<vmem>>, %arg4: memref<1x64xf32, #tpu.memory_space<vmem>>, %arg5: memref<256x128xf32, #tpu.memory_space<vmem>>, %arg6: memref<1x2x128xf32, #tpu.memory_space<vmem>>) attributes {dimension_semantics = [#tpu.dimension_semantics<parallel>], iteration_bounds = array<i64: 2>, scalar_prefetch = 0 : i64, scratch_operands = 0 : i64, tpu.core_type = #tpu.core_type<tc>, window_params = [{transform_indices = @transform_0, window_bounds = array<i64: 256, 64>}, {pipeline_mode = #tpu.pipeline_mode<synchronous>, transform_indices = @transform_1, window_bounds = array<i64: 64, 128>}, {pipeline_mode = #tpu.pipeline_mode<synchronous>, transform_indices = @transform_2, window_bounds = array<i64: 1, 64>}, {pipeline_mode = #tpu.pipeline_mode<synchronous>, transform_indices = @transform_3, window_bounds = array<i64: 1, 64>}, {transform_indices = @transform_4, window_bounds = array<i64: 256, 128>}, {transform_indices = @transform_5, window_bounds = array<i64: 1, 2, 128>}]} {
    %c0 = arith.constant 0 : index
    %c0_0 = arith.constant 0 : index
    %0 = vector.load %arg1[%c0, %c0_0] : memref<256x64xf32, #tpu.memory_space<vmem>>, vector<256x64xf32>
    %c0_1 = arith.constant 0 : index
    %c0_2 = arith.constant 0 : index
    %1 = vector.load %arg3[%c0_1, %c0_2] : memref<1x64xf32, #tpu.memory_space<vmem>>, vector<1x64xf32>
    %2 = vector.broadcast %1 : vector<1x64xf32> to vector<256x64xf32>
    %3 = arith.mulf %0, %2 : vector<256x64xf32>
    %c0_3 = arith.constant 0 : index
    %c0_4 = arith.constant 0 : index
    %4 = vector.load %arg4[%c0_3, %c0_4] : memref<1x64xf32, #tpu.memory_space<vmem>>, vector<1x64xf32>
    %5 = vector.broadcast %4 : vector<1x64xf32> to vector<256x64xf32>
    %6 = arith.addf %3, %5 : vector<256x64xf32>
    %7 = arith.truncf %6 : vector<256x64xf32> to vector<256x64xbf16>
    %c0_5 = arith.constant 0 : index
    %c0_6 = arith.constant 0 : index
    %8 = vector.load %arg2[%c0_5, %c0_6] : memref<64x128xbf16, #tpu.memory_space<vmem>>, vector<64x128xbf16>
    %cst = arith.constant dense<0.000000e+00> : vector<256x128xf32>
    %9 = tpu.matmul %7, %8, %cst {dimension_numbers = #tpu.dot_dimension_numbers<[1], [0], [0], [1], [0, 0, 1, 1], [], []>} : vector<256x64xbf16>, vector<64x128xbf16>, vector<256x128xf32> -> vector<256x128xf32>
    %c0_7 = arith.constant 0 : index
    %c0_8 = arith.constant 0 : index
    %10 = vector.load %arg5[%c0_7, %c0_8] : memref<256x128xf32, #tpu.memory_space<vmem>>, vector<256x128xf32>
    tpu.vector_store %arg5[%c0_7, %c0_8], %9 {strides = array<i32>} : memref<256x128xf32, #tpu.memory_space<vmem>>, vector<256x128xf32>,
    %cst_9 = arith.constant dense<0.000000e+00> : vector<128xf32>
    %11 = vector.multi_reduction <add>, %9, %cst_9 [0] : vector<256x128xf32> to vector<128xf32>
    %12 = vector.shape_cast %11 : vector<128xf32> to vector<1x128xf32>
    %13 = arith.mulf %9, %9 : vector<256x128xf32>
    %cst_10 = arith.constant dense<0.000000e+00> : vector<128xf32>
    %14 = vector.multi_reduction <add>, %13, %cst_10 [0] : vector<256x128xf32> to vector<128xf32>
    %15 = vector.shape_cast %14 : vector<128xf32> to vector<1x128xf32>
    %16 = tpu.concatenate %12, %15 in 0 : vector<1x128xf32>, vector<1x128xf32> -> vector<2x128xf32>
    %c0_11 = arith.constant 0 : index
    %c0_12 = arith.constant 0 : index
    %c0_13 = arith.constant 0 : index
    %17 = vector.load %arg6[%c0_11, %c0_12, %c0_13] : memref<1x2x128xf32, #tpu.memory_space<vmem>>, vector<1x2x128xf32>
    %18 = vector.shape_cast %17 : vector<1x2x128xf32> to vector<2x128xf32>
    %19 = vector.shape_cast %16 : vector<2x128xf32> to vector<1x2x128xf32>
    tpu.vector_store %arg6[%c0_11, %c0_12, %c0_13], %19 {strides = array<i32>} : memref<1x2x128xf32, #tpu.memory_space<vmem>>, vector<1x2x128xf32>,
    return
  }
  func.func @transform_0(%arg0: i32) -> (i32, i32) {
    %c0_i32 = arith.constant 0 : i32
    %c0_i32_0 = arith.constant 0 : i32
    return %arg0, %c0_i32 : i32, i32
  }
  func.func @transform_1(%arg0: i32) -> (i32, i32) {
    %c0_i32 = arith.constant 0 : i32
    %c0_i32_0 = arith.constant 0 : i32
    %c0_i32_1 = arith.constant 0 : i32
    return %c0_i32, %c0_i32_0 : i32, i32
  }
  func.func @transform_2(%arg0: i32) -> (i32, i32) {
    %c0_i32 = arith.constant 0 : i32
    %c0_i32_0 = arith.constant 0 : i32
    %c0_i32_1 = arith.constant 0 : i32
    return %c0_i32, %c0_i32_0 : i32, i32
  }
  func.func @transform_3(%arg0: i32) -> (i32, i32) {
    %c0_i32 = arith.constant 0 : i32
    %c0_i32_0 = arith.constant 0 : i32
    %c0_i32_1 = arith.constant 0 : i32
    return %c0_i32, %c0_i32_0 : i32, i32
  }
  func.func @transform_4(%arg0: i32) -> (i32, i32) {
    %c0_i32 = arith.constant 0 : i32
    %c0_i32_0 = arith.constant 0 : i32
    return %arg0, %c0_i32 : i32, i32
  }
  func.func @transform_5(%arg0: i32) -> (i32, i32, i32) {
    %c0_i32 = arith.constant 0 : i32
    %c0_i32_0 = arith.constant 0 : i32
    %c0_i32_1 = arith.constant 0 : i32
    return %arg0, %c0_i32, %c0_i32_0 : i32, i32, i32
  }
}

module attributes {stable_mosaic.version = 11 : i64} {
  func.func @_bn_relu_gconv3x3_kernel(%arg0: i32, %arg1: memref<1x256x128xf32, #tpu.memory_space<vmem>>, %arg2: memref<1x128xf32, #tpu.memory_space<vmem>>, %arg3: memref<1x128xf32, #tpu.memory_space<vmem>>, %arg4: memref<3x3x128x128xbf16, #tpu.memory_space<vmem>>, %arg5: memref<1x256x128xf32, #tpu.memory_space<vmem>>, %arg6: memref<1x2x128xf32, #tpu.memory_space<vmem>>) attributes {dimension_semantics = [#tpu.dimension_semantics<parallel>], iteration_bounds = array<i64: 2>, scalar_prefetch = 0 : i64, scratch_operands = 0 : i64, tpu.core_type = #tpu.core_type<tc>, window_params = [{transform_indices = @transform_0, window_bounds = array<i64: 1, 256, 128>}, {pipeline_mode = #tpu.pipeline_mode<synchronous>, transform_indices = @transform_1, window_bounds = array<i64: 1, 128>}, {pipeline_mode = #tpu.pipeline_mode<synchronous>, transform_indices = @transform_2, window_bounds = array<i64: 1, 128>}, {pipeline_mode = #tpu.pipeline_mode<synchronous>, transform_indices = @transform_3, window_bounds = array<i64: 3, 3, 128, 128>}, {transform_indices = @transform_4, window_bounds = array<i64: 1, 256, 128>}, {transform_indices = @transform_5, window_bounds = array<i64: 1, 2, 128>}]} {
    %c0 = arith.constant 0 : index
    %c0_0 = arith.constant 0 : index
    %c0_1 = arith.constant 0 : index
    %0 = vector.load %arg1[%c0, %c0_0, %c0_1] : memref<1x256x128xf32, #tpu.memory_space<vmem>>, vector<1x256x128xf32>
    %1 = vector.shape_cast %0 : vector<1x256x128xf32> to vector<256x128xf32>
    %c0_2 = arith.constant 0 : index
    %c0_3 = arith.constant 0 : index
    %2 = vector.load %arg2[%c0_2, %c0_3] : memref<1x128xf32, #tpu.memory_space<vmem>>, vector<1x128xf32>
    %3 = vector.broadcast %2 : vector<1x128xf32> to vector<256x128xf32>
    %4 = arith.mulf %1, %3 : vector<256x128xf32>
    %c0_4 = arith.constant 0 : index
    %c0_5 = arith.constant 0 : index
    %5 = vector.load %arg3[%c0_4, %c0_5] : memref<1x128xf32, #tpu.memory_space<vmem>>, vector<1x128xf32>
    %6 = vector.broadcast %5 : vector<1x128xf32> to vector<256x128xf32>
    %7 = arith.addf %4, %6 : vector<256x128xf32>
    %cst = arith.constant 0.000000e+00 : f32
    %8 = vector.broadcast %cst : f32 to vector<256x128xf32>
    %9 = arith.maximumf %7, %8 : vector<256x128xf32>
    %10 = tpu.iota {dimensions = array<i32: 0>} : vector<16x16x128xi32>
    %11 = vector.shape_cast %10 : vector<16x16x128xi32> to vector<256x128xi32>
    %12 = tpu.iota {dimensions = array<i32: 1>} : vector<16x16x128xi32>
    %13 = vector.shape_cast %12 : vector<16x16x128xi32> to vector<256x128xi32>
    %cst_6 = arith.constant 0.000000e+00 : f32
    %14 = vector.broadcast %cst_6 : f32 to vector<256x128xf32>
    %c17_i32 = arith.constant 17 : i32
    %15 = tpu.dynamic_rotate %9 by %c17_i32 dim 0 : vector<256x128xf32>, i32 -> vector<256x128xf32>
    %c-1_i32 = arith.constant -1 : i32
    %16 = vector.broadcast %c-1_i32 : i32 to vector<256x128xi32>
    %17 = arith.addi %11, %16 : vector<256x128xi32>
    %c0_i32 = arith.constant 0 : i32
    %18 = vector.broadcast %c0_i32 : i32 to vector<256x128xi32>
    %19 = arith.cmpi sge, %17, %18 : vector<256x128xi32>
    %c-1_i32_7 = arith.constant -1 : i32
    %20 = vector.broadcast %c-1_i32_7 : i32 to vector<256x128xi32>
    %21 = arith.addi %11, %20 : vector<256x128xi32>
    %c16_i32 = arith.constant 16 : i32
    %22 = vector.broadcast %c16_i32 : i32 to vector<256x128xi32>
    %23 = arith.cmpi slt, %21, %22 : vector<256x128xi32>
    %24 = arith.andi %19, %23 : vector<256x128xi1>
    %c-1_i32_8 = arith.constant -1 : i32
    %25 = vector.broadcast %c-1_i32_8 : i32 to vector<256x128xi32>
    %26 = arith.addi %13, %25 : vector<256x128xi32>
    %c0_i32_9 = arith.constant 0 : i32
    %27 = vector.broadcast %c0_i32_9 : i32 to vector<256x128xi32>
    %28 = arith.cmpi sge, %26, %27 : vector<256x128xi32>
    %29 = arith.andi %24, %28 : vector<256x128xi1>
    %c-1_i32_10 = arith.constant -1 : i32
    %30 = vector.broadcast %c-1_i32_10 : i32 to vector<256x128xi32>
    %31 = arith.addi %13, %30 : vector<256x128xi32>
    %c16_i32_11 = arith.constant 16 : i32
    %32 = vector.broadcast %c16_i32_11 : i32 to vector<256x128xi32>
    %33 = arith.cmpi slt, %31, %32 : vector<256x128xi32>
    %34 = arith.andi %29, %33 : vector<256x128xi1>
    %cst_12 = arith.constant 0.000000e+00 : f32
    %35 = vector.broadcast %cst_12 : f32 to vector<256x128xf32>
    %36 = arith.select %34, %15, %35 : vector<256x128xi1>, vector<256x128xf32>
    %37 = arith.truncf %36 : vector<256x128xf32> to vector<256x128xbf16>
    %c0_13 = arith.constant 0 : index
    %c0_14 = arith.constant 0 : index
    %c0_15 = arith.constant 0 : index
    %c0_16 = arith.constant 0 : index
    %38 = vector.load %arg4[%c0_13, %c0_14, %c0_15, %c0_16] : memref<3x3x128x128xbf16, #tpu.memory_space<vmem>>, vector<1x1x128x128xbf16>
    %39 = vector.shape_cast %38 : vector<1x1x128x128xbf16> to vector<128x128xbf16>
    %cst_17 = arith.constant dense<0.000000e+00> : vector<256x128xf32>
    %40 = tpu.matmul %37, %39, %cst_17 {dimension_numbers = #tpu.dot_dimension_numbers<[1], [0], [0], [1], [0, 0, 1, 1], [], []>} : vector<256x128xbf16>, vector<128x128xbf16>, vector<256x128xf32> -> vector<256x128xf32>
    %41 = arith.addf %14, %40 : vector<256x128xf32>
    %c16_i32_18 = arith.constant 16 : i32
    %42 = tpu.dynamic_rotate %9 by %c16_i32_18 dim 0 : vector<256x128xf32>, i32 -> vector<256x128xf32>
    %c-1_i32_19 = arith.constant -1 : i32
    %43 = vector.broadcast %c-1_i32_19 : i32 to vector<256x128xi32>
    %44 = arith.addi %11, %43 : vector<256x128xi32>
    %c0_i32_20 = arith.constant 0 : i32
    %45 = vector.broadcast %c0_i32_20 : i32 to vector<256x128xi32>
    %46 = arith.cmpi sge, %44, %45 : vector<256x128xi32>
    %c-1_i32_21 = arith.constant -1 : i32
    %47 = vector.broadcast %c-1_i32_21 : i32 to vector<256x128xi32>
    %48 = arith.addi %11, %47 : vector<256x128xi32>
    %c16_i32_22 = arith.constant 16 : i32
    %49 = vector.broadcast %c16_i32_22 : i32 to vector<256x128xi32>
    %50 = arith.cmpi slt, %48, %49 : vector<256x128xi32>
    %51 = arith.andi %46, %50 : vector<256x128xi1>
    %c0_i32_23 = arith.constant 0 : i32
    %52 = vector.broadcast %c0_i32_23 : i32 to vector<256x128xi32>
    %53 = arith.addi %13, %52 : vector<256x128xi32>
    %c0_i32_24 = arith.constant 0 : i32
    %54 = vector.broadcast %c0_i32_24 : i32 to vector<256x128xi32>
    %55 = arith.cmpi sge, %53, %54 : vector<256x128xi32>
    %56 = arith.andi %51, %55 : vector<256x128xi1>
    %c0_i32_25 = arith.constant 0 : i32
    %57 = vector.broadcast %c0_i32_25 : i32 to vector<256x128xi32>
    %58 = arith.addi %13, %57 : vector<256x128xi32>
    %c16_i32_26 = arith.constant 16 : i32
    %59 = vector.broadcast %c16_i32_26 : i32 to vector<256x128xi32>
    %60 = arith.cmpi slt, %58, %59 : vector<256x128xi32>
    %61 = arith.andi %56, %60 : vector<256x128xi1>
    %cst_27 = arith.constant 0.000000e+00 : f32
    %62 = vector.broadcast %cst_27 : f32 to vector<256x128xf32>
    %63 = arith.select %61, %42, %62 : vector<256x128xi1>, vector<256x128xf32>
    %64 = arith.truncf %63 : vector<256x128xf32> to vector<256x128xbf16>
    %c0_28 = arith.constant 0 : index
    %c1 = arith.constant 1 : index
    %c0_29 = arith.constant 0 : index
    %c0_30 = arith.constant 0 : index
    %65 = vector.load %arg4[%c0_28, %c1, %c0_29, %c0_30] : memref<3x3x128x128xbf16, #tpu.memory_space<vmem>>, vector<1x1x128x128xbf16>
    %66 = vector.shape_cast %65 : vector<1x1x128x128xbf16> to vector<128x128xbf16>
    %cst_31 = arith.constant dense<0.000000e+00> : vector<256x128xf32>
    %67 = tpu.matmul %64, %66, %cst_31 {dimension_numbers = #tpu.dot_dimension_numbers<[1], [0], [0], [1], [0, 0, 1, 1], [], []>} : vector<256x128xbf16>, vector<128x128xbf16>, vector<256x128xf32> -> vector<256x128xf32>
    %68 = arith.addf %41, %67 : vector<256x128xf32>
    %c15_i32 = arith.constant 15 : i32
    %69 = tpu.dynamic_rotate %9 by %c15_i32 dim 0 : vector<256x128xf32>, i32 -> vector<256x128xf32>
    %c-1_i32_32 = arith.constant -1 : i32
    %70 = vector.broadcast %c-1_i32_32 : i32 to vector<256x128xi32>
    %71 = arith.addi %11, %70 : vector<256x128xi32>
    %c0_i32_33 = arith.constant 0 : i32
    %72 = vector.broadcast %c0_i32_33 : i32 to vector<256x128xi32>
    %73 = arith.cmpi sge, %71, %72 : vector<256x128xi32>
    %c-1_i32_34 = arith.constant -1 : i32
    %74 = vector.broadcast %c-1_i32_34 : i32 to vector<256x128xi32>
    %75 = arith.addi %11, %74 : vector<256x128xi32>
    %c16_i32_35 = arith.constant 16 : i32
    %76 = vector.broadcast %c16_i32_35 : i32 to vector<256x128xi32>
    %77 = arith.cmpi slt, %75, %76 : vector<256x128xi32>
    %78 = arith.andi %73, %77 : vector<256x128xi1>
    %c1_i32 = arith.constant 1 : i32
    %79 = vector.broadcast %c1_i32 : i32 to vector<256x128xi32>
    %80 = arith.addi %13, %79 : vector<256x128xi32>
    %c0_i32_36 = arith.constant 0 : i32
    %81 = vector.broadcast %c0_i32_36 : i32 to vector<256x128xi32>
    %82 = arith.cmpi sge, %80, %81 : vector<256x128xi32>
    %83 = arith.andi %78, %82 : vector<256x128xi1>
    %c1_i32_37 = arith.constant 1 : i32
    %84 = vector.broadcast %c1_i32_37 : i32 to vector<256x128xi32>
    %85 = arith.addi %13, %84 : vector<256x128xi32>
    %c16_i32_38 = arith.constant 16 : i32
    %86 = vector.broadcast %c16_i32_38 : i32 to vector<256x128xi32>
    %87 = arith.cmpi slt, %85, %86 : vector<256x128xi32>
    %88 = arith.andi %83, %87 : vector<256x128xi1>
    %cst_39 = arith.constant 0.000000e+00 : f32
    %89 = vector.broadcast %cst_39 : f32 to vector<256x128xf32>
    %90 = arith.select %88, %69, %89 : vector<256x128xi1>, vector<256x128xf32>
    %91 = arith.truncf %90 : vector<256x128xf32> to vector<256x128xbf16>
    %c0_40 = arith.constant 0 : index
    %c2 = arith.constant 2 : index
    %c0_41 = arith.constant 0 : index
    %c0_42 = arith.constant 0 : index
    %92 = vector.load %arg4[%c0_40, %c2, %c0_41, %c0_42] : memref<3x3x128x128xbf16, #tpu.memory_space<vmem>>, vector<1x1x128x128xbf16>
    %93 = vector.shape_cast %92 : vector<1x1x128x128xbf16> to vector<128x128xbf16>
    %cst_43 = arith.constant dense<0.000000e+00> : vector<256x128xf32>
    %94 = tpu.matmul %91, %93, %cst_43 {dimension_numbers = #tpu.dot_dimension_numbers<[1], [0], [0], [1], [0, 0, 1, 1], [], []>} : vector<256x128xbf16>, vector<128x128xbf16>, vector<256x128xf32> -> vector<256x128xf32>
    %95 = arith.addf %68, %94 : vector<256x128xf32>
    %c1_i32_44 = arith.constant 1 : i32
    %96 = tpu.dynamic_rotate %9 by %c1_i32_44 dim 0 : vector<256x128xf32>, i32 -> vector<256x128xf32>
    %c0_i32_45 = arith.constant 0 : i32
    %97 = vector.broadcast %c0_i32_45 : i32 to vector<256x128xi32>
    %98 = arith.addi %11, %97 : vector<256x128xi32>
    %c0_i32_46 = arith.constant 0 : i32
    %99 = vector.broadcast %c0_i32_46 : i32 to vector<256x128xi32>
    %100 = arith.cmpi sge, %98, %99 : vector<256x128xi32>
    %c0_i32_47 = arith.constant 0 : i32
    %101 = vector.broadcast %c0_i32_47 : i32 to vector<256x128xi32>
    %102 = arith.addi %11, %101 : vector<256x128xi32>
    %c16_i32_48 = arith.constant 16 : i32
    %103 = vector.broadcast %c16_i32_48 : i32 to vector<256x128xi32>
    %104 = arith.cmpi slt, %102, %103 : vector<256x128xi32>
    %105 = arith.andi %100, %104 : vector<256x128xi1>
    %c-1_i32_49 = arith.constant -1 : i32
    %106 = vector.broadcast %c-1_i32_49 : i32 to vector<256x128xi32>
    %107 = arith.addi %13, %106 : vector<256x128xi32>
    %c0_i32_50 = arith.constant 0 : i32
    %108 = vector.broadcast %c0_i32_50 : i32 to vector<256x128xi32>
    %109 = arith.cmpi sge, %107, %108 : vector<256x128xi32>
    %110 = arith.andi %105, %109 : vector<256x128xi1>
    %c-1_i32_51 = arith.constant -1 : i32
    %111 = vector.broadcast %c-1_i32_51 : i32 to vector<256x128xi32>
    %112 = arith.addi %13, %111 : vector<256x128xi32>
    %c16_i32_52 = arith.constant 16 : i32
    %113 = vector.broadcast %c16_i32_52 : i32 to vector<256x128xi32>
    %114 = arith.cmpi slt, %112, %113 : vector<256x128xi32>
    %115 = arith.andi %110, %114 : vector<256x128xi1>
    %cst_53 = arith.constant 0.000000e+00 : f32
    %116 = vector.broadcast %cst_53 : f32 to vector<256x128xf32>
    %117 = arith.select %115, %96, %116 : vector<256x128xi1>, vector<256x128xf32>
    %118 = arith.truncf %117 : vector<256x128xf32> to vector<256x128xbf16>
    %c1_54 = arith.constant 1 : index
    %c0_55 = arith.constant 0 : index
    %c0_56 = arith.constant 0 : index
    %c0_57 = arith.constant 0 : index
    %119 = vector.load %arg4[%c1_54, %c0_55, %c0_56, %c0_57] : memref<3x3x128x128xbf16, #tpu.memory_space<vmem>>, vector<1x1x128x128xbf16>
    %120 = vector.shape_cast %119 : vector<1x1x128x128xbf16> to vector<128x128xbf16>
    %cst_58 = arith.constant dense<0.000000e+00> : vector<256x128xf32>
    %121 = tpu.matmul %118, %120, %cst_58 {dimension_numbers = #tpu.dot_dimension_numbers<[1], [0], [0], [1], [0, 0, 1, 1], [], []>} : vector<256x128xbf16>, vector<128x128xbf16>, vector<256x128xf32> -> vector<256x128xf32>
    %122 = arith.addf %95, %121 : vector<256x128xf32>
    %123 = arith.truncf %9 : vector<256x128xf32> to vector<256x128xbf16>
    %c1_59 = arith.constant 1 : index
    %c1_60 = arith.constant 1 : index
    %c0_61 = arith.constant 0 : index
    %c0_62 = arith.constant 0 : index
    %124 = vector.load %arg4[%c1_59, %c1_60, %c0_61, %c0_62] : memref<3x3x128x128xbf16, #tpu.memory_space<vmem>>, vector<1x1x128x128xbf16>
    %125 = vector.shape_cast %124 : vector<1x1x128x128xbf16> to vector<128x128xbf16>
    %cst_63 = arith.constant dense<0.000000e+00> : vector<256x128xf32>
    %126 = tpu.matmul %123, %125, %cst_63 {dimension_numbers = #tpu.dot_dimension_numbers<[1], [0], [0], [1], [0, 0, 1, 1], [], []>} : vector<256x128xbf16>, vector<128x128xbf16>, vector<256x128xf32> -> vector<256x128xf32>
    %127 = arith.addf %122, %126 : vector<256x128xf32>
    %c255_i32 = arith.constant 255 : i32
    %128 = tpu.dynamic_rotate %9 by %c255_i32 dim 0 : vector<256x128xf32>, i32 -> vector<256x128xf32>
    %c0_i32_64 = arith.constant 0 : i32
    %129 = vector.broadcast %c0_i32_64 : i32 to vector<256x128xi32>
    %130 = arith.addi %11, %129 : vector<256x128xi32>
    %c0_i32_65 = arith.constant 0 : i32
    %131 = vector.broadcast %c0_i32_65 : i32 to vector<256x128xi32>
    %132 = arith.cmpi sge, %130, %131 : vector<256x128xi32>
    %c0_i32_66 = arith.constant 0 : i32
    %133 = vector.broadcast %c0_i32_66 : i32 to vector<256x128xi32>
    %134 = arith.addi %11, %133 : vector<256x128xi32>
    %c16_i32_67 = arith.constant 16 : i32
    %135 = vector.broadcast %c16_i32_67 : i32 to vector<256x128xi32>
    %136 = arith.cmpi slt, %134, %135 : vector<256x128xi32>
    %137 = arith.andi %132, %136 : vector<256x128xi1>
    %c1_i32_68 = arith.constant 1 : i32
    %138 = vector.broadcast %c1_i32_68 : i32 to vector<256x128xi32>
    %139 = arith.addi %13, %138 : vector<256x128xi32>
    %c0_i32_69 = arith.constant 0 : i32
    %140 = vector.broadcast %c0_i32_69 : i32 to vector<256x128xi32>
    %141 = arith.cmpi sge, %139, %140 : vector<256x128xi32>
    %142 = arith.andi %137, %141 : vector<256x128xi1>
    %c1_i32_70 = arith.constant 1 : i32
    %143 = vector.broadcast %c1_i32_70 : i32 to vector<256x128xi32>
    %144 = arith.addi %13, %143 : vector<256x128xi32>
    %c16_i32_71 = arith.constant 16 : i32
    %145 = vector.broadcast %c16_i32_71 : i32 to vector<256x128xi32>
    %146 = arith.cmpi slt, %144, %145 : vector<256x128xi32>
    %147 = arith.andi %142, %146 : vector<256x128xi1>
    %cst_72 = arith.constant 0.000000e+00 : f32
    %148 = vector.broadcast %cst_72 : f32 to vector<256x128xf32>
    %149 = arith.select %147, %128, %148 : vector<256x128xi1>, vector<256x128xf32>
    %150 = arith.truncf %149 : vector<256x128xf32> to vector<256x128xbf16>
    %c1_73 = arith.constant 1 : index
    %c2_74 = arith.constant 2 : index
    %c0_75 = arith.constant 0 : index
    %c0_76 = arith.constant 0 : index
    %151 = vector.load %arg4[%c1_73, %c2_74, %c0_75, %c0_76] : memref<3x3x128x128xbf16, #tpu.memory_space<vmem>>, vector<1x1x128x128xbf16>
    %152 = vector.shape_cast %151 : vector<1x1x128x128xbf16> to vector<128x128xbf16>
    %cst_77 = arith.constant dense<0.000000e+00> : vector<256x128xf32>
    %153 = tpu.matmul %150, %152, %cst_77 {dimension_numbers = #tpu.dot_dimension_numbers<[1], [0], [0], [1], [0, 0, 1, 1], [], []>} : vector<256x128xbf16>, vector<128x128xbf16>, vector<256x128xf32> -> vector<256x128xf32>
    %154 = arith.addf %127, %153 : vector<256x128xf32>
    %c241_i32 = arith.constant 241 : i32
    %155 = tpu.dynamic_rotate %9 by %c241_i32 dim 0 : vector<256x128xf32>, i32 -> vector<256x128xf32>
    %c1_i32_78 = arith.constant 1 : i32
    %156 = vector.broadcast %c1_i32_78 : i32 to vector<256x128xi32>
    %157 = arith.addi %11, %156 : vector<256x128xi32>
    %c0_i32_79 = arith.constant 0 : i32
    %158 = vector.broadcast %c0_i32_79 : i32 to vector<256x128xi32>
    %159 = arith.cmpi sge, %157, %158 : vector<256x128xi32>
    %c1_i32_80 = arith.constant 1 : i32
    %160 = vector.broadcast %c1_i32_80 : i32 to vector<256x128xi32>
    %161 = arith.addi %11, %160 : vector<256x128xi32>
    %c16_i32_81 = arith.constant 16 : i32
    %162 = vector.broadcast %c16_i32_81 : i32 to vector<256x128xi32>
    %163 = arith.cmpi slt, %161, %162 : vector<256x128xi32>
    %164 = arith.andi %159, %163 : vector<256x128xi1>
    %c-1_i32_82 = arith.constant -1 : i32
    %165 = vector.broadcast %c-1_i32_82 : i32 to vector<256x128xi32>
    %166 = arith.addi %13, %165 : vector<256x128xi32>
    %c0_i32_83 = arith.constant 0 : i32
    %167 = vector.broadcast %c0_i32_83 : i32 to vector<256x128xi32>
    %168 = arith.cmpi sge, %166, %167 : vector<256x128xi32>
    %169 = arith.andi %164, %168 : vector<256x128xi1>
    %c-1_i32_84 = arith.constant -1 : i32
    %170 = vector.broadcast %c-1_i32_84 : i32 to vector<256x128xi32>
    %171 = arith.addi %13, %170 : vector<256x128xi32>
    %c16_i32_85 = arith.constant 16 : i32
    %172 = vector.broadcast %c16_i32_85 : i32 to vector<256x128xi32>
    %173 = arith.cmpi slt, %171, %172 : vector<256x128xi32>
    %174 = arith.andi %169, %173 : vector<256x128xi1>
    %cst_86 = arith.constant 0.000000e+00 : f32
    %175 = vector.broadcast %cst_86 : f32 to vector<256x128xf32>
    %176 = arith.select %174, %155, %175 : vector<256x128xi1>, vector<256x128xf32>
    %177 = arith.truncf %176 : vector<256x128xf32> to vector<256x128xbf16>
    %c2_87 = arith.constant 2 : index
    %c0_88 = arith.constant 0 : index
    %c0_89 = arith.constant 0 : index
    %c0_90 = arith.constant 0 : index
    %178 = vector.load %arg4[%c2_87, %c0_88, %c0_89, %c0_90] : memref<3x3x128x128xbf16, #tpu.memory_space<vmem>>, vector<1x1x128x128xbf16>
    %179 = vector.shape_cast %178 : vector<1x1x128x128xbf16> to vector<128x128xbf16>
    %cst_91 = arith.constant dense<0.000000e+00> : vector<256x128xf32>
    %180 = tpu.matmul %177, %179, %cst_91 {dimension_numbers = #tpu.dot_dimension_numbers<[1], [0], [0], [1], [0, 0, 1, 1], [], []>} : vector<256x128xbf16>, vector<128x128xbf16>, vector<256x128xf32> -> vector<256x128xf32>
    %181 = arith.addf %154, %180 : vector<256x128xf32>
    %c240_i32 = arith.constant 240 : i32
    %182 = tpu.dynamic_rotate %9 by %c240_i32 dim 0 : vector<256x128xf32>, i32 -> vector<256x128xf32>
    %c1_i32_92 = arith.constant 1 : i32
    %183 = vector.broadcast %c1_i32_92 : i32 to vector<256x128xi32>
    %184 = arith.addi %11, %183 : vector<256x128xi32>
    %c0_i32_93 = arith.constant 0 : i32
    %185 = vector.broadcast %c0_i32_93 : i32 to vector<256x128xi32>
    %186 = arith.cmpi sge, %184, %185 : vector<256x128xi32>
    %c1_i32_94 = arith.constant 1 : i32
    %187 = vector.broadcast %c1_i32_94 : i32 to vector<256x128xi32>
    %188 = arith.addi %11, %187 : vector<256x128xi32>
    %c16_i32_95 = arith.constant 16 : i32
    %189 = vector.broadcast %c16_i32_95 : i32 to vector<256x128xi32>
    %190 = arith.cmpi slt, %188, %189 : vector<256x128xi32>
    %191 = arith.andi %186, %190 : vector<256x128xi1>
    %c0_i32_96 = arith.constant 0 : i32
    %192 = vector.broadcast %c0_i32_96 : i32 to vector<256x128xi32>
    %193 = arith.addi %13, %192 : vector<256x128xi32>
    %c0_i32_97 = arith.constant 0 : i32
    %194 = vector.broadcast %c0_i32_97 : i32 to vector<256x128xi32>
    %195 = arith.cmpi sge, %193, %194 : vector<256x128xi32>
    %196 = arith.andi %191, %195 : vector<256x128xi1>
    %c0_i32_98 = arith.constant 0 : i32
    %197 = vector.broadcast %c0_i32_98 : i32 to vector<256x128xi32>
    %198 = arith.addi %13, %197 : vector<256x128xi32>
    %c16_i32_99 = arith.constant 16 : i32
    %199 = vector.broadcast %c16_i32_99 : i32 to vector<256x128xi32>
    %200 = arith.cmpi slt, %198, %199 : vector<256x128xi32>
    %201 = arith.andi %196, %200 : vector<256x128xi1>
    %cst_100 = arith.constant 0.000000e+00 : f32
    %202 = vector.broadcast %cst_100 : f32 to vector<256x128xf32>
    %203 = arith.select %201, %182, %202 : vector<256x128xi1>, vector<256x128xf32>
    %204 = arith.truncf %203 : vector<256x128xf32> to vector<256x128xbf16>
    %c2_101 = arith.constant 2 : index
    %c1_102 = arith.constant 1 : index
    %c0_103 = arith.constant 0 : index
    %c0_104 = arith.constant 0 : index
    %205 = vector.load %arg4[%c2_101, %c1_102, %c0_103, %c0_104] : memref<3x3x128x128xbf16, #tpu.memory_space<vmem>>, vector<1x1x128x128xbf16>
    %206 = vector.shape_cast %205 : vector<1x1x128x128xbf16> to vector<128x128xbf16>
    %cst_105 = arith.constant dense<0.000000e+00> : vector<256x128xf32>
    %207 = tpu.matmul %204, %206, %cst_105 {dimension_numbers = #tpu.dot_dimension_numbers<[1], [0], [0], [1], [0, 0, 1, 1], [], []>} : vector<256x128xbf16>, vector<128x128xbf16>, vector<256x128xf32> -> vector<256x128xf32>
    %208 = arith.addf %181, %207 : vector<256x128xf32>
    %c239_i32 = arith.constant 239 : i32
    %209 = tpu.dynamic_rotate %9 by %c239_i32 dim 0 : vector<256x128xf32>, i32 -> vector<256x128xf32>
    %c1_i32_106 = arith.constant 1 : i32
    %210 = vector.broadcast %c1_i32_106 : i32 to vector<256x128xi32>
    %211 = arith.addi %11, %210 : vector<256x128xi32>
    %c0_i32_107 = arith.constant 0 : i32
    %212 = vector.broadcast %c0_i32_107 : i32 to vector<256x128xi32>
    %213 = arith.cmpi sge, %211, %212 : vector<256x128xi32>
    %c1_i32_108 = arith.constant 1 : i32
    %214 = vector.broadcast %c1_i32_108 : i32 to vector<256x128xi32>
    %215 = arith.addi %11, %214 : vector<256x128xi32>
    %c16_i32_109 = arith.constant 16 : i32
    %216 = vector.broadcast %c16_i32_109 : i32 to vector<256x128xi32>
    %217 = arith.cmpi slt, %215, %216 : vector<256x128xi32>
    %218 = arith.andi %213, %217 : vector<256x128xi1>
    %c1_i32_110 = arith.constant 1 : i32
    %219 = vector.broadcast %c1_i32_110 : i32 to vector<256x128xi32>
    %220 = arith.addi %13, %219 : vector<256x128xi32>
    %c0_i32_111 = arith.constant 0 : i32
    %221 = vector.broadcast %c0_i32_111 : i32 to vector<256x128xi32>
    %222 = arith.cmpi sge, %220, %221 : vector<256x128xi32>
    %223 = arith.andi %218, %222 : vector<256x128xi1>
    %c1_i32_112 = arith.constant 1 : i32
    %224 = vector.broadcast %c1_i32_112 : i32 to vector<256x128xi32>
    %225 = arith.addi %13, %224 : vector<256x128xi32>
    %c16_i32_113 = arith.constant 16 : i32
    %226 = vector.broadcast %c16_i32_113 : i32 to vector<256x128xi32>
    %227 = arith.cmpi slt, %225, %226 : vector<256x128xi32>
    %228 = arith.andi %223, %227 : vector<256x128xi1>
    %cst_114 = arith.constant 0.000000e+00 : f32
    %229 = vector.broadcast %cst_114 : f32 to vector<256x128xf32>
    %230 = arith.select %228, %209, %229 : vector<256x128xi1>, vector<256x128xf32>
    %231 = arith.truncf %230 : vector<256x128xf32> to vector<256x128xbf16>
    %c2_115 = arith.constant 2 : index
    %c2_116 = arith.constant 2 : index
    %c0_117 = arith.constant 0 : index
    %c0_118 = arith.constant 0 : index
    %232 = vector.load %arg4[%c2_115, %c2_116, %c0_117, %c0_118] : memref<3x3x128x128xbf16, #tpu.memory_space<vmem>>, vector<1x1x128x128xbf16>
    %233 = vector.shape_cast %232 : vector<1x1x128x128xbf16> to vector<128x128xbf16>
    %cst_119 = arith.constant dense<0.000000e+00> : vector<256x128xf32>
    %234 = tpu.matmul %231, %233, %cst_119 {dimension_numbers = #tpu.dot_dimension_numbers<[1], [0], [0], [1], [0, 0, 1, 1], [], []>} : vector<256x128xbf16>, vector<128x128xbf16>, vector<256x128xf32> -> vector<256x128xf32>
    %235 = arith.addf %208, %234 : vector<256x128xf32>
    %c0_120 = arith.constant 0 : index
    %c0_121 = arith.constant 0 : index
    %c0_122 = arith.constant 0 : index
    %236 = vector.load %arg5[%c0_120, %c0_121, %c0_122] : memref<1x256x128xf32, #tpu.memory_space<vmem>>, vector<1x256x128xf32>
    %237 = vector.shape_cast %236 : vector<1x256x128xf32> to vector<256x128xf32>
    %238 = vector.shape_cast %235 : vector<256x128xf32> to vector<1x256x128xf32>
    tpu.vector_store %arg5[%c0_120, %c0_121, %c0_122], %238 {strides = array<i32>} : memref<1x256x128xf32, #tpu.memory_space<vmem>>, vector<1x256x128xf32>,
    %cst_123 = arith.constant dense<0.000000e+00> : vector<128xf32>
    %239 = vector.multi_reduction <add>, %235, %cst_123 [0] : vector<256x128xf32> to vector<128xf32>
    %240 = vector.shape_cast %239 : vector<128xf32> to vector<1x128xf32>
    %241 = arith.mulf %235, %235 : vector<256x128xf32>
    %cst_124 = arith.constant dense<0.000000e+00> : vector<128xf32>
    %242 = vector.multi_reduction <add>, %241, %cst_124 [0] : vector<256x128xf32> to vector<128xf32>
    %243 = vector.shape_cast %242 : vector<128xf32> to vector<1x128xf32>
    %244 = tpu.concatenate %240, %243 in 0 : vector<1x128xf32>, vector<1x128xf32> -> vector<2x128xf32>
    %c0_125 = arith.constant 0 : index
    %c0_126 = arith.constant 0 : index
    %c0_127 = arith.constant 0 : index
    %245 = vector.load %arg6[%c0_125, %c0_126, %c0_127] : memref<1x2x128xf32, #tpu.memory_space<vmem>>, vector<1x2x128xf32>
    %246 = vector.shape_cast %245 : vector<1x2x128xf32> to vector<2x128xf32>
    %247 = vector.shape_cast %244 : vector<2x128xf32> to vector<1x2x128xf32>
    tpu.vector_store %arg6[%c0_125, %c0_126, %c0_127], %247 {strides = array<i32>} : memref<1x2x128xf32, #tpu.memory_space<vmem>>, vector<1x2x128xf32>,
    return
  }
  func.func @transform_0(%arg0: i32) -> (i32, i32, i32) {
    %c0_i32 = arith.constant 0 : i32
    %c0_i32_0 = arith.constant 0 : i32
    %c0_i32_1 = arith.constant 0 : i32
    return %arg0, %c0_i32, %c0_i32_0 : i32, i32, i32
  }
  func.func @transform_1(%arg0: i32) -> (i32, i32) {
    %c0_i32 = arith.constant 0 : i32
    %c0_i32_0 = arith.constant 0 : i32
    %c0_i32_1 = arith.constant 0 : i32
    return %c0_i32, %c0_i32_0 : i32, i32
  }
  func.func @transform_2(%arg0: i32) -> (i32, i32) {
    %c0_i32 = arith.constant 0 : i32
    %c0_i32_0 = arith.constant 0 : i32
    %c0_i32_1 = arith.constant 0 : i32
    return %c0_i32, %c0_i32_0 : i32, i32
  }
  func.func @transform_3(%arg0: i32) -> (i32, i32, i32, i32) {
    %c0_i32 = arith.constant 0 : i32
    %c0_i32_0 = arith.constant 0 : i32
    %c0_i32_1 = arith.constant 0 : i32
    %c0_i32_2 = arith.constant 0 : i32
    %c0_i32_3 = arith.constant 0 : i32
    return %c0_i32, %c0_i32_0, %c0_i32_1, %c0_i32_2 : i32, i32, i32, i32
  }
  func.func @transform_4(%arg0: i32) -> (i32, i32, i32) {
    %c0_i32 = arith.constant 0 : i32
    %c0_i32_0 = arith.constant 0 : i32
    %c0_i32_1 = arith.constant 0 : i32
    return %arg0, %c0_i32, %c0_i32_0 : i32, i32, i32
  }
  func.func @transform_5(%arg0: i32) -> (i32, i32, i32) {
    %c0_i32 = arith.constant 0 : i32
    %c0_i32_0 = arith.constant 0 : i32
    %c0_i32_1 = arith.constant 0 : i32
    return %arg0, %c0_i32, %c0_i32_0 : i32, i32, i32
  }
}

module attributes {stable_mosaic.version = 11 : i64} {
  func.func @_affine_act_matmul_kernel(%arg0: i32, %arg1: memref<256x128xf32, #tpu.memory_space<vmem>>, %arg2: memref<128x64xbf16, #tpu.memory_space<vmem>>, %arg3: memref<1x128xf32, #tpu.memory_space<vmem>>, %arg4: memref<1x128xf32, #tpu.memory_space<vmem>>, %arg5: memref<256x64xf32, #tpu.memory_space<vmem>>, %arg6: memref<1x2x64xf32, #tpu.memory_space<vmem>>) attributes {dimension_semantics = [#tpu.dimension_semantics<parallel>], iteration_bounds = array<i64: 2>, scalar_prefetch = 0 : i64, scratch_operands = 0 : i64, tpu.core_type = #tpu.core_type<tc>, window_params = [{transform_indices = @transform_0, window_bounds = array<i64: 256, 128>}, {pipeline_mode = #tpu.pipeline_mode<synchronous>, transform_indices = @transform_1, window_bounds = array<i64: 128, 64>}, {pipeline_mode = #tpu.pipeline_mode<synchronous>, transform_indices = @transform_2, window_bounds = array<i64: 1, 128>}, {pipeline_mode = #tpu.pipeline_mode<synchronous>, transform_indices = @transform_3, window_bounds = array<i64: 1, 128>}, {transform_indices = @transform_4, window_bounds = array<i64: 256, 64>}, {transform_indices = @transform_5, window_bounds = array<i64: 1, 2, 64>}]} {
    %c0 = arith.constant 0 : index
    %c0_0 = arith.constant 0 : index
    %0 = vector.load %arg1[%c0, %c0_0] : memref<256x128xf32, #tpu.memory_space<vmem>>, vector<256x128xf32>
    %c0_1 = arith.constant 0 : index
    %c0_2 = arith.constant 0 : index
    %1 = vector.load %arg3[%c0_1, %c0_2] : memref<1x128xf32, #tpu.memory_space<vmem>>, vector<1x128xf32>
    %2 = vector.broadcast %1 : vector<1x128xf32> to vector<256x128xf32>
    %3 = arith.mulf %0, %2 : vector<256x128xf32>
    %c0_3 = arith.constant 0 : index
    %c0_4 = arith.constant 0 : index
    %4 = vector.load %arg4[%c0_3, %c0_4] : memref<1x128xf32, #tpu.memory_space<vmem>>, vector<1x128xf32>
    %5 = vector.broadcast %4 : vector<1x128xf32> to vector<256x128xf32>
    %6 = arith.addf %3, %5 : vector<256x128xf32>
    %cst = arith.constant 0.000000e+00 : f32
    %7 = vector.broadcast %cst : f32 to vector<256x128xf32>
    %8 = arith.maximumf %6, %7 : vector<256x128xf32>
    %9 = arith.truncf %8 : vector<256x128xf32> to vector<256x128xbf16>
    %c0_5 = arith.constant 0 : index
    %c0_6 = arith.constant 0 : index
    %10 = vector.load %arg2[%c0_5, %c0_6] : memref<128x64xbf16, #tpu.memory_space<vmem>>, vector<128x64xbf16>
    %cst_7 = arith.constant dense<0.000000e+00> : vector<256x64xf32>
    %11 = tpu.matmul %9, %10, %cst_7 {dimension_numbers = #tpu.dot_dimension_numbers<[1], [0], [0], [1], [0, 0, 1, 1], [], []>} : vector<256x128xbf16>, vector<128x64xbf16>, vector<256x64xf32> -> vector<256x64xf32>
    %c0_8 = arith.constant 0 : index
    %c0_9 = arith.constant 0 : index
    %12 = vector.load %arg5[%c0_8, %c0_9] : memref<256x64xf32, #tpu.memory_space<vmem>>, vector<256x64xf32>
    tpu.vector_store %arg5[%c0_8, %c0_9], %11 {strides = array<i32>} : memref<256x64xf32, #tpu.memory_space<vmem>>, vector<256x64xf32>,
    %cst_10 = arith.constant dense<0.000000e+00> : vector<64xf32>
    %13 = vector.multi_reduction <add>, %11, %cst_10 [0] : vector<256x64xf32> to vector<64xf32>
    %14 = vector.shape_cast %13 : vector<64xf32> to vector<1x64xf32>
    %15 = arith.mulf %11, %11 : vector<256x64xf32>
    %cst_11 = arith.constant dense<0.000000e+00> : vector<64xf32>
    %16 = vector.multi_reduction <add>, %15, %cst_11 [0] : vector<256x64xf32> to vector<64xf32>
    %17 = vector.shape_cast %16 : vector<64xf32> to vector<1x64xf32>
    %18 = tpu.concatenate %14, %17 in 0 : vector<1x64xf32>, vector<1x64xf32> -> vector<2x64xf32>
    %c0_12 = arith.constant 0 : index
    %c0_13 = arith.constant 0 : index
    %c0_14 = arith.constant 0 : index
    %19 = vector.load %arg6[%c0_12, %c0_13, %c0_14] : memref<1x2x64xf32, #tpu.memory_space<vmem>>, vector<1x2x64xf32>
    %20 = vector.shape_cast %19 : vector<1x2x64xf32> to vector<2x64xf32>
    %21 = vector.shape_cast %18 : vector<2x64xf32> to vector<1x2x64xf32>
    tpu.vector_store %arg6[%c0_12, %c0_13, %c0_14], %21 {strides = array<i32>} : memref<1x2x64xf32, #tpu.memory_space<vmem>>, vector<1x2x64xf32>,
    return
  }
  func.func @transform_0(%arg0: i32) -> (i32, i32) {
    %c0_i32 = arith.constant 0 : i32
    %c0_i32_0 = arith.constant 0 : i32
    return %arg0, %c0_i32 : i32, i32
  }
  func.func @transform_1(%arg0: i32) -> (i32, i32) {
    %c0_i32 = arith.constant 0 : i32
    %c0_i32_0 = arith.constant 0 : i32
    %c0_i32_1 = arith.constant 0 : i32
    return %c0_i32, %c0_i32_0 : i32, i32
  }
  func.func @transform_2(%arg0: i32) -> (i32, i32) {
    %c0_i32 = arith.constant 0 : i32
    %c0_i32_0 = arith.constant 0 : i32
    %c0_i32_1 = arith.constant 0 : i32
    return %c0_i32, %c0_i32_0 : i32, i32
  }
  func.func @transform_3(%arg0: i32) -> (i32, i32) {
    %c0_i32 = arith.constant 0 : i32
    %c0_i32_0 = arith.constant 0 : i32
    %c0_i32_1 = arith.constant 0 : i32
    return %c0_i32, %c0_i32_0 : i32, i32
  }
  func.func @transform_4(%arg0: i32) -> (i32, i32) {
    %c0_i32 = arith.constant 0 : i32
    %c0_i32_0 = arith.constant 0 : i32
    return %arg0, %c0_i32 : i32, i32
  }
  func.func @transform_5(%arg0: i32) -> (i32, i32, i32) {
    %c0_i32 = arith.constant 0 : i32
    %c0_i32_0 = arith.constant 0 : i32
    %c0_i32_1 = arith.constant 0 : i32
    return %arg0, %c0_i32, %c0_i32_0 : i32, i32, i32
  }
}

module attributes {stable_mosaic.version = 11 : i64} {
  func.func @_bn_residual_relu_kernel(%arg0: i32, %arg1: memref<256x64xf32, #tpu.memory_space<vmem>>, %arg2: memref<256x64xf32, #tpu.memory_space<vmem>>, %arg3: memref<1x64xf32, #tpu.memory_space<vmem>>, %arg4: memref<1x64xf32, #tpu.memory_space<vmem>>, %arg5: memref<256x64xf32, #tpu.memory_space<vmem>>) attributes {dimension_semantics = [#tpu.dimension_semantics<parallel>], iteration_bounds = array<i64: 2>, scalar_prefetch = 0 : i64, scratch_operands = 0 : i64, tpu.core_type = #tpu.core_type<tc>, window_params = [{transform_indices = @transform_0, window_bounds = array<i64: 256, 64>}, {transform_indices = @transform_1, window_bounds = array<i64: 256, 64>}, {pipeline_mode = #tpu.pipeline_mode<synchronous>, transform_indices = @transform_2, window_bounds = array<i64: 1, 64>}, {pipeline_mode = #tpu.pipeline_mode<synchronous>, transform_indices = @transform_3, window_bounds = array<i64: 1, 64>}, {transform_indices = @transform_4, window_bounds = array<i64: 256, 64>}]} {
    %c0 = arith.constant 0 : index
    %c0_0 = arith.constant 0 : index
    %0 = vector.load %arg1[%c0, %c0_0] : memref<256x64xf32, #tpu.memory_space<vmem>>, vector<256x64xf32>
    %c0_1 = arith.constant 0 : index
    %c0_2 = arith.constant 0 : index
    %1 = vector.load %arg3[%c0_1, %c0_2] : memref<1x64xf32, #tpu.memory_space<vmem>>, vector<1x64xf32>
    %2 = vector.broadcast %1 : vector<1x64xf32> to vector<256x64xf32>
    %3 = arith.mulf %0, %2 : vector<256x64xf32>
    %c0_3 = arith.constant 0 : index
    %c0_4 = arith.constant 0 : index
    %4 = vector.load %arg4[%c0_3, %c0_4] : memref<1x64xf32, #tpu.memory_space<vmem>>, vector<1x64xf32>
    %5 = vector.broadcast %4 : vector<1x64xf32> to vector<256x64xf32>
    %6 = arith.addf %3, %5 : vector<256x64xf32>
    %c0_5 = arith.constant 0 : index
    %c0_6 = arith.constant 0 : index
    %7 = vector.load %arg2[%c0_5, %c0_6] : memref<256x64xf32, #tpu.memory_space<vmem>>, vector<256x64xf32>
    %8 = arith.addf %6, %7 : vector<256x64xf32>
    %cst = arith.constant 0.000000e+00 : f32
    %9 = vector.broadcast %cst : f32 to vector<256x64xf32>
    %10 = arith.maximumf %8, %9 : vector<256x64xf32>
    %c0_7 = arith.constant 0 : index
    %c0_8 = arith.constant 0 : index
    %11 = vector.load %arg5[%c0_7, %c0_8] : memref<256x64xf32, #tpu.memory_space<vmem>>, vector<256x64xf32>
    tpu.vector_store %arg5[%c0_7, %c0_8], %10 {strides = array<i32>} : memref<256x64xf32, #tpu.memory_space<vmem>>, vector<256x64xf32>,
    return
  }
  func.func @transform_0(%arg0: i32) -> (i32, i32) {
    %c0_i32 = arith.constant 0 : i32
    %c0_i32_0 = arith.constant 0 : i32
    return %arg0, %c0_i32 : i32, i32
  }
  func.func @transform_1(%arg0: i32) -> (i32, i32) {
    %c0_i32 = arith.constant 0 : i32
    %c0_i32_0 = arith.constant 0 : i32
    return %arg0, %c0_i32 : i32, i32
  }
  func.func @transform_2(%arg0: i32) -> (i32, i32) {
    %c0_i32 = arith.constant 0 : i32
    %c0_i32_0 = arith.constant 0 : i32
    %c0_i32_1 = arith.constant 0 : i32
    return %c0_i32, %c0_i32_0 : i32, i32
  }
  func.func @transform_3(%arg0: i32) -> (i32, i32) {
    %c0_i32 = arith.constant 0 : i32
    %c0_i32_0 = arith.constant 0 : i32
    %c0_i32_1 = arith.constant 0 : i32
    return %c0_i32, %c0_i32_0 : i32, i32
  }
  func.func @transform_4(%arg0: i32) -> (i32, i32) {
    %c0_i32 = arith.constant 0 : i32
    %c0_i32_0 = arith.constant 0 : i32
    return %arg0, %c0_i32 : i32, i32
  }
}

</mosaic_0001>

<bundles_post_ra>
// kernel: bottleneck_forward.4
= control target key start
LH: loop header
LB: loop body
LE: loop exit
PB: predicated region body
PF: predicated region fallthrough
CT: control target
= control target key end

     0   :  { %11 = vsyncpa [#allocation3], 0  ;;  %s1463_s0 = inlined_call_operand.hbm [shape: f32[512,64], index: 0, kind: input, shape index: {}]   ;;  %s1464_s1 = inlined_call_operand.vmem [shape: bf16[64,128], index: 1, kind: input, shape index: {}]   ;;  %s1465_s2 = inlined_call_operand.vmem [shape: f32[1,64], index: 2, kind: input, shape index: {}]   ;;  %s1466_s3 = inlined_call_operand.vmem [shape: f32[1,64], index: 3, kind: input, shape index: {}]   ;;  %s1467_s4 = inlined_call_operand.vmem [shape: f32[512,128], index: 4, kind: output, shape index: {0}]   ;;  %s1468_s5 = inlined_call_operand.vmem [shape: f32[2,2,128], index: 5, kind: output, shape index: {1}]  }
   0x1   :  { %13 = vsyncpa [#allocation3 + $0x1], 0  ;;  %s1115_s18 = smov 0   ;;  %s1117_s19 = smov 0  }
   0x2   :  { %s1119_s20 = smov 0   ;;  %s1121_s21 = smov 0  }
   0x3 LB: > { %s1134_s22 = sadd.s32 4294967295, %s1080_s21   ;;  %s1137_s23 = sadd.s32 1, %s1080_s21   ;;  %s1080_s21 = sphi %s1121_s21, %s1475_s21   ;;  %s1076_s20 = sphi %s1119_s20, %s1474_s20   ;;  %s1072_s19 = sphi %s1117_s19, %s1473_s19   ;;  %s1068_s18 = sphi %s1115_s18, %s1472_s18  }
   0x4   : > { %s23_s24 = ssub.s32 %s1080_s21, %s1137_s23  ;;  %s26_s25 = sadd.s32 1, %s1076_s20 }
   0x5   : > { %p24_p0 = scmp.eq.s32.totalorder %s23_s24, 0  ;;  %p33_p1 = scmp.ne.s32.totalorder %s1076_s20, %s1072_s19 }
   0x6   : > { %p34_p2 = scmp.eq.s32.totalorder %s1080_s21, 0  ;;  %p39_p3 = scmp.ne.s32.totalorder %s1072_s19, %s1068_s18 }
   0x7   : > { %s1147_s26 = scalar_select %p24_p0, %s1076_s20, %s26_s25  }
   0x8   : > { %p35_p4 = por %p34_p2, %p33_p1  ;;  %p40_p5 = scmp.eq.s32.totalorder %s1134_s22, 0 }
   0x9   : > { %p977_p6 = scmp.lt.s32.totalorder %s1080_s21, 2  ;;  %s187_s28 = sand.u32 1, %s1076_s20  }
   0xa   : > { %p1151_p7 = por %p40_p5, %p39_p3  ;;  %s870_s29 = sshll.u32 %s187_s28, 8 }
   0xb   : > { %s902_s30 = sshll.u32 %s1080_s21, 12  ;;  %s191_s9 = scalar_lea.vmem [#allocation2], %s870_s29 }
   0xc   : > { %s1160_s8 = scalar_lea.hbm %s1463_s0, %s902_s30  ;;  %s198_s10 = sshll.u32 %s191_s9, 4  ;;  %s1162_s10 = int_to_ptr.vmem [resolvable:$true] %s198_s10 }
   0xd   : > { %p1164_p8 = pnand %p977_p6, %p35_p4  ;;  %s1169_s12 = scalar_lea.sflag [#allocation3], %s187_s28 }
   0xe   : > { %s1016_s13 = scalar_lea.hbm %s1160_s8, 4096  ;;  %s1021_s16 = scalar_lea.hbm %s1463_s0, 8192 }
   0xf   : > { %p1017_p10 = scmp.ne.s32.totalorder %s1160_s8, %s1016_s13  ;;  %p1018_p11 = pneg %p1164_p8 }
  0x10   : > { %p1022_p0 = scmp.lt.u32.totalorder %s1160_s8, %s1463_s0  ;;  %p1023_p1 = scmp.lt.u32.totalorder %s1021_s16, %s1016_s13 }
  0x11   : > { %p1019_p12 = pnand %p1018_p11, %p1017_p10  ;;  %p1025_p3 = scmp.lt.u32.totalorder %s1016_s13, %s1160_s8 }
  0x12   : > { %p1024_p2 = por %p1023_p1, %p1022_p0 }
  0x13   : > { %p1020_p13 = pneg %p1019_p12 }
  0x14   : > { %p1026_p4 = por %p1025_p3, %p1024_p2 }
  0x16   : > { %p1027_p5 = pnand %p1026_p4, %p1020_p13 }
  0x18   : > { %1030 = shalt.err (!%p1027_p5)
}
  0x19   : > { %s1031_s24 = scalar_lea.vmem %s1162_s10, 4096  ;;  %s1082_s25 = smov [#allocation2]  }
  0x1a   : > { %p1032_p6 = scmp.ne.s32.totalorder %s1162_s10, %s1031_s24  ;;  %s1036_s28 = sshll.u32 %s1082_s25, 4  ;;  %s1037_s28 = int_to_ptr.vmem [resolvable:$false] %s1036_s28 }
  0x1b   : > { %s1038_s29 = scalar_lea.vmem %s1037_s28, 8192  ;;  %p1039_p9 = scmp.lt.s32.totalorder %s1162_s10, %s1037_s28 }
  0x1c   : > { %p1034_p10 = pnand %p1032_p6, %p1018_p11  ;;  %p1040_p0 = scmp.lt.s32.totalorder %s1038_s29, %s1031_s24 }
  0x1e   : > { %p1035_p12 = pneg %p1034_p10  ;;  %p1041_p1 = por %p1040_p0, %p1039_p9 }
  0x20   : > { %p1042_p2 = pnand %p1041_p1, %p1035_p12 }
  0x22   : > { %1045 = shalt.err (!%p1042_p2)
}
  0x23   : > { %s1083_s30 = smov 128   ;;  %s1084_s6 = smov 8  }
  0x24   : > { %976 = dma.hbm_to_vmem [thread:$0]  (!%p1164_p8), %s1160_s8, 4096, %s1162_s10, %s1169_s12, %s1083_s30, %s1083_s30, %s1084_s6  }
  0x25   : > { %p206_p11 = scmp.lt.s32.totalorder %s1080_s21, 3  ;;  %p1471_p13 = scmp.ge.s32.totalorder %s1080_s21, 1 }
  0x27   : > { %p207_p3 = pnand %p1471_p13, %p206_p11 }
  0x28   : > { %s212_s7 = sand.u32 (!%p207_p3), 1, %s1072_s19  }
  0x29   : > { %210 = sbr.rel (%p207_p3) target bundleno = 359 (0x167), region = 36  ;;  %s874_s9 = sshll.u32 (!%p207_p3), %s212_s7, 8 }
  0x2a   : > { %s213_s13 = scalar_lea.sflag (!%p207_p3), [#allocation3], %s212_s7  ;;  %s1201_s14 = scalar_lea.vmem (!%p207_p3), [#allocation2], %s874_s9 }
  0x30   : > { %1063 = dma.done.wait (%p1151_p7), %s213_s13, 4096  }
  0x31   : > { %1065 = vsyncadd (%p1151_p7), %s213_s13, 4294963200  ;;  %v1012_v0 = vld [vmem:[%s1464_s1] sm:$0xff]   ;;  %v1013_v1 = vld [vmem:[%s1464_s1 + $0x8] sm:$0xff]   ;;  %vm417_vm0 = vcmask 523264   ;;  %s875_s28 = sshll.u32 %s1134_s22, 5  ;;  %p254_p8 = scmp.lt.s32.totalorder %s1134_s22, 1 }
  0x32   : > { %923 = vmatprep.subr.bf16.mxu0 %v1012_v0  ;;  %963 = vmatprep.subr.bf16.mxu1 %v1012_v0  ;;  %v1014_v2 = vld [vmem:[%s1464_s1 + $0x10] sm:$0xff]   ;;  %v259_v3 = vld [vmem:[%s1201_s14] sm:$0xff]  ;;  %v260_v4 = vld [vmem:[%s1201_s14 + $0x8] sm:$0xff]  ;;  %p249_p7 = scmp.lt.s32.totalorder %s875_s28, 63  ;;  %vm765_vm1 = vcmask 1040384  }
  0x33   : > { %924 = vmatpush3.bf16.msra.mxu0 %v1012_v0  ;;  %967 = vmatpush3.bf16.msra.mxu1 %v1012_v0  ;;  %v1221_v5 = vld [vmem:[%s1465_s2] ss:$0 sm:$0xff]  ;;  %v261_v9 = vld [vmem:[%s1201_s14 + $0x10] sm:$0xff]  ;;  %v262_v10 = vld [vmem:[%s1201_s14 + $0x18] sm:$0xff]  ;;  %s1479_s22 = smov (!%p254_p8, %s1134_s22), 1 }
  0x34   : > { %925 = vmatprep.subr.bf16.mxu0 %v1013_v1  ;;  %964 = vmatprep.subr.bf16.mxu1 %v1013_v1  ;;  %v298_v6 = vmul.f32 %v1221_v5, %v259_v3  ;;  %v299_v7 = vmul.f32 %v1221_v5, %v260_v4  ;;  %v1228_v8 = vld [vmem:[%s1466_s3] ss:$0 sm:$0xff]  ;;  %v300_v11 = vmul.f32 %v1221_v5, %v261_v9  ;;  %v264_v14 = vld [vmem:[%s1201_s14 + $0x28] sm:$0xff]  ;;  %v1015_v19 = vld [vmem:[%s1464_s1 + $0x18] sm:$0xff]   ;;  %s1477_s28 = smov (!%p249_p7, %s875_s28), 63  ;;  %s877_s9 = sshll.u32 %s1479_s22, 1 }
  0x35   : > { %v301_v12 = vmul.f32 %v1221_v5, %v262_v10  ;;  %v263_v13 = vld [vmem:[%s1201_s14 + $0x20] sm:$0xff]  ;;  %v303_v18 = vmul.f32 %v1221_v5, %v264_v14  ;;  %v265_v20 = vld [vmem:[%s1201_s14 + $0x30] sm:$0xff]  ;;  %v266_v22 = vld [vmem:[%s1201_s14 + $0x38] sm:$0xff]  ;;  %s876_s29 = sshll.u32 %s1477_s28, 3  ;;  %s257_s15 = scalar_lea.vmem %s1468_s5, %s877_s9 }
  0x36   : > { %v337_v15 = vadd.f32 %v1228_v8, %v298_v6  ;;  %v338_v16 = vadd.f32 %v1228_v8, %v299_v7  ;;  %v302_v17 = vmul.f32 %v1221_v5, %v263_v13  ;;  %v339_v23 = vadd.f32 %v1228_v8, %v300_v11  ;;  %v267_v25 = vld [vmem:[%s1201_s14 + $0x40] sm:$0xff]  ;;  %v268_v26 = vld [vmem:[%s1201_s14 + $0x48] sm:$0xff]  ;;  %v277_v35 = vld [vmem:[%s1201_s14 + $0x90] sm:$0xff]  ;;  %s1345_s7 = scalar_lea.vmem %s1467_s4, %s876_s29 }
  0x37   : > { %926 = vmatpush3.bf16.msra.mxu0 %v1013_v1  ;;  %968 = vmatpush3.bf16.msra.mxu1 %v1013_v1  ;;  %v340_v24 = vadd.f32 %v1228_v8, %v301_v12  ;;  %v342_v28 = vadd.f32 %v1228_v8, %v303_v18  ;;  %v304_v29 = vmul.f32 %v1221_v5, %v265_v20  ;;  %v275_v30 = vld [vmem:[%s1201_s14 + $0x80] sm:$0xff]  ;;  %v276_v32 = vld [vmem:[%s1201_s14 + $0x88] sm:$0xff]  ;;  %v278_v36 = vld [vmem:[%s1201_s14 + $0x98] sm:$0xff] }
  0x38   : > { %927 = vmatprep.subr.bf16.mxu0 %v1014_v2  ;;  %v369_v21 = vpack.c.bf16 %v338_v16, %v337_v15  ;;  %965 = vmatprep.subr.bf16.mxu1 %v1014_v2  ;;  %v341_v27 = vadd.f32 %v1228_v8, %v302_v17  ;;  %v305_v31 = vmul.f32 %v1221_v5, %v266_v22  ;;  %v279_v39 = vld [vmem:[%s1201_s14 + $0xa0] sm:$0xff]  ;;  %v280_v43 = vld [vmem:[%s1201_s14 + $0xa8] sm:$0xff]  ;;  %v281_v44 = vld [vmem:[%s1201_s14 + $0xb0] sm:$0xff] }
  0x39   : > { %v306_v33 = vmul.f32 %v1221_v5, %v267_v25  ;;  %v307_v34 = vmul.f32 %v1221_v5, %v268_v26  ;;  %v370_v37 = vpack.c.bf16 %v340_v24, %v339_v23  ;;  %v314_v38 = vmul.f32 %v1221_v5, %v275_v30  ;;  %v282_v49 = vld [vmem:[%s1201_s14 + $0xb8] sm:$0xff]  ;;  %v283_v50 = vld [vmem:[%s1201_s14 + $0xc0] sm:$0xff]  ;;  %v284_v55 = vld [vmem:[%s1201_s14 + $0xc8] sm:$0xff] }
  0x3a   : > { %931 = vmatprep.mubr.msk.bf16.mxu0 %vm417_vm0, %v369_v21  ;;  %v371_v40 = vpack.c.bf16 %v342_v28, %v341_v27  ;;  %v343_v41 = vadd.f32 %v1228_v8, %v304_v29  ;;  %v315_v42 = vmul.f32 %v1221_v5, %v276_v32  ;;  %v344_v45 = vadd.f32 %v1228_v8, %v305_v31  ;;  %v269_v56 = vld [vmem:[%s1201_s14 + $0x50] sm:$0xff]  ;;  %v270_v57 = vld [vmem:[%s1201_s14 + $0x58] sm:$0xff]  ;;  %v271_v62 = vld [vmem:[%s1201_s14 + $0x60] sm:$0xff] }
  0x3b   : > { %928 = vmatpush3.bf16.msra.mxu0 %v1014_v2  ;;  %969 = vmatpush3.bf16.msra.mxu1 %v1014_v2  ;;  %v353_v46 = vadd.f32 %v1228_v8, %v314_v38  ;;  %v316_v47 = vmul.f32 %v1221_v5, %v277_v35  ;;  %v317_v48 = vmul.f32 %v1221_v5, %v278_v36  ;;  %v272_v3 = vld [vmem:[%s1201_s14 + $0x68] sm:$0xff]  ;;  %v285_v20 = vld [vmem:[%s1201_s14 + $0xd0] sm:$0xff]  ;;  %v286_v21 = vld [vmem:[%s1201_s14 + $0xd8] sm:$0xff] }
  0x3c   : > { %929 = vmatprep.subr.bf16.mxu0 %v1015_v19  ;;  %966 = vmatprep.subr.bf16.mxu1 %v1015_v19  ;;  %v345_v51 = vadd.f32 %v1228_v8, %v306_v33  ;;  %v346_v52 = vadd.f32 %v1228_v8, %v307_v34  ;;  %v354_v53 = vadd.f32 %v1228_v8, %v315_v42  ;;  %v287_v22 = vld [vmem:[%s1201_s14 + $0xe0] sm:$0xff]  ;;  %v288_v23 = vld [vmem:[%s1201_s14 + $0xe8] sm:$0xff]  ;;  %v273_v27 = vld [vmem:[%s1201_s14 + $0x70] sm:$0xff] }
  0x3d   : > { %v318_v54 = vmul.f32 %v1221_v5, %v279_v39  ;;  %v355_v58 = vadd.f32 %v1228_v8, %v316_v47  ;;  %v356_v59 = vadd.f32 %v1228_v8, %v317_v48  ;;  %v319_v60 = vmul.f32 %v1221_v5, %v280_v43  ;;  %v274_v32 = vld [vmem:[%s1201_s14 + $0x78] sm:$0xff] }
  0x3e   : > { %v320_v61 = vmul.f32 %v1221_v5, %v281_v44  ;;  %v377_v63 = vpack.c.bf16 %v354_v53, %v353_v46  ;;  %v321_v1 = vmul.f32 %v1221_v5, %v282_v49  ;;  %v322_v2 = vmul.f32 %v1221_v5, %v283_v50  ;;  %v289_v44 = vld [vmem:[%s1201_s14 + $0xf0] sm:$0xff] }
  0x3f   : > { %930 = vmatpush3.bf16.msra.mxu0 %v1015_v19  ;;  %970 = vmatpush3.bf16.msra.mxu1 %v1015_v19  ;;  %v357_v0 = vadd.f32 %v1228_v8, %v318_v54  ;;  %v378_v4 = vpack.c.bf16 %v356_v59, %v355_v58  ;;  %v358_v6 = vadd.f32 %v1228_v8, %v319_v60 }
  0x40   : > { %v323_v7 = vmul.f32 %v1221_v5, %v284_v55  ;;  %v372_v9 = vpack.c.bf16 %v344_v45, %v343_v41  ;;  %v308_v10 = vmul.f32 %v1221_v5, %v269_v56  ;;  %v309_v11 = vmul.f32 %v1221_v5, %v270_v57  ;;  %947 = vmatprep.mubr.msk.bf16.mxu1 %vm417_vm0, %v377_v63  ;;  %v290_v45 = vld [vmem:[%s1201_s14 + $0xf8] sm:$0xff] }
  0x41   : > { %v310_v12 = vmul.f32 %v1221_v5, %v271_v62  ;;  %v379_v13 = vpack.c.bf16 %v358_v6, %v357_v0  ;;  %v359_v14 = vadd.f32 %v1228_v8, %v320_v61  ;;  %v360_v15 = vadd.f32 %v1228_v8, %v321_v1 }
  0x42   : > { %932 = vmatmul.mubr.msk.bf16.vlgmr.msra.gmra.mrb[0].mxu0 %vm417_vm0, %v370_v37  ;;  %948 = vmatmul.mubr.msk.bf16.vlgmr.msra.gmra.mrb[0].mxu1 %vm417_vm0, %v378_v4  ;;  %v373_v16 = vpack.c.bf16 %v346_v52, %v345_v51  ;;  %v311_v17 = vmul.f32 %v1221_v5, %v272_v3  ;;  %v361_v18 = vadd.f32 %v1228_v8, %v322_v2 }
  0x43   : > { %935 = vmatprep.mubr.msk.bf16.mxu0 %vm417_vm0, %v371_v40  ;;  %v362_v19 = vadd.f32 %v1228_v8, %v323_v7  ;;  %951 = vmatprep.mubr.msk.bf16.mxu1 %vm417_vm0, %v379_v13  ;;  %v347_v24 = vadd.f32 %v1228_v8, %v308_v10  ;;  %v348_v25 = vadd.f32 %v1228_v8, %v309_v11 }
  0x44   : > { %v349_v26 = vadd.f32 %v1228_v8, %v310_v12  ;;  %v380_v28 = vpack.c.bf16 %v360_v15, %v359_v14  ;;  %v324_v29 = vmul.f32 %v1221_v5, %v285_v20  ;;  %v325_v30 = vmul.f32 %v1221_v5, %v286_v21 }
  0x45   : > { %v350_v31 = vadd.f32 %v1228_v8, %v311_v17  ;;  %v381_v33 = vpack.c.bf16 %v362_v19, %v361_v18  ;;  %v326_v34 = vmul.f32 %v1221_v5, %v287_v22  ;;  %v327_v35 = vmul.f32 %v1221_v5, %v288_v23 }
  0x46   : > { %v312_v36 = vmul.f32 %v1221_v5, %v273_v27  ;;  %v374_v37 = vpack.c.bf16 %v348_v25, %v347_v24  ;;  %v313_v38 = vmul.f32 %v1221_v5, %v274_v32  ;;  %v363_v39 = vadd.f32 %v1228_v8, %v324_v29 }
  0x47   : > { %v364_v40 = vadd.f32 %v1228_v8, %v325_v30  ;;  %v375_v41 = vpack.c.bf16 %v350_v31, %v349_v26  ;;  %v365_v42 = vadd.f32 %v1228_v8, %v326_v34  ;;  %v366_v43 = vadd.f32 %v1228_v8, %v327_v35 }
  0x48   : > { %v351_v46 = vadd.f32 %v1228_v8, %v312_v36  ;;  %v352_v47 = vadd.f32 %v1228_v8, %v313_v38  ;;  %v328_v49 = vmul.f32 %v1221_v5, %v289_v44  ;;  %v329_v50 = vmul.f32 %v1221_v5, %v290_v45 }
  0x49   : > { %v382_v48 = vpack.c.bf16 %v364_v40, %v363_v39  ;;  %v383_v51 = vpack.c.bf16 %v366_v43, %v365_v42 }
  0x4a   : > { %936 = vmatmul.mubr.msk.bf16.gmra.mrb[4].mxu0 %vm417_vm0, %v372_v9  ;;  %952 = vmatmul.mubr.msk.bf16.gmra.mrb[4].mxu1 %vm417_vm0, %v380_v28  ;;  %v376_v52 = vpack.c.bf16 %v352_v47, %v351_v46  ;;  %v367_v53 = vadd.f32 %v1228_v8, %v328_v49  ;;  %v368_v54 = vadd.f32 %v1228_v8, %v329_v50 }
  0x4b   : > { %939 = vmatprep.mubr.msk.bf16.mxu0 %vm417_vm0, %v373_v16  ;;  %955 = vmatprep.mubr.msk.bf16.mxu1 %vm417_vm0, %v381_v33 }
  0x4c   : > { %v384_v55 = vpack.c.bf16 %v368_v54, %v367_v53 }
  0x52   : > { %940 = vmatmul.mubr.msk.bf16.gmra.mrb[8].mxu0 %vm417_vm0, %v374_v37  ;;  %956 = vmatmul.mubr.msk.bf16.gmra.mrb[8].mxu1 %vm417_vm0, %v382_v48 }
  0x53   : > { %943 = vmatprep.mubr.msk.bf16.mxu0 %vm417_vm0, %v375_v41  ;;  %959 = vmatprep.mubr.msk.bf16.mxu1 %vm417_vm0, %v383_v51 }
  0x5a   : > { %944 = vmatmul.mubr.msk.bf16.gmra.mrb[12].mxu0 %vm417_vm0, %v376_v52  ;;  %960 = vmatmul.mubr.msk.bf16.gmra.mrb[12].mxu1 %vm417_vm0, %v384_v55 }
 0x115   : > { %v933_v5 = vpop.f32.mrb[0].mxu0  ;;  %v1351_v61 = vpop.f32.mrb[0].mxu1 }
 0x116   : > { %629 = vst [vmem:[%s1345_s7 + $0x10] sm:$0xff] %v933_v5  ;;  %v500_v8 = vpop.f32.mrb[1].mxu0  ;;  %645 = vst [vmem:[%s1345_s7 + $0x90] sm:$0xff] %v1351_v61  ;;  %v1355_v62 = vpop.f32.mrb[1].mxu1  ;;  %v698_v63 = vmul.f32 %v933_v5, %v933_v5 }
 0x117   : > { %627 = vst [vmem:[%s1345_s7] sm:$0xff] %v500_v8  ;;  %v934_v56 = vpop.f32.mrb[2].mxu0  ;;  %v696_v58 = vmul.f32 %v500_v8, %v500_v8  ;;  %643 = vst [vmem:[%s1345_s7 + $0x80] sm:$0xff] %v1355_v62  ;;  %v1359_v2 = vpop.f32.mrb[2].mxu1 }
 0x118   : > { %630 = vst [vmem:[%s1345_s7 + $0x18] sm:$0xff] %v934_v56  ;;  %v503_v57 = vpop.f32.mrb[3].mxu0  ;;  %646 = vst [vmem:[%s1345_s7 + $0x98] sm:$0xff] %v1359_v2  ;;  %v1363_v3 = vpop.f32.mrb[3].mxu1  ;;  %v699_v4 = vmul.f32 %v934_v56, %v934_v56 }
 0x119   : > { %628 = vst [vmem:[%s1345_s7 + $0x8] sm:$0xff] %v503_v57  ;;  %v659_v59 = vadd.f32 %v503_v57, %v500_v8  ;;  %v697_v60 = vmul.f32 %v503_v57, %v503_v57  ;;  %644 = vst [vmem:[%s1345_s7 + $0x88] sm:$0xff] %v1363_v3 }
 0x11b   : > { %v660_v0 = vadd.f32 %v933_v5, %v659_v59  ;;  %v728_v1 = vadd.f32 %v697_v60, %v696_v58 }
 0x11d   : > { %v729_v6 = vadd.f32 %v728_v1, %v698_v63  ;;  %v937_v7 = vpop.f32.mrb[4].mxu0  ;;  %v661_v9 = vadd.f32 %v934_v56, %v660_v0  ;;  %v1371_v19 = vpop.f32.mrb[4].mxu1 }
 0x11e   : > { %633 = vst [vmem:[%s1345_s7 + $0x30] sm:$0xff] %v937_v7  ;;  %v516_v10 = vpop.f32.mrb[5].mxu0  ;;  %649 = vst [vmem:[%s1345_s7 + $0xb0] sm:$0xff] %v1371_v19  ;;  %v1375_v20 = vpop.f32.mrb[5].mxu1  ;;  %v702_v21 = vmul.f32 %v937_v7, %v937_v7 }
 0x11f   : > { %631 = vst [vmem:[%s1345_s7 + $0x20] sm:$0xff] %v516_v10  ;;  %v662_v11 = vadd.f32 %v661_v9, %v516_v10  ;;  %v700_v12 = vmul.f32 %v516_v10, %v516_v10  ;;  %v730_v13 = vadd.f32 %v729_v6, %v699_v4  ;;  %v938_v14 = vpop.f32.mrb[6].mxu0  ;;  %647 = vst [vmem:[%s1345_s7 + $0xa0] sm:$0xff] %v1375_v20  ;;  %v1379_v24 = vpop.f32.mrb[6].mxu1 }
 0x120   : > { %634 = vst [vmem:[%s1345_s7 + $0x38] sm:$0xff] %v938_v14  ;;  %v519_v15 = vpop.f32.mrb[7].mxu0  ;;  %650 = vst [vmem:[%s1345_s7 + $0xb8] sm:$0xff] %v1379_v24  ;;  %v1383_v25 = vpop.f32.mrb[7].mxu1  ;;  %v703_v26 = vmul.f32 %v938_v14, %v938_v14  ;;  %v712_v9 = vmul.f32 %v1355_v62, %v1355_v62 }
 0x121   : > { %v731_v16 = vadd.f32 %v730_v13, %v700_v12  ;;  %632 = vst [vmem:[%s1345_s7 + $0x28] sm:$0xff] %v519_v15  ;;  %v663_v17 = vadd.f32 %v662_v11, %v519_v15  ;;  %v701_v18 = vmul.f32 %v519_v15, %v519_v15  ;;  %648 = vst [vmem:[%s1345_s7 + $0xa8] sm:$0xff] %v1383_v25 }
 0x122   : > { %v714_v15 = vmul.f32 %v1351_v61, %v1351_v61 }
 0x123   : > { %v664_v22 = vadd.f32 %v937_v7, %v663_v17  ;;  %v732_v23 = vadd.f32 %v731_v16, %v701_v18  ;;  %v715_v18 = vmul.f32 %v1359_v2, %v1359_v2 }
 0x125   : > { %v733_v27 = vadd.f32 %v732_v23, %v702_v21  ;;  %v941_v28 = vpop.f32.mrb[8].mxu0  ;;  %v665_v29 = vadd.f32 %v938_v14, %v664_v22  ;;  %v1391_v39 = vpop.f32.mrb[8].mxu1  ;;  %v713_v14 = vmul.f32 %v1363_v3, %v1363_v3 }
 0x126   : > { %637 = vst [vmem:[%s1345_s7 + $0x50] sm:$0xff] %v941_v28  ;;  %v532_v30 = vpop.f32.mrb[9].mxu0  ;;  %653 = vst [vmem:[%s1345_s7 + $0xd0] sm:$0xff] %v1391_v39  ;;  %v1395_v40 = vpop.f32.mrb[9].mxu1  ;;  %v706_v41 = vmul.f32 %v941_v28, %v941_v28 }
 0x127   : > { %635 = vst [vmem:[%s1345_s7 + $0x40] sm:$0xff] %v532_v30  ;;  %v666_v31 = vadd.f32 %v665_v29, %v532_v30  ;;  %v704_v32 = vmul.f32 %v532_v30, %v532_v30  ;;  %v734_v33 = vadd.f32 %v733_v27, %v703_v26  ;;  %v942_v34 = vpop.f32.mrb[10].mxu0  ;;  %651 = vst [vmem:[%s1345_s7 + $0xc0] sm:$0xff] %v1395_v40  ;;  %v1399_v44 = vpop.f32.mrb[10].mxu1 }
 0x128   : > { %638 = vst [vmem:[%s1345_s7 + $0x58] sm:$0xff] %v942_v34  ;;  %v535_v35 = vpop.f32.mrb[11].mxu0  ;;  %654 = vst [vmem:[%s1345_s7 + $0xd8] sm:$0xff] %v1399_v44  ;;  %v599_v45 = vpop.f32.mrb[11].mxu1  ;;  %v707_v46 = vmul.f32 %v942_v34, %v942_v34 }
 0x129   : > { %v735_v36 = vadd.f32 %v734_v33, %v704_v32  ;;  %636 = vst [vmem:[%s1345_s7 + $0x48] sm:$0xff] %v535_v35  ;;  %v667_v37 = vadd.f32 %v666_v31, %v535_v35  ;;  %v705_v38 = vmul.f32 %v535_v35, %v535_v35  ;;  %652 = vst [vmem:[%s1345_s7 + $0xc8] sm:$0xff] %v599_v45 }
 0x12b   : > { %v668_v42 = vadd.f32 %v941_v28, %v667_v37  ;;  %v736_v43 = vadd.f32 %v735_v36, %v705_v38  ;;  %v717_v28 = vmul.f32 %v1383_v25, %v1383_v25  ;;  %v721_v36 = vmul.f32 %v599_v45, %v599_v45 }
 0x12c   : > { %v722_v37 = vmul.f32 %v1391_v39, %v1391_v39 }
 0x12d   : > { %v737_v47 = vadd.f32 %v736_v43, %v706_v41  ;;  %v945_v48 = vpop.f32.mrb[12].mxu0  ;;  %v669_v49 = vadd.f32 %v942_v34, %v668_v42  ;;  %v961_v57 = vpop.f32.mrb[12].mxu1  ;;  %v723_v41 = vmul.f32 %v1399_v44, %v1399_v44 }
 0x12e   : > { %641 = vst [vmem:[%s1345_s7 + $0x70] sm:$0xff] %v945_v48  ;;  %v548_v50 = vpop.f32.mrb[13].mxu0  ;;  %657 = vst [vmem:[%s1345_s7 + $0xf0] sm:$0xff] %v961_v57  ;;  %v612_v58 = vpop.f32.mrb[13].mxu1  ;;  %v710_v59 = vmul.f32 %v945_v48, %v945_v48 }
 0x12f   : > { %639 = vst [vmem:[%s1345_s7 + $0x60] sm:$0xff] %v548_v50  ;;  %v670_v51 = vadd.f32 %v669_v49, %v548_v50  ;;  %v708_v52 = vmul.f32 %v548_v50, %v548_v50  ;;  %v738_v53 = vadd.f32 %v737_v47, %v707_v46  ;;  %v946_v54 = vpop.f32.mrb[14].mxu0  ;;  %655 = vst [vmem:[%s1345_s7 + $0xe0] sm:$0xff] %v612_v58  ;;  %v962_v0 = vpop.f32.mrb[14].mxu1 }
 0x130   : > { %642 = vst [vmem:[%s1345_s7 + $0x78] sm:$0xff] %v946_v54  ;;  %v551_v55 = vpop.f32.mrb[15].mxu0  ;;  %658 = vst [vmem:[%s1345_s7 + $0xf8] sm:$0xff] %v962_v0  ;;  %v615_v1 = vpop.f32.mrb[15].mxu1  ;;  %v711_v4 = vmul.f32 %v946_v54, %v946_v54  ;;  %v724_v43 = vmul.f32 %v612_v58, %v612_v58  ;;  %v726_v49 = vmul.f32 %v961_v57, %v961_v57 }
 0x131   : > { %v739_v5 = vadd.f32 %v738_v53, %v708_v52  ;;  %640 = vst [vmem:[%s1345_s7 + $0x68] sm:$0xff] %v551_v55  ;;  %v671_v8 = vadd.f32 %v670_v51, %v551_v55  ;;  %v709_v56 = vmul.f32 %v551_v55, %v551_v55  ;;  %656 = vst [vmem:[%s1345_s7 + $0xe8] sm:$0xff] %v615_v1 }
 0x132   : > { %v727_v52 = vmul.f32 %v962_v0, %v962_v0 }
 0x133   : > { %v672_v60 = vadd.f32 %v945_v48, %v671_v8  ;;  %v740_v63 = vadd.f32 %v739_v5, %v709_v56 }
 0x135   : > { %v741_v6 = vadd.f32 %v740_v63, %v710_v59  ;;  %v673_v7 = vadd.f32 %v946_v54, %v672_v60 }
 0x137   : > { %v674_v10 = vadd.f32 %v673_v7, %v1355_v62  ;;  %v742_v11 = vadd.f32 %v741_v6, %v711_v4  ;;  %v716_v62 = vmul.f32 %v1375_v20, %v1375_v20 }
 0x139   : > { %v743_v12 = vadd.f32 %v742_v11, %v712_v9  ;;  %v675_v13 = vadd.f32 %v674_v10, %v1363_v3 }
 0x13b   : > { %v676_v16 = vadd.f32 %v1351_v61, %v675_v13  ;;  %v744_v17 = vadd.f32 %v743_v12, %v713_v14  ;;  %v718_v61 = vmul.f32 %v1371_v19, %v1371_v19 }
 0x13d   : > { %v745_v21 = vadd.f32 %v744_v17, %v714_v15  ;;  %v677_v22 = vadd.f32 %v1359_v2, %v676_v16  ;;  %v719_v2 = vmul.f32 %v1379_v24, %v1379_v24 }
 0x13f   : > { %v678_v23 = vadd.f32 %v677_v22, %v1375_v20  ;;  %v746_v26 = vadd.f32 %v745_v21, %v715_v18  ;;  %v720_v20 = vmul.f32 %v1395_v40, %v1395_v40 }
 0x141   : > { %v747_v27 = vadd.f32 %v746_v26, %v716_v62  ;;  %v679_v3 = vadd.f32 %v678_v23, %v1383_v25 }
 0x143   : > { %v680_v29 = vadd.f32 %v1371_v19, %v679_v3  ;;  %v748_v30 = vadd.f32 %v747_v27, %v717_v28 }
 0x145   : > { %v749_v31 = vadd.f32 %v748_v30, %v718_v61  ;;  %v681_v32 = vadd.f32 %v1379_v24, %v680_v29 }
 0x147   : > { %v682_v33 = vadd.f32 %v681_v32, %v1395_v40  ;;  %v750_v34 = vadd.f32 %v749_v31, %v719_v2 }
 0x149   : > { %v751_v35 = vadd.f32 %v750_v34, %v720_v20  ;;  %v683_v25 = vadd.f32 %v682_v33, %v599_v45  ;;  %v725_v45 = vmul.f32 %v615_v1, %v615_v1 }
 0x14b   : > { %v684_v19 = vadd.f32 %v1391_v39, %v683_v25  ;;  %v752_v38 = vadd.f32 %v751_v35, %v721_v36 }
 0x14d   : > { %v753_v42 = vadd.f32 %v752_v38, %v722_v37  ;;  %v685_v24 = vadd.f32 %v1399_v44, %v684_v19 }
 0x14f   : > { %v686_v46 = vadd.f32 %v685_v24, %v612_v58  ;;  %v754_v40 = vadd.f32 %v753_v42, %v723_v41 }
 0x151   : > { %v755_v47 = vadd.f32 %v754_v40, %v724_v43  ;;  %v687_v48 = vadd.f32 %v686_v46, %v615_v1 }
 0x153   : > { %v688_v50 = vadd.f32 %v961_v57, %v687_v48  ;;  %v756_v51 = vadd.f32 %v755_v47, %v725_v45 }
 0x155   : > { %v689_v39 = vadd.f32 %v962_v0, %v688_v50  ;;  %v757_v53 = vadd.f32 %v756_v51, %v726_v49 }
 0x157   : > { %v690_v54 = vrot.slane %v689_v39, 4  ;;  %v758_v55 = vadd.f32 %v757_v53, %v727_v52 }
 0x159   : > { %v691_v5 = vadd.f32 %v690_v54, %v689_v39  ;;  %v759_v8 = vrot.slane %v758_v55, 4 }
 0x15b   : > { %v692_v56 = vrot.slane %v691_v5, 2  ;;  %v760_v44 = vadd.f32 %v759_v8, %v758_v55 }
 0x15d   : > { %v693_v58 = vadd.f32 %v692_v56, %v691_v5  ;;  %v761_v59 = vrot.slane %v760_v44, 2 }
 0x15f   : > { %v694_v60 = vrot.slane %v693_v58, 1  ;;  %v762_v63 = vadd.f32 %v761_v59, %v760_v44 }
 0x161   : > { %v763_v1 = vrot.slane %v762_v63, 1  ;;  %v695_v57 = vadd.f32 %v694_v60, %v693_v58 }
 0x163   : > { %v764_v0 = vadd.f32 %v763_v1, %v762_v63 }
 0x165   : > { %v766_v4 = vsel %vm765_vm1, %v695_v57, %v764_v0 }
 0x166   : > { %767 = vst [vmem:[%s257_s15] sm:$0x3] %v766_v4 }
 0x167 PF: > { %p16_p9 = scmp.ge.s32.totalorder %s1137_s23, 4   ;;  %s1472_s18 = smov %s1072_s19 }
 0x168   : > { %s1473_s19 = smov %s1076_s20  ;;  %s1474_s20 = smov %s1147_s26 }
 0x169   : > { %s1475_s21 = smov %s1137_s23  ;;  %18 = sbr.rel (!%p16_p9) target bundleno = 3 (0x3), region = 88 }
 0x170   :  { %804 = vsyncpa [#allocation3], 1 }
 0x171   :  { %806 = vsyncpa [#allocation3 + $0x1], 1 }

// kernel: bottleneck_forward.6
= control target key start
LH: loop header
LB: loop body
LE: loop exit
PB: predicated region body
PF: predicated region fallthrough
CT: control target
= control target key end

     0   :  { %s1081_s18 = smov 0   ;;  %s1491_s0 = inlined_call_operand.vmem [shape: f32[512,128], index: 0, kind: input, shape index: {}]   ;;  %s1492_s1 = inlined_call_operand.vmem [shape: bf16[128,64], index: 1, kind: input, shape index: {}]   ;;  %s1493_s2 = inlined_call_operand.vmem [shape: f32[1,128], index: 2, kind: input, shape index: {}]   ;;  %s1494_s3 = inlined_call_operand.vmem [shape: f32[1,128], index: 3, kind: input, shape index: {}]   ;;  %s1495_s4 = inlined_call_operand.vmem [shape: f32[512,64], index: 4, kind: output, shape index: {0}]   ;;  %s1496_s5 = inlined_call_operand.vmem [shape: f32[2,2,64], index: 5, kind: output, shape index: {1}]  }
   0x1 LB: > { %s1087_s19 = sadd.s32 4294967295, %s1049_s18   ;;  %p921_p0 = scmp.ge.s32.totalorder %s1049_s18, 1  ;;  %s1049_s18 = sphi %s1081_s18, %s16_s18  }
   0x2   : > { %p191_p1 = scmp.lt.s32.totalorder %s1049_s18, 3 }
   0x4   : > { %p192_p2 = pnand %p921_p0, %p191_p1 }
   0x5   : > { %v1035_v0 = vld [vmem:[%s1492_s1] sm:$0xff] (!%p192_p2)   ;;  %s922_s22 = sshll.u32 (!%p192_p2), %s1087_s19, 5  ;;  %v1036_v1 = vld [vmem:[%s1492_s1 + $0x8] sm:$0xff] (!%p192_p2)   ;;  %v1037_v2 = vld [vmem:[%s1492_s1 + $0x10] sm:$0xff] (!%p192_p2)   ;;  %vm623_vm0 = vcmask (!%p192_p2), 523264   ;;  %p235_p4 = scmp.lt.s32.totalorder (!%p192_p2), %s1087_s19, 1 }
   0x6   : > { %195 = sbr.rel (%p192_p2) target bundleno = 332 (0x14c), region = 36  ;;  %p224_p3 = scmp.lt.s32.totalorder (!%p192_p2), %s922_s22, 63  ;;  %963 = vmatprep.subr.bf16.mxu0 (!%p192_p2), %v1035_v0  ;;  %1011 = vmatprep.subr.bf16.mxu1 (!%p192_p2), %v1035_v0  ;;  %v1038_v3 = vld [vmem:[%s1492_s1 + $0x18] sm:$0xff] (!%p192_p2)   ;;  %v1119_v6 = vld [vmem:[%s1493_s2] ss:$0 sm:$0xff] (!%p192_p2)  ;;  %v1040_v27 = vld [vmem:[%s1492_s1 + $0x28] sm:$0xff] (!%p192_p2)  }
   0x7   : > { %964 = vmatpush3.bf16.msra.mxu0 (!%p192_p2), %v1035_v0  ;;  %1019 = vmatpush3.bf16.msra.mxu1 (!%p192_p2), %v1035_v0  ;;  %v1126_v9 = vld [vmem:[%s1494_s3] ss:$0 sm:$0xff] (!%p192_p2)  ;;  %v1041_v35 = vld [vmem:[%s1492_s1 + $0x30] sm:$0xff] (!%p192_p2)   ;;  %v1042_v52 = vld [vmem:[%s1492_s1 + $0x38] sm:$0xff] (!%p192_p2)   ;;  %vm826_vm1 = vcmask (!%p192_p2), 1040384   ;;  %vm828_vm2 = vcmask (!%p192_p2), 517120  }
   0x8   : > { %965 = vmatprep.subr.bf16.mxu0 (!%p192_p2), %v1036_v1  ;;  %1012 = vmatprep.subr.bf16.mxu1 (!%p192_p2), %v1036_v1  ;;  %v1039_v17 = vld [vmem:[%s1492_s1 + $0x20] sm:$0xff] (!%p192_p2)  }
   0xb   : > { %966 = vmatpush3.bf16.msra.mxu0 (!%p192_p2), %v1036_v1  ;;  %1020 = vmatpush3.bf16.msra.mxu1 (!%p192_p2), %v1036_v1 }
   0xc   : > { %967 = vmatprep.subr.bf16.mxu0 (!%p192_p2), %v1037_v2  ;;  %1013 = vmatprep.subr.bf16.mxu1 (!%p192_p2), %v1037_v2 }
   0xd   : > { %s1498_s22 = smov (!%p224_p3, %s922_s22), 63  ;;  %s1500_s19 = smov (!%p235_p4, %s1087_s19), 1 }
   0xe   : > { %s923_s27 = sshll.u32 %s1498_s22, 3  ;;  %s926_s22 = sshll.u32 %s1500_s19, 1 }
   0xf   : > { %s1109_s30 = scalar_lea.vmem %s1491_s0, %s923_s27  ;;  %968 = vmatpush3.bf16.msra.mxu0 %v1037_v2  ;;  %1021 = vmatpush3.bf16.msra.mxu1 %v1037_v2  ;;  %s1257_s25 = scalar_lea.vmem %s1495_s4, %s923_s27 }
  0x10   : > { %v240_v4 = vld [vmem:[%s1109_s30] sm:$0xff]  ;;  %v241_v5 = vld [vmem:[%s1109_s30 + $0x8] sm:$0xff]  ;;  %v242_v10 = vld [vmem:[%s1109_s30 + $0x10] sm:$0xff]  ;;  %969 = vmatprep.subr.bf16.mxu0 %v1038_v3  ;;  %1014 = vmatprep.subr.bf16.mxu1 %v1038_v3  ;;  %s238_s28 = scalar_lea.vmem %s1496_s5, %s926_s22 }
  0x11   : > { %v279_v7 = vmul.f32 %v1119_v6, %v240_v4  ;;  %v280_v8 = vmul.f32 %v1119_v6, %v241_v5  ;;  %v243_v11 = vld [vmem:[%s1109_s30 + $0x18] sm:$0xff]  ;;  %v281_v12 = vmul.f32 %v1119_v6, %v242_v10  ;;  %v244_v16 = vld [vmem:[%s1109_s30 + $0x20] sm:$0xff]  ;;  %v245_v20 = vld [vmem:[%s1109_s30 + $0x28] sm:$0xff] }
  0x12   : > { %v282_v15 = vmul.f32 %v1119_v6, %v243_v11  ;;  %v283_v21 = vmul.f32 %v1119_v6, %v244_v16  ;;  %v246_v22 = vld [vmem:[%s1109_s30 + $0x30] sm:$0xff]  ;;  %v247_v26 = vld [vmem:[%s1109_s30 + $0x38] sm:$0xff]  ;;  %v284_v28 = vmul.f32 %v1119_v6, %v245_v20  ;;  %v256_v31 = vld [vmem:[%s1109_s30 + $0x80] sm:$0xff] }
  0x13   : > { %v318_v13 = vadd.f32 %v1126_v9, %v279_v7  ;;  %v319_v14 = vadd.f32 %v1126_v9, %v280_v8  ;;  %970 = vmatpush3.bf16.msra.mxu0 %v1038_v3  ;;  %v320_v24 = vadd.f32 %v1126_v9, %v281_v12  ;;  %1022 = vmatpush3.bf16.msra.mxu1 %v1038_v3  ;;  %v248_v37 = vld [vmem:[%s1109_s30 + $0x40] sm:$0xff]  ;;  %v257_v38 = vld [vmem:[%s1109_s30 + $0x88] sm:$0xff]  ;;  %v258_v42 = vld [vmem:[%s1109_s30 + $0x90] sm:$0xff] }
  0x14   : > { %v321_v25 = vadd.f32 %v1126_v9, %v282_v15  ;;  %971 = vmatprep.subr.bf16.mxu0 %v1039_v17  ;;  %1015 = vmatprep.subr.bf16.mxu1 %v1039_v17  ;;  %v285_v29 = vmul.f32 %v1119_v6, %v246_v22  ;;  %v286_v30 = vmul.f32 %v1119_v6, %v247_v26  ;;  %v249_v40 = vld [vmem:[%s1109_s30 + $0x48] sm:$0xff]  ;;  %v259_v44 = vld [vmem:[%s1109_s30 + $0x98] sm:$0xff]  ;;  %v260_v45 = vld [vmem:[%s1109_s30 + $0xa0] sm:$0xff] }
  0x15   : > { %v350_v18 = vmax.f32 %v318_v13, 0.0  ;;  %v351_v19 = vmax.f32 %v319_v14, 0.0  ;;  %v352_v32 = vmax.f32 %v320_v24, 0.0  ;;  %v1152_v34 = vadd.f32 %v1126_v9, %v283_v21  ;;  %v261_v50 = vld [vmem:[%s1109_s30 + $0xa8] sm:$0xff]  ;;  %v262_v51 = vld [vmem:[%s1109_s30 + $0xb0] sm:$0xff]  ;;  %v263_v61 = vld [vmem:[%s1109_s30 + $0xb8] sm:$0xff] }
  0x16   : > { %v353_v33 = vmax.f32 %v321_v25, 0.0  ;;  %v1158_v36 = vadd.f32 %v1126_v9, %v284_v28  ;;  %v1163_v39 = vadd.f32 %v1126_v9, %v285_v29  ;;  %v295_v41 = vmul.f32 %v1119_v6, %v256_v31  ;;  %v264_v2 = vld [vmem:[%s1109_s30 + $0xc0] sm:$0xff]  ;;  %v265_v8 = vld [vmem:[%s1109_s30 + $0xc8] sm:$0xff]  ;;  %v250_v14 = vld [vmem:[%s1109_s30 + $0x50] sm:$0xff] }
  0x17   : > { %v382_v23 = vpack.c.bf16 %v351_v19, %v350_v18  ;;  %972 = vmatpush3.bf16.msra.mxu0 %v1039_v17  ;;  %1023 = vmatpush3.bf16.msra.mxu1 %v1039_v17  ;;  %v1169_v43 = vadd.f32 %v1126_v9, %v286_v30  ;;  %v354_v47 = vmax.f32 %v1152_v34, 0.0  ;;  %v287_v48 = vmul.f32 %v1119_v6, %v248_v37  ;;  %v251_v15 = vld [vmem:[%s1109_s30 + $0x58] sm:$0xff]  ;;  %v252_v20 = vld [vmem:[%s1109_s30 + $0x60] sm:$0xff]  ;;  %v253_v21 = vld [vmem:[%s1109_s30 + $0x68] sm:$0xff] }
  0x18   : > { %973 = vmatprep.subr.bf16.mxu0 %v1040_v27  ;;  %1016 = vmatprep.subr.bf16.mxu1 %v1040_v27  ;;  %v1173_v46 = vpack.c.bf16 %v353_v33, %v352_v32  ;;  %v296_v49 = vmul.f32 %v1119_v6, %v257_v38  ;;  %v355_v53 = vmax.f32 %v1158_v36, 0.0  ;;  %v288_v54 = vmul.f32 %v1119_v6, %v249_v40  ;;  %v266_v30 = vld [vmem:[%s1109_s30 + $0xd0] sm:$0xff]  ;;  %v267_v31 = vld [vmem:[%s1109_s30 + $0xd8] sm:$0xff]  ;;  %v268_v36 = vld [vmem:[%s1109_s30 + $0xe0] sm:$0xff] }
  0x19   : > { %979 = vmatprep.mubr.bf16.mxu0 %v382_v23  ;;  %v334_v55 = vadd.f32 %v1126_v9, %v295_v41  ;;  %v297_v56 = vmul.f32 %v1119_v6, %v258_v42  ;;  %v356_v57 = vmax.f32 %v1163_v39, 0.0  ;;  %v298_v59 = vmul.f32 %v1119_v6, %v259_v44  ;;  %v269_v37 = vld [vmem:[%s1109_s30 + $0xe8] sm:$0xff] }
  0x1a   : > { %v335_v58 = vadd.f32 %v1126_v9, %v296_v49  ;;  %v299_v60 = vmul.f32 %v1119_v6, %v260_v45  ;;  %v300_v0 = vmul.f32 %v1119_v6, %v261_v50  ;;  %v301_v1 = vmul.f32 %v1119_v6, %v262_v51 }
  0x1b   : > { %974 = vmatpush3.bf16.msra.mxu0 %v1040_v27  ;;  %1024 = vmatpush3.bf16.msra.mxu1 %v1040_v27  ;;  %v366_v62 = vmax.f32 %v334_v55, 0.0  ;;  %v336_v63 = vadd.f32 %v1126_v9, %v297_v56  ;;  %v1197_v3 = vadd.f32 %v1126_v9, %v287_v48  ;;  %v337_v5 = vadd.f32 %v1126_v9, %v298_v59  ;;  %v254_v56 = vld [vmem:[%s1109_s30 + $0x70] sm:$0xff] }
  0x1c   : > { %975 = vmatprep.subr.bf16.mxu0 %v1041_v35  ;;  %1017 = vmatprep.subr.bf16.mxu1 %v1041_v35  ;;  %v367_v4 = vmax.f32 %v335_v58, 0.0  ;;  %v338_v7 = vadd.f32 %v1126_v9, %v299_v60  ;;  %v327_v10 = vadd.f32 %v1126_v9, %v288_v54  ;;  %v339_v12 = vadd.f32 %v1126_v9, %v300_v0  ;;  %v255_v58 = vld [vmem:[%s1109_s30 + $0x78] sm:$0xff]  ;;  %v270_v0 = vld [vmem:[%s1109_s30 + $0xf0] sm:$0xff] }
  0x1d   : > { %v368_v11 = vmax.f32 %v336_v63, 0.0  ;;  %v302_v13 = vmul.f32 %v1119_v6, %v263_v61  ;;  %v369_v17 = vmax.f32 %v337_v5, 0.0  ;;  %v303_v19 = vmul.f32 %v1119_v6, %v264_v2 }
  0x1e   : > { %v390_v16 = vpack.c.bf16 %v367_v4, %v366_v62  ;;  %v370_v18 = vmax.f32 %v338_v7, 0.0  ;;  %v371_v22 = vmax.f32 %v339_v12, 0.0  ;;  %v340_v23 = vadd.f32 %v1126_v9, %v301_v1  ;;  %v271_v1 = vld [vmem:[%s1109_s30 + $0xf8] sm:$0xff] }
  0x1f   : > { %976 = vmatpush3.bf16.msra.mxu0 %v1041_v35  ;;  %1025 = vmatpush3.bf16.msra.mxu1 %v1041_v35  ;;  %v341_v24 = vadd.f32 %v1126_v9, %v302_v13  ;;  %v304_v25 = vmul.f32 %v1119_v6, %v265_v8  ;;  %v384_v26 = vpack.c.bf16 %v355_v53, %v354_v47  ;;  %v357_v27 = vmax.f32 %v1169_v43, 0.0 }
  0x20   : > { %977 = vmatprep.subr.bf16.mxu0 %v1042_v52  ;;  %1018 = vmatprep.subr.bf16.mxu1 %v1042_v52  ;;  %v391_v28 = vpack.c.bf16 %v369_v17, %v368_v11  ;;  %v342_v29 = vadd.f32 %v1126_v9, %v303_v19  ;;  %v289_v32 = vmul.f32 %v1119_v6, %v250_v14  ;;  %v358_v38 = vmax.f32 %v1197_v3, 0.0 }
  0x21   : > { %v290_v33 = vmul.f32 %v1119_v6, %v251_v15  ;;  %995 = vmatprep.mubr.bf16.mxu1 %v390_v16  ;;  %v392_v34 = vpack.c.bf16 %v371_v22, %v370_v18  ;;  %v343_v35 = vadd.f32 %v1126_v9, %v304_v25  ;;  %v359_v40 = vmax.f32 %v327_v10, 0.0 }
  0x22   : > { %v291_v41 = vmul.f32 %v1119_v6, %v252_v20  ;;  %v292_v42 = vmul.f32 %v1119_v6, %v253_v21  ;;  %v372_v43 = vmax.f32 %v340_v23, 0.0  ;;  %v373_v44 = vmax.f32 %v341_v24, 0.0 }
  0x23   : > { %978 = vmatpush3.bf16.msra.mxu0 %v1042_v52  ;;  %1026 = vmatpush3.bf16.msra.mxu1 %v1042_v52  ;;  %v305_v45 = vmul.f32 %v1119_v6, %v266_v30  ;;  %v306_v47 = vmul.f32 %v1119_v6, %v267_v31  ;;  %v374_v48 = vmax.f32 %v342_v29, 0.0  ;;  %v375_v49 = vmax.f32 %v343_v35, 0.0 }
  0x24   : > { %v307_v50 = vmul.f32 %v1119_v6, %v268_v36  ;;  %v308_v51 = vmul.f32 %v1119_v6, %v269_v37  ;;  %v328_v52 = vadd.f32 %v1126_v9, %v289_v32  ;;  %v329_v53 = vadd.f32 %v1126_v9, %v290_v33 }
  0x25   : > { %v330_v54 = vadd.f32 %v1126_v9, %v291_v41  ;;  %v331_v55 = vadd.f32 %v1126_v9, %v292_v42  ;;  %v393_v59 = vpack.c.bf16 %v373_v44, %v372_v43  ;;  %v344_v60 = vadd.f32 %v1126_v9, %v305_v45 }
  0x26   : > { %980 = vmatmul.mubr.bf16.vlgmr.msra.gmra.mrb[0].mxu0 %v1173_v46  ;;  %996 = vmatmul.mubr.bf16.vlgmr.msra.gmra.mrb[0].mxu1 %v391_v28  ;;  %v385_v46 = vpack.c.bf16 %v357_v27, %v356_v57  ;;  %v345_v61 = vadd.f32 %v1126_v9, %v306_v47  ;;  %v386_v62 = vpack.c.bf16 %v359_v40, %v358_v38  ;;  %v360_v2 = vmax.f32 %v328_v52, 0.0 }
  0x27   : > { %983 = vmatprep.mubr.bf16.mxu0 %v384_v26  ;;  %999 = vmatprep.mubr.bf16.mxu1 %v392_v34  ;;  %v394_v63 = vpack.c.bf16 %v375_v49, %v374_v48  ;;  %v346_v39 = vadd.f32 %v1126_v9, %v307_v50  ;;  %v347_v57 = vadd.f32 %v1126_v9, %v308_v51  ;;  %v361_v3 = vmax.f32 %v329_v53, 0.0 }
  0x28   : > { %v293_v4 = vmul.f32 %v1119_v6, %v254_v56  ;;  %v294_v5 = vmul.f32 %v1119_v6, %v255_v58  ;;  %v376_v7 = vmax.f32 %v344_v60, 0.0  ;;  %v377_v8 = vmax.f32 %v345_v61, 0.0 }
  0x29   : > { %v309_v10 = vmul.f32 %v1119_v6, %v270_v0  ;;  %v310_v11 = vmul.f32 %v1119_v6, %v271_v1  ;;  %v362_v12 = vmax.f32 %v330_v54, 0.0  ;;  %v363_v13 = vmax.f32 %v331_v55, 0.0 }
  0x2a   : > { %v378_v14 = vmax.f32 %v346_v39, 0.0  ;;  %v379_v15 = vmax.f32 %v347_v57, 0.0  ;;  %v387_v16 = vpack.c.bf16 %v361_v3, %v360_v2  ;;  %v332_v17 = vadd.f32 %v1126_v9, %v293_v4 }
  0x2b   : > { %v333_v18 = vadd.f32 %v1126_v9, %v294_v5  ;;  %v395_v19 = vpack.c.bf16 %v377_v8, %v376_v7  ;;  %v348_v20 = vadd.f32 %v1126_v9, %v309_v10  ;;  %v349_v21 = vadd.f32 %v1126_v9, %v310_v11 }
  0x2c   : > { %v388_v22 = vpack.c.bf16 %v363_v13, %v362_v12  ;;  %v396_v23 = vpack.c.bf16 %v379_v15, %v378_v14  ;;  %v364_v6 = vmax.f32 %v332_v17, 0.0 }
  0x2d   : > { %v365_v24 = vmax.f32 %v333_v18, 0.0  ;;  %v380_v25 = vmax.f32 %v348_v20, 0.0  ;;  %v381_v26 = vmax.f32 %v349_v21, 0.0 }
  0x2e   : > { %984 = vmatmul.mubr.bf16.gmra.mrb[4].mxu0 %v385_v46  ;;  %1000 = vmatmul.mubr.bf16.gmra.mrb[4].mxu1 %v393_v59 }
  0x2f   : > { %987 = vmatprep.mubr.bf16.mxu0 %v386_v62  ;;  %1003 = vmatprep.mubr.bf16.mxu1 %v394_v63  ;;  %v389_v27 = vpack.c.bf16 %v365_v24, %v364_v6  ;;  %v397_v28 = vpack.c.bf16 %v381_v26, %v380_v25 }
  0x36   : > { %988 = vmatmul.mubr.bf16.gmra.mrb[8].mxu0 %v387_v16  ;;  %1004 = vmatmul.mubr.bf16.gmra.mrb[8].mxu1 %v395_v19 }
  0x37   : > { %991 = vmatprep.mubr.bf16.mxu0 %v388_v22  ;;  %1007 = vmatprep.mubr.bf16.mxu1 %v396_v23 }
  0x3e   : > { %992 = vmatmul.mubr.bf16.gmra.mrb[12].mxu0 %v389_v27  ;;  %1008 = vmatmul.mubr.bf16.gmra.mrb[12].mxu1 %v397_v28 }
  0xf9   : > { %v981_v9 = vpop.f32.mrb[0].mxu0  ;;  %v1259_v29 = vpop.f32.mrb[0].mxu1 }
  0xfa   : > { %626 = vst.msk [vmem:[%s1257_s25 + $0x10] sm:$0xff] %vm623_vm0, %v981_v9  ;;  %v496_v30 = vpop.f32.mrb[1].mxu0  ;;  %642 = vst.msk [vmem:[%s1257_s25 + $0x90] sm:$0xff] %vm623_vm0, %v1259_v29  ;;  %v1266_v31 = vpop.f32.mrb[1].mxu1  ;;  %v727_v37 = vmul.f32 %v981_v9, %v981_v9  ;;  %v659_v43 = vsel %vm623_vm0, %v981_v9, 0.0 }
  0xfb   : > { %624 = vst.msk [vmem:[%s1257_s25] sm:$0xff] %vm623_vm0, %v496_v30  ;;  %v725_v32 = vmul.f32 %v496_v30, %v496_v30  ;;  %v982_v33 = vpop.f32.mrb[2].mxu0  ;;  %640 = vst.msk [vmem:[%s1257_s25 + $0x80] sm:$0xff] %vm623_vm0, %v1266_v31  ;;  %v1273_v34 = vpop.f32.mrb[2].mxu1  ;;  %v656_v38 = vsel %vm623_vm0, %v496_v30, 0.0 }
  0xfc   : > { %627 = vst.msk [vmem:[%s1257_s25 + $0x18] sm:$0xff] %vm623_vm0, %v982_v33  ;;  %v499_v35 = vpop.f32.mrb[3].mxu0  ;;  %643 = vst.msk [vmem:[%s1257_s25 + $0x98] sm:$0xff] %vm623_vm0, %v1273_v34  ;;  %v1280_v36 = vpop.f32.mrb[3].mxu1  ;;  %v728_v45 = vmul.f32 %v982_v33, %v982_v33  ;;  %v760_v50 = vsel %vm623_vm0, %v727_v37, 0.0  ;;  %v661_v51 = vsel %vm623_vm0, %v982_v33, 0.0 }
  0xfd   : > { %625 = vst.msk [vmem:[%s1257_s25 + $0x8] sm:$0xff] %vm623_vm0, %v499_v35  ;;  %v657_v40 = vsel %vm623_vm0, %v499_v35, 0.0  ;;  %v726_v41 = vmul.f32 %v499_v35, %v499_v35  ;;  %641 = vst.msk [vmem:[%s1257_s25 + $0x88] sm:$0xff] %vm623_vm0, %v1280_v36  ;;  %v757_v44 = vsel %vm623_vm0, %v725_v32, 0.0 }
  0xfe   : > { %v658_v42 = vadd.f32 %v657_v40, %v656_v38  ;;  %v762_v58 = vsel %vm623_vm0, %v728_v45, 0.0 }
  0xff   : > { %v758_v47 = vsel %vm623_vm0, %v726_v41, 0.0 }
 0x100   : > { %v660_v48 = vadd.f32 %v659_v43, %v658_v42  ;;  %v759_v49 = vadd.f32 %v758_v47, %v757_v44 }
 0x101   : > { %v985_v46 = vpop.f32.mrb[4].mxu0  ;;  %v1294_v52 = vpop.f32.mrb[4].mxu1 }
 0x102   : > { %v761_v53 = vadd.f32 %v760_v50, %v759_v49  ;;  %630 = vst.msk [vmem:[%s1257_s25 + $0x30] sm:$0xff] %vm623_vm0, %v985_v46  ;;  %v512_v54 = vpop.f32.mrb[5].mxu0  ;;  %v662_v55 = vadd.f32 %v661_v51, %v660_v48  ;;  %646 = vst.msk [vmem:[%s1257_s25 + $0xb0] sm:$0xff] %vm623_vm0, %v1294_v52  ;;  %v1301_v56 = vpop.f32.mrb[5].mxu1  ;;  %v731_v1 = vmul.f32 %v985_v46, %v985_v46  ;;  %v667_v8 = vsel %vm623_vm0, %v985_v46, 0.0 }
 0x103   : > { %628 = vst.msk [vmem:[%s1257_s25 + $0x20] sm:$0xff] %vm623_vm0, %v512_v54  ;;  %v663_v59 = vsel %vm623_vm0, %v512_v54, 0.0  ;;  %v729_v60 = vmul.f32 %v512_v54, %v512_v54  ;;  %v986_v61 = vpop.f32.mrb[6].mxu0  ;;  %644 = vst.msk [vmem:[%s1257_s25 + $0xa0] sm:$0xff] %vm623_vm0, %v1301_v56  ;;  %v1310_v62 = vpop.f32.mrb[6].mxu1 }
 0x104   : > { %v664_v63 = vadd.f32 %v663_v59, %v662_v55  ;;  %v763_v39 = vadd.f32 %v762_v58, %v761_v53  ;;  %631 = vst.msk [vmem:[%s1257_s25 + $0x38] sm:$0xff] %vm623_vm0, %v986_v61  ;;  %v515_v57 = vpop.f32.mrb[7].mxu0  ;;  %647 = vst.msk [vmem:[%s1257_s25 + $0xb8] sm:$0xff] %vm623_vm0, %v1310_v62  ;;  %v1317_v0 = vpop.f32.mrb[7].mxu1  ;;  %v732_v10 = vmul.f32 %v986_v61, %v986_v61  ;;  %v768_v14 = vsel %vm623_vm0, %v731_v1, 0.0 }
 0x105   : > { %v764_v2 = vsel %vm623_vm0, %v729_v60, 0.0  ;;  %629 = vst.msk [vmem:[%s1257_s25 + $0x28] sm:$0xff] %vm623_vm0, %v515_v57  ;;  %v665_v3 = vsel %vm623_vm0, %v515_v57, 0.0  ;;  %v730_v4 = vmul.f32 %v515_v57, %v515_v57  ;;  %645 = vst.msk [vmem:[%s1257_s25 + $0xa8] sm:$0xff] %vm623_vm0, %v1317_v0  ;;  %v669_v15 = vsel %vm623_vm0, %v986_v61, 0.0 }
 0x106   : > { %v765_v5 = vadd.f32 %v764_v2, %v763_v39  ;;  %v666_v7 = vadd.f32 %v665_v3, %v664_v63  ;;  %v770_v22 = vsel %vm623_vm0, %v732_v10, 0.0 }
 0x107   : > { %v766_v11 = vsel %vm623_vm0, %v730_v4, 0.0 }
 0x108   : > { %v668_v12 = vadd.f32 %v667_v8, %v666_v7  ;;  %v767_v13 = vadd.f32 %v766_v11, %v765_v5 }
 0x109   : > { %v989_v16 = vpop.f32.mrb[8].mxu0  ;;  %v1330_v17 = vpop.f32.mrb[8].mxu1 }
 0x10a   : > { %v769_v18 = vadd.f32 %v768_v14, %v767_v13  ;;  %634 = vst.msk [vmem:[%s1257_s25 + $0x50] sm:$0xff] %vm623_vm0, %v989_v16  ;;  %v528_v19 = vpop.f32.mrb[9].mxu0  ;;  %v670_v20 = vadd.f32 %v669_v15, %v668_v12  ;;  %650 = vst.msk [vmem:[%s1257_s25 + $0xd0] sm:$0xff] %vm623_vm0, %v1330_v17  ;;  %v1337_v21 = vpop.f32.mrb[9].mxu1  ;;  %v735_v30 = vmul.f32 %v989_v16, %v989_v16  ;;  %v675_v40 = vsel %vm623_vm0, %v989_v16, 0.0 }
 0x10b   : > { %632 = vst.msk [vmem:[%s1257_s25 + $0x40] sm:$0xff] %vm623_vm0, %v528_v19  ;;  %v671_v23 = vsel %vm623_vm0, %v528_v19, 0.0  ;;  %v733_v6 = vmul.f32 %v528_v19, %v528_v19  ;;  %v990_v24 = vpop.f32.mrb[10].mxu0  ;;  %648 = vst.msk [vmem:[%s1257_s25 + $0xc0] sm:$0xff] %vm623_vm0, %v1337_v21  ;;  %v1346_v25 = vpop.f32.mrb[10].mxu1  ;;  %v741_v12 = vmul.f32 %v1266_v31, %v1266_v31  ;;  %v687_v19 = vsel %vm623_vm0, %v1266_v31, 0.0 }
 0x10c   : > { %v672_v26 = vadd.f32 %v671_v23, %v670_v20  ;;  %v771_v27 = vadd.f32 %v770_v22, %v769_v18  ;;  %635 = vst.msk [vmem:[%s1257_s25 + $0x58] sm:$0xff] %vm623_vm0, %v990_v24  ;;  %v531_v28 = vpop.f32.mrb[11].mxu0  ;;  %651 = vst.msk [vmem:[%s1257_s25 + $0xd8] sm:$0xff] %vm623_vm0, %v1346_v25  ;;  %v1353_v9 = vpop.f32.mrb[11].mxu1  ;;  %v736_v41 = vmul.f32 %v990_v24, %v990_v24  ;;  %v776_v45 = vsel %vm623_vm0, %v735_v30, 0.0 }
 0x10d   : > { %v772_v32 = vsel %vm623_vm0, %v733_v6, 0.0  ;;  %633 = vst.msk [vmem:[%s1257_s25 + $0x48] sm:$0xff] %vm623_vm0, %v531_v28  ;;  %v673_v33 = vsel %vm623_vm0, %v531_v28, 0.0  ;;  %v734_v35 = vmul.f32 %v531_v28, %v531_v28  ;;  %649 = vst.msk [vmem:[%s1257_s25 + $0xc8] sm:$0xff] %vm623_vm0, %v1353_v9  ;;  %v677_v47 = vsel %vm623_vm0, %v990_v24, 0.0 }
 0x10e   : > { %v773_v37 = vadd.f32 %v772_v32, %v771_v27  ;;  %v674_v38 = vadd.f32 %v673_v33, %v672_v26  ;;  %v778_v54 = vsel %vm623_vm0, %v736_v41, 0.0  ;;  %v788_v24 = vsel %vm623_vm0, %v741_v12, 0.0 }
 0x10f   : > { %v774_v42 = vsel %vm623_vm0, %v734_v35, 0.0  ;;  %v742_v26 = vmul.f32 %v1280_v36, %v1280_v36  ;;  %v743_v32 = vmul.f32 %v1259_v29, %v1259_v29  ;;  %v689_v31 = vsel %vm623_vm0, %v1280_v36, 0.0 }
 0x110   : > { %v676_v43 = vadd.f32 %v675_v40, %v674_v38  ;;  %v775_v44 = vadd.f32 %v774_v42, %v773_v37  ;;  %v691_v37 = vsel %vm623_vm0, %v1259_v29, 0.0  ;;  %v744_v38 = vmul.f32 %v1273_v34, %v1273_v34 }
 0x111   : > { %v993_v48 = vpop.f32.mrb[12].mxu0  ;;  %v1366_v49 = vpop.f32.mrb[12].mxu1  ;;  %v790_v40 = vsel %vm623_vm0, %v742_v26, 0.0  ;;  %v745_v41 = vmul.f32 %v1301_v56, %v1301_v56  ;;  %v693_v36 = vsel %vm623_vm0, %v1273_v34, 0.0  ;;  %v697_v34 = vsel %vm623_vm0, %v1317_v0, 0.0 }
 0x112   : > { %v777_v50 = vadd.f32 %v776_v45, %v775_v44  ;;  %638 = vst.msk [vmem:[%s1257_s25 + $0x70] sm:$0xff] %vm623_vm0, %v993_v48  ;;  %v544_v51 = vpop.f32.mrb[13].mxu0  ;;  %v678_v46 = vadd.f32 %v677_v47, %v676_v43  ;;  %654 = vst.msk [vmem:[%s1257_s25 + $0xf0] sm:$0xff] %vm623_vm0, %v1366_v49  ;;  %v1373_v53 = vpop.f32.mrb[13].mxu1  ;;  %v739_v1 = vmul.f32 %v993_v48, %v993_v48  ;;  %v683_v8 = vsel %vm623_vm0, %v993_v48, 0.0 }
 0x113   : > { %636 = vst.msk [vmem:[%s1257_s25 + $0x60] sm:$0xff] %vm623_vm0, %v544_v51  ;;  %v679_v55 = vsel %vm623_vm0, %v544_v51, 0.0  ;;  %v737_v58 = vmul.f32 %v544_v51, %v544_v51  ;;  %v994_v59 = vpop.f32.mrb[14].mxu0  ;;  %652 = vst.msk [vmem:[%s1257_s25 + $0xe0] sm:$0xff] %vm623_vm0, %v1373_v53  ;;  %v1010_v60 = vpop.f32.mrb[14].mxu1  ;;  %v792_v44 = vsel %vm623_vm0, %v743_v32, 0.0  ;;  %v746_v51 = vmul.f32 %v1317_v0, %v1317_v0 }
 0x114   : > { %v680_v61 = vadd.f32 %v679_v55, %v678_v46  ;;  %v779_v63 = vadd.f32 %v778_v54, %v777_v50  ;;  %639 = vst.msk [vmem:[%s1257_s25 + $0x78] sm:$0xff] %vm623_vm0, %v994_v59  ;;  %v547_v39 = vpop.f32.mrb[15].mxu0  ;;  %655 = vst.msk [vmem:[%s1257_s25 + $0xf8] sm:$0xff] %vm623_vm0, %v1010_v60  ;;  %v1386_v57 = vpop.f32.mrb[15].mxu1  ;;  %v740_v10 = vmul.f32 %v994_v59, %v994_v59  ;;  %v1400_v15 = vsel %vm623_vm0, %v1010_v60, 0.0 }
 0x115   : > { %v780_v2 = vsel %vm623_vm0, %v737_v58, 0.0  ;;  %637 = vst.msk [vmem:[%s1257_s25 + $0x68] sm:$0xff] %vm623_vm0, %v547_v39  ;;  %v681_v3 = vsel %vm623_vm0, %v547_v39, 0.0  ;;  %v738_v4 = vmul.f32 %v547_v39, %v547_v39  ;;  %653 = vst.msk [vmem:[%s1257_s25 + $0xe8] sm:$0xff] %vm623_vm0, %v1386_v57  ;;  %v784_v16 = vsel %vm623_vm0, %v739_v1, 0.0 }
 0x116   : > { %v781_v5 = vadd.f32 %v780_v2, %v779_v63  ;;  %v682_v7 = vadd.f32 %v681_v3, %v680_v61  ;;  %v685_v18 = vsel %vm623_vm0, %v994_v59, 0.0  ;;  %v756_v20 = vmul.f32 %v1010_v60, %v1010_v60 }
 0x117   : > { %v782_v11 = vsel %vm623_vm0, %v738_v4, 0.0  ;;  %v786_v6 = vsel %vm623_vm0, %v740_v10, 0.0  ;;  %v695_v45 = vsel %vm623_vm0, %v1301_v56, 0.0  ;;  %v794_v48 = vsel %vm623_vm0, %v744_v38, 0.0 }
 0x118   : > { %v684_v13 = vadd.f32 %v683_v8, %v682_v7  ;;  %v783_v14 = vadd.f32 %v782_v11, %v781_v5  ;;  %v1411_v27 = vsel %vm623_vm0, %v756_v20, 0.0  ;;  %v796_v50 = vsel %vm623_vm0, %v745_v41, 0.0 }
 0x119   : > { %v747_v55 = vmul.f32 %v1294_v52, %v1294_v52  ;;  %v699_v56 = vsel %vm623_vm0, %v1294_v52, 0.0  ;;  %v748_v60 = vmul.f32 %v1310_v62, %v1310_v62  ;;  %v798_v61 = vsel %vm623_vm0, %v746_v51, 0.0 }
 0x11a   : > { %v785_v22 = vadd.f32 %v784_v16, %v783_v14  ;;  %v686_v23 = vadd.f32 %v685_v18, %v684_v13  ;;  %v749_v63 = vmul.f32 %v1337_v21, %v1337_v21  ;;  %v701_v0 = vsel %vm623_vm0, %v1310_v62, 0.0 }
 0x11b   : > { %v800_v2 = vsel %vm623_vm0, %v747_v55, 0.0  ;;  %v703_v3 = vsel %vm623_vm0, %v1337_v21, 0.0  ;;  %v802_v5 = vsel %vm623_vm0, %v748_v60, 0.0  ;;  %v750_v8 = vmul.f32 %v1353_v9, %v1353_v9 }
 0x11c   : > { %v688_v28 = vadd.f32 %v687_v19, %v686_v23  ;;  %v787_v30 = vadd.f32 %v786_v6, %v785_v22  ;;  %v804_v7 = vsel %vm623_vm0, %v749_v63, 0.0  ;;  %v751_v12 = vmul.f32 %v1330_v17, %v1330_v17 }
 0x11d   : > { %v705_v62 = vsel %vm623_vm0, %v1353_v9, 0.0  ;;  %v707_v21 = vsel %vm623_vm0, %v1330_v17, 0.0  ;;  %v752_v16 = vmul.f32 %v1346_v25, %v1346_v25  ;;  %v806_v18 = vsel %vm623_vm0, %v750_v8, 0.0 }
 0x11e   : > { %v789_v33 = vadd.f32 %v788_v24, %v787_v30  ;;  %v690_v35 = vadd.f32 %v689_v31, %v688_v28  ;;  %v753_v19 = vmul.f32 %v1373_v53, %v1373_v53  ;;  %v808_v23 = vsel %vm623_vm0, %v751_v12, 0.0 }
 0x11f   : > { %v709_v9 = vsel %vm623_vm0, %v1346_v25, 0.0  ;;  %v711_v6 = vsel %vm623_vm0, %v1373_v53, 0.0  ;;  %v810_v26 = vsel %vm623_vm0, %v752_v16, 0.0  ;;  %v754_v30 = vmul.f32 %v1386_v57, %v1386_v57 }
 0x120   : > { %v692_v42 = vadd.f32 %v691_v37, %v690_v35  ;;  %v791_v43 = vadd.f32 %v790_v40, %v789_v33  ;;  %v812_v28 = vsel %vm623_vm0, %v753_v19, 0.0  ;;  %v755_v33 = vmul.f32 %v1366_v49, %v1366_v49 }
 0x121   : > { %v713_v25 = vsel %vm623_vm0, %v1386_v57, 0.0  ;;  %v715_v37 = vsel %vm623_vm0, %v1366_v49, 0.0  ;;  %v814_v38 = vsel %vm623_vm0, %v754_v30, 0.0 }
 0x122   : > { %v793_v47 = vadd.f32 %v792_v44, %v791_v43  ;;  %v694_v29 = vadd.f32 %v693_v36, %v692_v42  ;;  %v816_v42 = vsel %vm623_vm0, %v755_v33, 0.0 }
 0x124   : > { %v696_v46 = vadd.f32 %v695_v45, %v694_v29  ;;  %v795_v54 = vadd.f32 %v794_v48, %v793_v47 }
 0x126   : > { %v797_v58 = vadd.f32 %v796_v50, %v795_v54  ;;  %v698_v59 = vadd.f32 %v697_v34, %v696_v46 }
 0x128   : > { %v700_v39 = vadd.f32 %v699_v56, %v698_v59  ;;  %v799_v1 = vadd.f32 %v798_v61, %v797_v58 }
 0x12a   : > { %v801_v4 = vadd.f32 %v800_v2, %v799_v1  ;;  %v702_v52 = vadd.f32 %v701_v0, %v700_v39 }
 0x12c   : > { %v704_v10 = vadd.f32 %v703_v3, %v702_v52  ;;  %v803_v11 = vadd.f32 %v802_v5, %v801_v4 }
 0x12e   : > { %v805_v13 = vadd.f32 %v804_v7, %v803_v11  ;;  %v706_v14 = vadd.f32 %v705_v62, %v704_v10 }
 0x130   : > { %v708_v20 = vadd.f32 %v707_v21, %v706_v14  ;;  %v807_v22 = vadd.f32 %v806_v18, %v805_v13 }
 0x132   : > { %v809_v24 = vadd.f32 %v808_v23, %v807_v22  ;;  %v710_v17 = vadd.f32 %v709_v9, %v708_v20 }
 0x134   : > { %v712_v32 = vadd.f32 %v711_v6, %v710_v17  ;;  %v811_v31 = vadd.f32 %v810_v26, %v809_v24 }
 0x136   : > { %v813_v35 = vadd.f32 %v812_v28, %v811_v31  ;;  %v714_v53 = vadd.f32 %v713_v25, %v712_v32 }
 0x138   : > { %v716_v40 = vadd.f32 %v715_v37, %v714_v53  ;;  %v815_v41 = vadd.f32 %v814_v38, %v813_v35 }
 0x13a   : > { %v718_v43 = vadd.f32 %v1400_v15, %v716_v40  ;;  %v817_v44 = vadd.f32 %v816_v42, %v815_v41 }
 0x13c   : > { %v719_v36 = vrot.slane %v718_v43, 4  ;;  %v819_v45 = vadd.f32 %v1411_v27, %v817_v44 }
 0x13e   : > { %v720_v57 = vadd.f32 %v719_v36, %v718_v43  ;;  %v820_v47 = vrot.slane %v819_v45, 4 }
 0x140   : > { %v721_v29 = vrot.slane %v720_v57, 2  ;;  %v821_v48 = vadd.f32 %v820_v47, %v819_v45 }
 0x142   : > { %v722_v50 = vadd.f32 %v721_v29, %v720_v57  ;;  %v822_v49 = vrot.slane %v821_v48, 2 }
 0x144   : > { %v723_v51 = vrot.slane %v722_v50, 1  ;;  %v823_v46 = vadd.f32 %v822_v49, %v821_v48 }
 0x146   : > { %v824_v54 = vrot.slane %v823_v46, 1  ;;  %v724_v15 = vadd.f32 %v723_v51, %v722_v50 }
 0x148   : > { %v825_v55 = vadd.f32 %v824_v54, %v823_v46 }
 0x14a   : > { %v827_v27 = vsel %vm826_vm1, %v724_v15, %v825_v55 }
 0x14b   : > { %829 = vst.msk [vmem:[%s238_s28] sm:$0x3] %vm828_vm2, %v827_v27 }
 0x14c PF: > { %s16_s18 = sadd.s32 1, %s1049_s18  }
 0x14d   : > { %p13_p5 = scmp.ge.s32.totalorder %s16_s18, 4  }
 0x14f   :  { %15 = sbr.rel (!%p13_p5) target bundleno = 1 (0x1), region = 78 }

// kernel: bottleneck_forward.7
= control target key start
LH: loop header
LB: loop body
LE: loop exit
PB: predicated region body
PF: predicated region fallthrough
CT: control target
= control target key end

     0   :  { %9 = vsyncpa [#allocation3], 0  ;;  %s1019_s0 = inlined_call_operand.vmem [shape: f32[512,64], index: 0, kind: input, shape index: {}]   ;;  %s1020_s1 = inlined_call_operand.vmem [shape: f32[512,64], index: 1, kind: input, shape index: {}]   ;;  %s1021_s2 = inlined_call_operand.vmem [shape: f32[1,64], index: 2, kind: input, shape index: {}]   ;;  %s1022_s3 = inlined_call_operand.vmem [shape: f32[1,64], index: 3, kind: input, shape index: {}]   ;;  %s1023_s4 = inlined_call_operand.hbm [shape: f32[512,64], index: 4, kind: output, shape index: {}]  }
   0x1   :  { %11 = vsyncpa [#allocation3 + $0x1], 0  ;;  %s698_s15 = smov 0   ;;  %s700_s16 = smov 0  }
   0x2   :  { %s702_s17 = smov 0   ;;  %s704_s18 = smov 0  }
   0x3 LB: > { %s719_s19 = sadd.s32 4294967295, %s668_s18   ;;  %s548_s20 = sadd.s32 4294967294, %s668_s18   ;;  %s668_s18 = sphi %s704_s18, %s1029_s18   ;;  %s664_s17 = sphi %s702_s17, %s1028_s17   ;;  %s660_s16 = sphi %s700_s16, %s1027_s16   ;;  %s656_s15 = sphi %s698_s15, %s1026_s15  }
   0x4   : > { %s723_s21 = sadd.s32 1, %s668_s18   ;;  %s118_s22 = sadd.s32 1, %s664_s17 }
   0x5   : > { %s115_s23 = ssub.s32 %s668_s18, %s723_s21  ;;  %p128_p0 = scmp.ne.s32.totalorder %s664_s17, %s660_s16 }
   0x6   : > { %p116_p1 = scmp.eq.s32.totalorder %s115_s23, 0  ;;  %p129_p2 = scmp.eq.s32.totalorder %s719_s19, 1 }
   0x7   : > { %p134_p3 = scmp.ne.s32.totalorder %s660_s16, %s656_s15  ;;  %p135_p4 = scmp.eq.s32.totalorder %s548_s20, 1 }
   0x8   : > { %s734_s24 = scalar_select %p116_p1, %s664_s17, %s118_s22  }
   0x9   : > { %p736_p5 = por %p129_p2, %p128_p0  ;;  %p740_p6 = por %p135_p4, %p134_p3 }
   0xa   : > { %p551_p7 = scmp.ge.s32.totalorder %s668_s18, 1  ;;  %p177_p8 = scmp.lt.s32.totalorder %s668_s18, 3 }
   0xc   : > { %p178_p9 = pnand %p551_p7, %p177_p8 }
   0xd   : > { %s553_s27 = sshll.u32 (!%p178_p9), %s719_s19, 5  ;;  %v750_v0 = vld [vmem:[%s1021_s2] ss:$0 sm:$0xff] (!%p178_p9)  ;;  %s205_s11 = sand.u32 (!%p178_p9), 1, %s660_s16   ;;  %vm427_vm0 = vcmask (!%p178_p9), 523264  }
   0xe   : > { %181 = sbr.rel (%p178_p9) target bundleno = 77 (0x4d), region = 36  ;;  %p209_p10 = scmp.lt.s32.totalorder (!%p178_p9), %s553_s27, 63  ;;  %v767_v2 = vld [vmem:[%s1022_s3] ss:$0 sm:$0xff] (!%p178_p9) }
   0xf   : > { %s780_s14 = sshll.u32 (!%p178_p9), %s205_s11, 8  ;;  %s564_s22 = sshll.u32 (!%p178_p9), %s719_s19, 12 }
  0x10   : > { %s810_s20 = scalar_lea.vmem (!%p178_p9), [#allocation2], %s780_s14  ;;  %s978_s29 = scalar_lea.sflag (!%p178_p9), [#allocation3], %s205_s11 }
  0x11   : > { %s474_s23 = sshll.u32 (!%p178_p9), %s810_s20, 4  ;;  %s670_s5 = smov (!%p178_p9), [#allocation2]   ;;  %s968_s23 = int_to_ptr.vmem [resolvable:$true] %s474_s23 }
  0x12   : > { %s606_s30 = scalar_lea.vmem (!%p178_p9), %s968_s23, 4096  ;;  %s610_s6 = sshll.u32 (!%p178_p9), %s670_s5, 4  ;;  %s611_s6 = int_to_ptr.vmem [resolvable:$false] %s610_s6 }
  0x13   : > { %p607_p11 = scmp.ne.s32.totalorder (!%p178_p9), %s968_s23, %s606_s30  ;;  %p613_p0 = scmp.lt.s32.totalorder (!%p178_p9), %s968_s23, %s611_s6 }
  0x15   : > { %s1031_s27 = smov (!%p209_p10, %s553_s27), 63  ;;  %p608_p12 = pnand %p607_p11, %p736_p5 }
  0x16   : > { %s554_s28 = sshll.u32 %s1031_s27, 3 }
  0x17   : > { %s755_s7 = scalar_lea.vmem %s1019_s0, %s554_s28  ;;  %s760_s10 = scalar_lea.vmem %s1020_s1, %s554_s28 }
  0x18   : > { %v221_v1 = vld [vmem:[%s755_s7] sm:$0xff]  ;;  %v222_v3 = vld [vmem:[%s755_s7 + $0x8] sm:$0xff]  ;;  %v223_v7 = vld [vmem:[%s755_s7 + $0x10] sm:$0xff]  ;;  %s966_s28 = scalar_lea.hbm %s1023_s4, %s564_s22  ;;  %p609_p13 = pneg %p608_p12 }
  0x19   : > { %v260_v4 = vmul.f32 %v750_v0, %v221_v1  ;;  %v331_v5 = vld [vmem:[%s760_s10] sm:$0xff]  ;;  %v261_v6 = vmul.f32 %v750_v0, %v222_v3  ;;  %v332_v8 = vld [vmem:[%s760_s10 + $0x8] sm:$0xff]  ;;  %v262_v9 = vmul.f32 %v750_v0, %v223_v7  ;;  %v224_v10 = vld [vmem:[%s755_s7 + $0x18] sm:$0xff] }
  0x1a   : > { %v225_v11 = vld [vmem:[%s755_s7 + $0x20] sm:$0xff]  ;;  %v333_v14 = vld [vmem:[%s760_s10 + $0x10] sm:$0xff]  ;;  %v263_v15 = vmul.f32 %v750_v0, %v224_v10  ;;  %v334_v16 = vld [vmem:[%s760_s10 + $0x18] sm:$0xff] }
  0x1b   : > { %v299_v12 = vadd.f32 %v767_v2, %v260_v4  ;;  %v300_v13 = vadd.f32 %v767_v2, %v261_v6  ;;  %v264_v17 = vmul.f32 %v750_v0, %v225_v11  ;;  %v226_v18 = vld [vmem:[%s755_s7 + $0x28] sm:$0xff]  ;;  %v301_v19 = vadd.f32 %v767_v2, %v262_v9  ;;  %v335_v20 = vld [vmem:[%s760_s10 + $0x20] sm:$0xff]  ;;  %v227_v22 = vld [vmem:[%s755_s7 + $0x30] sm:$0xff] }
  0x1c   : > { %v265_v21 = vmul.f32 %v750_v0, %v226_v18  ;;  %v228_v23 = vld [vmem:[%s755_s7 + $0x38] sm:$0xff]  ;;  %v302_v26 = vadd.f32 %v767_v2, %v263_v15  ;;  %v336_v28 = vld [vmem:[%s760_s10 + $0x28] sm:$0xff]  ;;  %v266_v31 = vmul.f32 %v750_v0, %v227_v22  ;;  %v229_v33 = vld [vmem:[%s755_s7 + $0x40] sm:$0xff] }
  0x1d   : > { %v363_v24 = vadd.f32 %v331_v5, %v299_v12  ;;  %v364_v25 = vadd.f32 %v332_v8, %v300_v13  ;;  %v303_v27 = vadd.f32 %v767_v2, %v264_v17  ;;  %v365_v29 = vadd.f32 %v333_v14, %v301_v19  ;;  %v230_v34 = vld [vmem:[%s755_s7 + $0x48] sm:$0xff]  ;;  %v337_v39 = vld [vmem:[%s760_s10 + $0x30] sm:$0xff]  ;;  %v338_v40 = vld [vmem:[%s760_s10 + $0x38] sm:$0xff] }
  0x1e   : > { %v304_v30 = vadd.f32 %v767_v2, %v265_v21  ;;  %v267_v32 = vmul.f32 %v750_v0, %v228_v23  ;;  %v366_v37 = vadd.f32 %v334_v16, %v302_v26  ;;  %v231_v41 = vld [vmem:[%s755_s7 + $0x50] sm:$0xff]  ;;  %v305_v44 = vadd.f32 %v767_v2, %v266_v31  ;;  %v232_v46 = vld [vmem:[%s755_s7 + $0x58] sm:$0xff]  ;;  %v233_v47 = vld [vmem:[%s755_s7 + $0x60] sm:$0xff] }
  0x1f   : > { %v395_v35 = vmax.f32 %v363_v24, 0.0  ;;  %v396_v36 = vmax.f32 %v364_v25, 0.0  ;;  %v367_v38 = vadd.f32 %v335_v20, %v303_v27  ;;  %v397_v42 = vmax.f32 %v365_v29, 0.0  ;;  %v234_v52 = vld [vmem:[%s755_s7 + $0x68] sm:$0xff]  ;;  %v339_v56 = vld [vmem:[%s760_s10 + $0x40] sm:$0xff]  ;;  %v341_v61 = vld [vmem:[%s760_s10 + $0x50] sm:$0xff] }
  0x20   : > { %v368_v43 = vadd.f32 %v336_v28, %v304_v30  ;;  %v306_v45 = vadd.f32 %v767_v2, %v267_v32  ;;  %v398_v48 = vmax.f32 %v366_v37, 0.0  ;;  %v268_v50 = vmul.f32 %v750_v0, %v229_v33  ;;  %v340_v57 = vld [vmem:[%s760_s10 + $0x48] sm:$0xff]  ;;  %v235_v1 = vld [vmem:[%s755_s7 + $0x70] sm:$0xff]  ;;  %v236_v3 = vld [vmem:[%s755_s7 + $0x78] sm:$0xff] }
  0x21   : > { %428 = vst.msk [vmem:[%s810_s20] sm:$0xff] %vm427_vm0, %v395_v35  ;;  %429 = vst.msk [vmem:[%s810_s20 + $0x8] sm:$0xff] %vm427_vm0, %v396_v36  ;;  %v399_v49 = vmax.f32 %v367_v38, 0.0  ;;  %v269_v51 = vmul.f32 %v750_v0, %v230_v34  ;;  %v369_v54 = vadd.f32 %v337_v39, %v305_v44  ;;  %v270_v58 = vmul.f32 %v750_v0, %v231_v41  ;;  %v342_v7 = vld [vmem:[%s760_s10 + $0x58] sm:$0xff]  ;;  %v343_v8 = vld [vmem:[%s760_s10 + $0x60] sm:$0xff] }
  0x22   : > { %430 = vst.msk [vmem:[%s810_s20 + $0x10] sm:$0xff] %vm427_vm0, %v397_v42  ;;  %v400_v53 = vmax.f32 %v368_v43, 0.0  ;;  %v370_v55 = vadd.f32 %v338_v40, %v306_v45  ;;  %431 = vst.msk [vmem:[%s810_s20 + $0x18] sm:$0xff] %vm427_vm0, %v398_v48  ;;  %v307_v59 = vadd.f32 %v767_v2, %v268_v50  ;;  %v271_v62 = vmul.f32 %v750_v0, %v232_v46  ;;  %v344_v14 = vld [vmem:[%s760_s10 + $0x68] sm:$0xff]  ;;  %v237_v19 = vld [vmem:[%s755_s7 + $0x80] sm:$0xff] }
  0x23   : > { %432 = vst.msk [vmem:[%s810_s20 + $0x20] sm:$0xff] %vm427_vm0, %v399_v49  ;;  %v308_v60 = vadd.f32 %v767_v2, %v269_v51  ;;  %v272_v63 = vmul.f32 %v750_v0, %v233_v47  ;;  %v401_v4 = vmax.f32 %v369_v54, 0.0  ;;  %v309_v6 = vadd.f32 %v767_v2, %v270_v58  ;;  %v238_v20 = vld [vmem:[%s755_s7 + $0x88] sm:$0xff]  ;;  %v345_v25 = vld [vmem:[%s760_s10 + $0x70] sm:$0xff]  ;;  %v346_v26 = vld [vmem:[%s760_s10 + $0x78] sm:$0xff] }
  0x24   : > { %433 = vst.msk [vmem:[%s810_s20 + $0x28] sm:$0xff] %vm427_vm0, %v400_v53  ;;  %v402_v5 = vmax.f32 %v370_v55, 0.0  ;;  %v273_v9 = vmul.f32 %v750_v0, %v234_v52  ;;  %v371_v10 = vadd.f32 %v339_v56, %v307_v59  ;;  %v310_v12 = vadd.f32 %v767_v2, %v271_v62  ;;  %v239_v27 = vld [vmem:[%s755_s7 + $0x90] sm:$0xff]  ;;  %v240_v32 = vld [vmem:[%s755_s7 + $0x98] sm:$0xff]  ;;  %v241_v33 = vld [vmem:[%s755_s7 + $0xa0] sm:$0xff] }
  0x25   : > { %v372_v11 = vadd.f32 %v340_v57, %v308_v60  ;;  %v311_v13 = vadd.f32 %v767_v2, %v272_v63  ;;  %434 = vst.msk [vmem:[%s810_s20 + $0x30] sm:$0xff] %vm427_vm0, %v401_v4  ;;  %v373_v15 = vadd.f32 %v341_v61, %v309_v6  ;;  %v274_v17 = vmul.f32 %v750_v0, %v235_v1  ;;  %v242_v38 = vld [vmem:[%s755_s7 + $0xa8] sm:$0xff]  ;;  %v347_v42 = vld [vmem:[%s760_s10 + $0x80] sm:$0xff]  ;;  %v349_v47 = vld [vmem:[%s760_s10 + $0x90] sm:$0xff] }
  0x26   : > { %435 = vst.msk [vmem:[%s810_s20 + $0x38] sm:$0xff] %vm427_vm0, %v402_v5  ;;  %v312_v16 = vadd.f32 %v767_v2, %v273_v9  ;;  %v275_v18 = vmul.f32 %v750_v0, %v236_v3  ;;  %v403_v21 = vmax.f32 %v371_v10, 0.0  ;;  %v374_v23 = vadd.f32 %v342_v7, %v310_v12  ;;  %v348_v43 = vld [vmem:[%s760_s10 + $0x88] sm:$0xff]  ;;  %v243_v50 = vld [vmem:[%s755_s7 + $0xb0] sm:$0xff]  ;;  %v244_v51 = vld [vmem:[%s755_s7 + $0xb8] sm:$0xff] }
  0x27   : > { %v404_v22 = vmax.f32 %v372_v11, 0.0  ;;  %v375_v24 = vadd.f32 %v343_v8, %v311_v13  ;;  %v405_v28 = vmax.f32 %v373_v15, 0.0  ;;  %v313_v30 = vadd.f32 %v767_v2, %v274_v17  ;;  %v350_v55 = vld [vmem:[%s760_s10 + $0x98] sm:$0xff]  ;;  %v351_v56 = vld [vmem:[%s760_s10 + $0xa0] sm:$0xff]  ;;  %v352_v62 = vld [vmem:[%s760_s10 + $0xa8] sm:$0xff] }
  0x28   : > { %v376_v29 = vadd.f32 %v344_v14, %v312_v16  ;;  %v314_v31 = vadd.f32 %v767_v2, %v275_v18  ;;  %436 = vst.msk [vmem:[%s810_s20 + $0x40] sm:$0xff] %vm427_vm0, %v403_v21  ;;  %v406_v34 = vmax.f32 %v374_v23, 0.0  ;;  %v276_v36 = vmul.f32 %v750_v0, %v237_v19  ;;  %v245_v5 = vld [vmem:[%s755_s7 + $0xc0] sm:$0xff]  ;;  %v246_v6 = vld [vmem:[%s755_s7 + $0xc8] sm:$0xff]  ;;  %v353_v11 = vld [vmem:[%s760_s10 + $0xb0] sm:$0xff] }
  0x29   : > { %437 = vst.msk [vmem:[%s810_s20 + $0x48] sm:$0xff] %vm427_vm0, %v404_v22  ;;  %v407_v35 = vmax.f32 %v375_v24, 0.0  ;;  %v277_v37 = vmul.f32 %v750_v0, %v238_v20  ;;  %438 = vst.msk [vmem:[%s810_s20 + $0x50] sm:$0xff] %vm427_vm0, %v405_v28  ;;  %v377_v40 = vadd.f32 %v345_v25, %v313_v30  ;;  %v278_v44 = vmul.f32 %v750_v0, %v239_v27  ;;  %v354_v12 = vld [vmem:[%s760_s10 + $0xb8] sm:$0xff]  ;;  %v247_v13 = vld [vmem:[%s755_s7 + $0xd0] sm:$0xff] }
  0x2a   : > { %v408_v39 = vmax.f32 %v376_v29, 0.0  ;;  %v378_v41 = vadd.f32 %v346_v26, %v314_v31  ;;  %439 = vst.msk [vmem:[%s810_s20 + $0x58] sm:$0xff] %vm427_vm0, %v406_v34  ;;  %v315_v45 = vadd.f32 %v767_v2, %v276_v36  ;;  %v279_v48 = vmul.f32 %v750_v0, %v240_v32  ;;  %v248_v18 = vld [vmem:[%s755_s7 + $0xd8] sm:$0xff]  ;;  %v249_v19 = vld [vmem:[%s755_s7 + $0xe0] sm:$0xff]  ;;  %v250_v24 = vld [vmem:[%s755_s7 + $0xe8] sm:$0xff] }
  0x2b   : > { %440 = vst.msk [vmem:[%s810_s20 + $0x60] sm:$0xff] %vm427_vm0, %v407_v35  ;;  %v316_v46 = vadd.f32 %v767_v2, %v277_v37  ;;  %v280_v49 = vmul.f32 %v750_v0, %v241_v33  ;;  %v409_v52 = vmax.f32 %v377_v40, 0.0  ;;  %v317_v54 = vadd.f32 %v767_v2, %v278_v44  ;;  %v355_v28 = vld [vmem:[%s760_s10 + $0xc0] sm:$0xff]  ;;  %v356_v29 = vld [vmem:[%s760_s10 + $0xc8] sm:$0xff]  ;;  %v357_v33 = vld [vmem:[%s760_s10 + $0xd0] sm:$0xff] }
  0x2c   : > { %441 = vst.msk [vmem:[%s810_s20 + $0x68] sm:$0xff] %vm427_vm0, %v408_v39  ;;  %v410_v53 = vmax.f32 %v378_v41, 0.0  ;;  %v281_v57 = vmul.f32 %v750_v0, %v242_v38  ;;  %v379_v58 = vadd.f32 %v347_v42, %v315_v45  ;;  %v318_v60 = vadd.f32 %v767_v2, %v279_v48  ;;  %v251_v36 = vld [vmem:[%s755_s7 + $0xf0] sm:$0xff]  ;;  %v252_v37 = vld [vmem:[%s755_s7 + $0xf8] sm:$0xff]  ;;  %v359_v42 = vld [vmem:[%s760_s10 + $0xe0] sm:$0xff]  ;;  %s612_s7 = scalar_lea.vmem %s611_s6, 8192 }
  0x2d   : > { %v380_v59 = vadd.f32 %v348_v43, %v316_v46  ;;  %v319_v61 = vadd.f32 %v767_v2, %v280_v49  ;;  %442 = vst.msk [vmem:[%s810_s20 + $0x70] sm:$0xff] %vm427_vm0, %v409_v52  ;;  %v381_v63 = vadd.f32 %v349_v47, %v317_v54  ;;  %v282_v3 = vmul.f32 %v750_v0, %v243_v50  ;;  %v358_v41 = vld [vmem:[%s760_s10 + $0xd8] sm:$0xff]  ;;  %v360_v48 = vld [vmem:[%s760_s10 + $0xe8] sm:$0xff]  ;;  %p614_p1 = scmp.lt.s32.totalorder %s612_s7, %s606_s30 }
  0x2e   : > { %443 = vst.msk [vmem:[%s810_s20 + $0x78] sm:$0xff] %vm427_vm0, %v410_v53  ;;  %v320_v1 = vadd.f32 %v767_v2, %v281_v57  ;;  %v283_v4 = vmul.f32 %v750_v0, %v244_v51  ;;  %v411_v7 = vmax.f32 %v379_v58, 0.0  ;;  %v382_v9 = vadd.f32 %v350_v55, %v318_v60  ;;  %v361_v57 = vld [vmem:[%s760_s10 + $0xf0] sm:$0xff]  ;;  %v362_v58 = vld [vmem:[%s760_s10 + $0xf8] sm:$0xff] }
  0x2f   : > { %v412_v8 = vmax.f32 %v380_v59, 0.0  ;;  %v383_v10 = vadd.f32 %v351_v56, %v319_v61  ;;  %v413_v14 = vmax.f32 %v381_v63, 0.0  ;;  %v321_v16 = vadd.f32 %v767_v2, %v282_v3  ;;  %p615_p2 = por %p614_p1, %p613_p0 }
  0x30   : > { %v384_v15 = vadd.f32 %v352_v62, %v320_v1  ;;  %v322_v17 = vadd.f32 %v767_v2, %v283_v4  ;;  %444 = vst.msk [vmem:[%s810_s20 + $0x80] sm:$0xff] %vm427_vm0, %v411_v7  ;;  %v414_v20 = vmax.f32 %v382_v9, 0.0  ;;  %v284_v22 = vmul.f32 %v750_v0, %v245_v5 }
  0x31   : > { %445 = vst.msk [vmem:[%s810_s20 + $0x88] sm:$0xff] %vm427_vm0, %v412_v8  ;;  %v415_v21 = vmax.f32 %v383_v10, 0.0  ;;  %v285_v23 = vmul.f32 %v750_v0, %v246_v6  ;;  %446 = vst.msk [vmem:[%s810_s20 + $0x90] sm:$0xff] %vm427_vm0, %v413_v14  ;;  %v385_v26 = vadd.f32 %v353_v11, %v321_v16  ;;  %v286_v30 = vmul.f32 %v750_v0, %v247_v13  ;;  %p616_p3 = pnand %p615_p2, %p609_p13 }
  0x32   : > { %v416_v25 = vmax.f32 %v384_v15, 0.0  ;;  %v386_v27 = vadd.f32 %v354_v12, %v322_v17  ;;  %447 = vst.msk [vmem:[%s810_s20 + $0x98] sm:$0xff] %vm427_vm0, %v414_v20  ;;  %v323_v31 = vadd.f32 %v767_v2, %v284_v22  ;;  %v287_v34 = vmul.f32 %v750_v0, %v248_v18 }
  0x33   : > { %448 = vst.msk [vmem:[%s810_s20 + $0xa0] sm:$0xff] %vm427_vm0, %v415_v21  ;;  %v324_v32 = vadd.f32 %v767_v2, %v285_v23  ;;  %v288_v35 = vmul.f32 %v750_v0, %v249_v19  ;;  %v417_v38 = vmax.f32 %v385_v26, 0.0  ;;  %v325_v40 = vadd.f32 %v767_v2, %v286_v30 }
  0x34   : > { %449 = vst.msk [vmem:[%s810_s20 + $0xa8] sm:$0xff] %vm427_vm0, %v416_v25  ;;  %v418_v39 = vmax.f32 %v386_v27, 0.0  ;;  %v289_v43 = vmul.f32 %v750_v0, %v250_v24  ;;  %v387_v44 = vadd.f32 %v355_v28, %v323_v31  ;;  %v326_v46 = vadd.f32 %v767_v2, %v287_v34 }
  0x35   : > { %v388_v45 = vadd.f32 %v356_v29, %v324_v32  ;;  %v327_v47 = vadd.f32 %v767_v2, %v288_v35  ;;  %450 = vst.msk [vmem:[%s810_s20 + $0xb0] sm:$0xff] %vm427_vm0, %v417_v38  ;;  %v389_v49 = vadd.f32 %v357_v33, %v325_v40  ;;  %v290_v51 = vmul.f32 %v750_v0, %v251_v36 }
  0x36   : > { %451 = vst.msk [vmem:[%s810_s20 + $0xb8] sm:$0xff] %vm427_vm0, %v418_v39  ;;  %v328_v50 = vadd.f32 %v767_v2, %v289_v43  ;;  %v291_v52 = vmul.f32 %v750_v0, %v252_v37  ;;  %v419_v53 = vmax.f32 %v387_v44, 0.0  ;;  %v390_v55 = vadd.f32 %v358_v41, %v326_v46 }
  0x37   : > { %v420_v54 = vmax.f32 %v388_v45, 0.0  ;;  %v391_v56 = vadd.f32 %v359_v42, %v327_v47  ;;  %v421_v59 = vmax.f32 %v389_v49, 0.0  ;;  %v329_v61 = vadd.f32 %v767_v2, %v290_v51 }
  0x38   : > { %v392_v60 = vadd.f32 %v360_v48, %v328_v50  ;;  %v330_v62 = vadd.f32 %v767_v2, %v291_v52  ;;  %452 = vst.msk [vmem:[%s810_s20 + $0xc0] sm:$0xff] %vm427_vm0, %v419_v53  ;;  %v422_v0 = vmax.f32 %v390_v55, 0.0 }
  0x39   : > { %453 = vst.msk [vmem:[%s810_s20 + $0xc8] sm:$0xff] %vm427_vm0, %v420_v54  ;;  %v423_v63 = vmax.f32 %v391_v56, 0.0  ;;  %454 = vst.msk [vmem:[%s810_s20 + $0xd0] sm:$0xff] %vm427_vm0, %v421_v59  ;;  %v393_v3 = vadd.f32 %v361_v57, %v329_v61 }
  0x3a   : > { %v424_v1 = vmax.f32 %v392_v60, 0.0  ;;  %v394_v4 = vadd.f32 %v362_v58, %v330_v62  ;;  %455 = vst.msk [vmem:[%s810_s20 + $0xd8] sm:$0xff] %vm427_vm0, %v422_v0 }
  0x3b   : > { %456 = vst.msk [vmem:[%s810_s20 + $0xe0] sm:$0xff] %vm427_vm0, %v423_v63  ;;  %v425_v2 = vmax.f32 %v393_v3, 0.0 }
  0x3c   : > { %457 = vst.msk [vmem:[%s810_s20 + $0xe8] sm:$0xff] %vm427_vm0, %v424_v1  ;;  %v426_v5 = vmax.f32 %v394_v4, 0.0 }
  0x3d   : > { %458 = vst.msk [vmem:[%s810_s20 + $0xf0] sm:$0xff] %vm427_vm0, %v425_v2 }
  0x3e   : > { %459 = vst.msk [vmem:[%s810_s20 + $0xf8] sm:$0xff] %vm427_vm0, %v426_v5 }
  0x3f   : > { %619 = shalt.err (!%p616_p3)
}
  0x40   : > { %s620_s8 = scalar_lea.hbm %s966_s28, 4096  ;;  %s624_s11 = scalar_lea.hbm %s1023_s4, 8192 }
  0x41   : > { %p621_p4 = scmp.ne.s32.totalorder %s966_s28, %s620_s8  ;;  %p625_p9 = scmp.lt.u32.totalorder %s966_s28, %s1023_s4 }
  0x42   : > { %p626_p10 = scmp.lt.u32.totalorder %s624_s11, %s620_s8  ;;  %p628_p12 = scmp.lt.u32.totalorder %s620_s8, %s966_s28 }
  0x43   : > { %p622_p7 = pnand %p621_p4, %p736_p5 }
  0x44   : > { %p627_p11 = por %p626_p10, %p625_p9 }
  0x45   : > { %p623_p8 = pneg %p622_p7 }
  0x46   : > { %p629_p13 = por %p628_p12, %p627_p11 }
  0x48   : > { %p630_p0 = pnand %p629_p13, %p623_p8 }
  0x4a   : > { %633 = shalt.err (!%p630_p0)
}
  0x4b   : > { %s671_s14 = smov 128   ;;  %s672_s20 = smov 8  }
  0x4c   : > { %565 = dma.vmem_to_hbm [thread:$0]  (%p736_p5), %s968_s23, 4096, %s966_s28, %s978_s29, %s671_s14, %s671_s14, %s672_s20  }
  0x4d PF: > { %p571_p1 = scmp.ge.s32.totalorder %s668_s18, 2  ;;  %s489_s22 = sand.u32 1, %s656_s15  }
  0x4e   : > { %s490_s19 = scalar_lea.sflag [#allocation3], %s489_s22 }
  0x4f   : > { %p568_p2 = pnand %p571_p1, %p740_p6 }
  0x51   : > { %651 = dma.done.wait (!%p568_p2), %s490_s19, 4096  }
  0x52   : > { %653 = vsyncadd (!%p568_p2), %s490_s19, 4294963200  ;;  %p14_p3 = scmp.ge.s32.totalorder %s723_s21, 4   ;;  %s1026_s15 = smov %s660_s16 }
  0x53   : > { %s1027_s16 = smov %s664_s17  ;;  %s1028_s17 = smov %s734_s24 }
  0x54   : > { %s1029_s18 = smov %s723_s21  ;;  %16 = sbr.rel (!%p14_p3) target bundleno = 3 (0x3), region = 74 }
  0x5b   :  { %495 = vsyncpa [#allocation3], 1 }
  0x5c   :  { %497 = vsyncpa [#allocation3 + $0x1], 1 }

// kernel: bottleneck_forward.5
= control target key start
LH: loop header
LB: loop body
LE: loop exit
PB: predicated region body
PF: predicated region fallthrough
CT: control target
= control target key end

     0   :  { %s4721_s18 = smov 0   ;;  %s5935_s0 = inlined_call_operand.vmem [shape: f32[2,256,128], index: 0, kind: input, shape index: {}]   ;;  %s5936_s1 = inlined_call_operand.vmem [shape: f32[1,128], index: 1, kind: input, shape index: {}]   ;;  %s5937_s2 = inlined_call_operand.vmem [shape: f32[1,128], index: 2, kind: input, shape index: {}]   ;;  %s5938_s3 = inlined_call_operand.vmem [shape: bf16[3,3,128,128], index: 3, kind: input, shape index: {}]   ;;  %s5939_s4 = inlined_call_operand.vmem [shape: f32[2,256,128], index: 4, kind: output, shape index: {0}]   ;;  %s5940_s5 = inlined_call_operand.vmem [shape: f32[2,2,128], index: 5, kind: output, shape index: {1}]  }
   0x1 LB: > { %s3179_s19 = sadd.s32 4294967295, %s4687_s18   ;;  %p3183_p0 = scmp.ge.s32.totalorder %s4687_s18, 1  ;;  %s4687_s18 = sphi %s4721_s18, %s16_s18  }
   0x2   : > { %p190_p1 = scmp.lt.s32.totalorder %s4687_s18, 3 }
   0x4   : > { %p191_p2 = pnand %p3183_p0, %p190_p1 }
   0x6   : > { %194 = sbr.rel (%p191_p2) target bundleno = 566 (0x236), region = 36 }
   0xd   : > { %v4601_v0 = vld [vmem:[%s5938_s3 + $0x40] sm:$0xff]   ;;  %v5942_v2 = vmov 0.0|0.0   ;;  %v4603_v3 = vld [vmem:[%s5938_s3 + $0x48] sm:$0xff]   ;;  %p222_p3 = scmp.lt.s32.totalorder %s3179_s19, 1  ;;  %v4605_v5 = vld [vmem:[%s5938_s3 + $0x50] sm:$0xff]   ;;  %v379_v18 = vlaneseq  ;;  %vm4690_vm3 = vmmov 1  }
   0xe   : > { %v4602_v1 = vld [vmem:[%s5938_s3 + $0x100] sm:$0xff]   ;;  %3903 = vmatprep.mubr.bf16.mxu1 %v5942_v2  ;;  %3887 = vmatprep.subr.bf16.mxu1 %v4601_v0  ;;  %v4604_v4 = vld [vmem:[%s5938_s3 + $0x108] sm:$0xff]   ;;  %v4606_v6 = vld [vmem:[%s5938_s3 + $0x110] sm:$0xff]   ;;  %vm3090_vm7 = vcmask 1040384  }
   0xf   : > { %4079 = vmatprep.subr.bf16.mxu0 %v4602_v1  ;;  %3888 = vmatpush3.bf16.msra.mxu1 %v4601_v0  ;;  %s6025_s19 = smov (!%p222_p3, %s3179_s19), 1  ;;  %v4607_v7 = vld [vmem:[%s5938_s3 + $0x58] sm:$0xff]   ;;  %v4609_v9 = vld [vmem:[%s5938_s3 + $0x60] sm:$0xff]   ;;  %v4611_v11 = vld [vmem:[%s5938_s3 + $0x68] sm:$0xff]   ;;  %v4804_v30 = vshrl.u32 %v379_v18, 7 }
  0x10   : > { %4080 = vmatpush3.bf16.msra.mxu0 %v4602_v1  ;;  %3889 = vmatprep.subr.bf16.mxu1 %v4603_v3  ;;  %v4608_v8 = vld [vmem:[%s5938_s3 + $0x118] sm:$0xff]   ;;  %s3669_s11 = sshll.u32 %s6025_s19, 8  ;;  %v4610_v10 = vld [vmem:[%s5938_s3 + $0x120] sm:$0xff]   ;;  %v4612_v12 = vld [vmem:[%s5938_s3 + $0x128] sm:$0xff]  }
  0x11   : > { %4081 = vmatprep.subr.bf16.mxu0 %v4604_v4  ;;  %s4768_s20 = scalar_lea.vmem %s5935_s0, %s3669_s11  ;;  %v4782_v16 = vld [vmem:[%s5936_s1] ss:$0 sm:$0xff]  ;;  %v4613_v25 = vld [vmem:[%s5938_s3 + $0x70] sm:$0xff]   ;;  %v4615_v38 = vld [vmem:[%s5938_s3 + $0x78] sm:$0xff]   ;;  %vm413_vm0 = vcmp.lt.s32.totalorder %v4804_v30, 1  ;;  %vm1031_vm1 = vcmp.lt.s32.totalorder %v4804_v30, 7  ;;  %s5889_s12 = scalar_lea.vmem %s5939_s4, %s3669_s11 }
  0x12   : > { %v237_v13 = vld [vmem:[%s4768_s20] sm:$0xff]  ;;  %v238_v14 = vld [vmem:[%s4768_s20 + $0x8] sm:$0xff]  ;;  %v268_v15 = vld [vmem:[%s4768_s20 + $0xf8] sm:$0xff]  ;;  %s3188_s11 = sshll.u32 %s6025_s19, 1 }
  0x13   : > { %3890 = vmatpush3.bf16.msra.mxu1 %v4603_v3  ;;  %v4787_v17 = vld [vmem:[%s5937_s2] ss:$0 sm:$0xff]  ;;  %v276_v19 = vmul.f32 %v4782_v16, %v237_v13  ;;  %v277_v20 = vmul.f32 %v4782_v16, %v238_v14  ;;  %v307_v21 = vmul.f32 %v4782_v16, %v268_v15  ;;  %v239_v22 = vld [vmem:[%s4768_s20 + $0x10] sm:$0xff]  ;;  %v240_v23 = vld [vmem:[%s4768_s20 + $0x18] sm:$0xff]  ;;  %s235_s15 = scalar_lea.vmem %s5940_s5, %s3188_s11 }
  0x14   : > { %4082 = vmatpush3.bf16.msra.mxu0 %v4604_v4  ;;  %3891 = vmatprep.subr.bf16.mxu1 %v4605_v5  ;;  %v278_v24 = vmul.f32 %v4782_v16, %v239_v22  ;;  %v4614_v29 = vld [vmem:[%s5938_s3 + $0x130] sm:$0xff]   ;;  %v279_v31 = vmul.f32 %v4782_v16, %v240_v23  ;;  %v241_v32 = vld [vmem:[%s4768_s20 + $0x20] sm:$0xff]  ;;  %v242_v33 = vld [vmem:[%s4768_s20 + $0x28] sm:$0xff] }
  0x15   : > { %4083 = vmatprep.subr.bf16.mxu0 %v4606_v6  ;;  %v315_v26 = vadd.f32 %v4787_v17, %v276_v19  ;;  %v316_v27 = vadd.f32 %v4787_v17, %v277_v20  ;;  %v346_v28 = vadd.f32 %v4787_v17, %v307_v21  ;;  %v280_v37 = vmul.f32 %v4782_v16, %v241_v32  ;;  %v243_v46 = vld [vmem:[%s4768_s20 + $0x30] sm:$0xff]  ;;  %v4616_v47 = vld [vmem:[%s5938_s3 + $0x138] sm:$0xff]   ;;  %v245_v53 = vld [vmem:[%s4768_s20 + $0x40] sm:$0xff] }
  0x16   : > { %v317_v39 = vadd.f32 %v4787_v17, %v278_v24  ;;  %v318_v40 = vadd.f32 %v4787_v17, %v279_v31  ;;  %v281_v41 = vmul.f32 %v4782_v16, %v242_v33  ;;  %v244_v49 = vld [vmem:[%s4768_s20 + $0x38] sm:$0xff]  ;;  %v282_v57 = vmul.f32 %v4782_v16, %v243_v46  ;;  %v246_v58 = vld [vmem:[%s4768_s20 + $0x48] sm:$0xff]  ;;  %v4617_v59 = vld [vmem:[%s5938_s3] sm:$0xff]  }
  0x17   : > { %3892 = vmatpush3.bf16.msra.mxu1 %v4605_v5  ;;  %v4809_v34 = vmax.f32 %v315_v26, 0.0  ;;  %v4811_v35 = vmax.f32 %v316_v27, 0.0  ;;  %v4813_v36 = vmax.f32 %v346_v28, 0.0  ;;  %v319_v48 = vadd.f32 %v4787_v17, %v280_v37  ;;  %v4618_v60 = vld [vmem:[%s5938_s3 + $0x140] sm:$0xff]   ;;  %v250_v13 = vld [vmem:[%s4768_s20 + $0x68] sm:$0xff]  ;;  %v4623_v23 = vld [vmem:[%s5938_s3 + $0x10] sm:$0xff]  }
  0x18   : > { %4084 = vmatpush3.bf16.msra.mxu0 %v4606_v6  ;;  %3893 = vmatprep.subr.bf16.mxu1 %v4607_v7  ;;  %v320_v52 = vadd.f32 %v4787_v17, %v281_v41  ;;  %v4846_v55 = vmax.f32 %v317_v39, 0.0  ;;  %v4848_v56 = vmax.f32 %v318_v40, 0.0  ;;  %v283_v61 = vmul.f32 %v4782_v16, %v244_v49  ;;  %v247_v6 = vld [vmem:[%s4768_s20 + $0x50] sm:$0xff]  ;;  %v4620_v14 = vld [vmem:[%s5938_s3 + $0x8] sm:$0xff]   ;;  %v252_v32 = vld [vmem:[%s4768_s20 + $0x78] sm:$0xff] }
  0x19   : > { %4085 = vmatprep.subr.bf16.mxu0 %v4608_v8  ;;  %v382_v42 = vrot.slane %v4809_v34, 7  ;;  %v5941_v43 = vrot.slane %v4811_v35, 7  ;;  %v5944_v44 = vrot.slane %v4813_v36, 7  ;;  %v550_v45 = vpack.c.bf16 %v4811_v35, %v4809_v34  ;;  %v4621_v26 = vld [vmem:[%s5938_s3 + $0x150] sm:$0xff]   ;;  %v4622_v40 = vld [vmem:[%s5938_s3 + $0x158] sm:$0xff]   ;;  %v4624_v49 = vld [vmem:[%s5938_s3 + $0x160] sm:$0xff]  }
  0x1a   : > { %v284_v62 = vmul.f32 %v4782_v16, %v245_v53  ;;  %v4860_v63 = vmax.f32 %v319_v48, 0.0  ;;  %v4862_v0 = vmax.f32 %v320_v52, 0.0  ;;  %v285_v1 = vmul.f32 %v4782_v16, %v246_v58  ;;  %v251_v28 = vld [vmem:[%s4768_s20 + $0x70] sm:$0xff]  ;;  %v253_v48 = vld [vmem:[%s4768_s20 + $0x80] sm:$0xff] }
  0x1b   : > { %3894 = vmatpush3.bf16.msra.mxu1 %v4607_v7  ;;  %v442_v50 = vsel %vm413_vm0, %v382_v42, %v5941_v43  ;;  %v443_v51 = vsel %vm413_vm0, %v5944_v44, %v382_v42  ;;  %4095 = vmatprep.mubr.bf16.mxu0 %v550_v45  ;;  %v4867_v3 = vpack.c.bf16 %v4848_v56, %v4846_v55  ;;  %v4619_v7 = vld [vmem:[%s5938_s3 + $0x148] sm:$0xff]   ;;  %v381_v39 = vadd.s32 8, %v4804_v30  ;;  %v263_v43 = vld [vmem:[%s4768_s20 + $0xd0] sm:$0xff] }
  0x1c   : > { %4086 = vmatpush3.bf16.msra.mxu0 %v4608_v8  ;;  %3895 = vmatprep.subr.bf16.mxu1 %v4609_v9  ;;  %v4844_v54 = vpack.c.bf16 %v442_v50, %v443_v51  ;;  %v321_v4 = vadd.f32 %v4787_v17, %v282_v57  ;;  %v322_v5 = vadd.f32 %v4787_v17, %v283_v61  ;;  %v5945_v53 = vrot.slane %v4809_v34, 1 }
  0x1d   : > { %4087 = vmatprep.subr.bf16.mxu0 %v4610_v10  ;;  %5974 = vst [vmem:[#allocation2_spill] sm:$0xff] %v4867_v3  ;;  %v323_v8 = vadd.f32 %v4787_v17, %v284_v62  ;;  %v286_v15 = vmul.f32 %v4782_v16, %v247_v6  ;;  %v290_v41 = vmul.f32 %v4782_v16, %v251_v28  ;;  %v4947_v52 = vadd.s32 1, %v381_v39  ;;  %v266_v39 = vld [vmem:[%s4768_s20 + $0xe8] sm:$0xff] }
  0x1e   : > { %v4889_v18 = vmax.f32 %v321_v4, 0.0  ;;  %v4891_v19 = vmax.f32 %v322_v5, 0.0  ;;  %v291_v46 = vmul.f32 %v4782_v16, %v252_v32  ;;  %v1001_v57 = vrot.slane %v4811_v35, 1  ;;  %v255_v4 = vld [vmem:[%s4768_s20 + $0x90] sm:$0xff]  ;;  %v256_v5 = vld [vmem:[%s4768_s20 + $0x98] sm:$0xff] }
  0x1f   : > { %3896 = vmatpush3.bf16.msra.mxu1 %v4609_v9  ;;  %v324_v9 = vadd.f32 %v4787_v17, %v285_v1  ;;  %v4895_v21 = vmax.f32 %v323_v8, 0.0  ;;  %v325_v27 = vadd.f32 %v4787_v17, %v286_v15  ;;  %v329_v58 = vadd.f32 %v4787_v17, %v290_v41  ;;  %v259_v41 = vld [vmem:[%s4768_s20 + $0xb0] sm:$0xff] }
  0x20   : > { %4088 = vmatpush3.bf16.msra.mxu0 %v4610_v10  ;;  %3897 = vmatprep.subr.bf16.mxu1 %v4611_v11  ;;  %v248_v10 = vld [vmem:[%s4768_s20 + $0x58] sm:$0xff]  ;;  %v330_v61 = vadd.f32 %v4787_v17, %v291_v46  ;;  %v1002_v62 = vrot.slane %v4846_v55, 1  ;;  %v292_v1 = vmul.f32 %v4782_v16, %v253_v48  ;;  %vm1067_vm2 = vcmp.lt.s32.totalorder %v4947_v52, 16 }
  0x21   : > { %4089 = vmatprep.subr.bf16.mxu0 %v4612_v12  ;;  %v287_v20 = vmul.f32 %v4782_v16, %v248_v10  ;;  %v4897_v22 = vmax.f32 %v324_v9, 0.0  ;;  %v4928_v42 = vmax.f32 %v325_v27, 0.0  ;;  %v258_v9 = vld [vmem:[%s4768_s20 + $0xa8] sm:$0xff]  ;;  %v1003_v10 = vrot.slane %v4848_v56, 1  ;;  %v265_v27 = vld [vmem:[%s4768_s20 + $0xe0] sm:$0xff]  ;;  %vm5036_vm4 = vmpackc.low %vm1067_vm2, %vm4690_vm3 }
  0x22   : > { %v1004_v28 = vrot.slane %v4860_v63, 1  ;;  %v295_v32 = vmul.f32 %v4782_v16, %v256_v5  ;;  %v1006_v48 = vrot.slane %v4889_v18, 1  ;;  %v298_v52 = vmul.f32 %v4782_v16, %v259_v41 }
  0x23   : > { %3898 = vmatpush3.bf16.msra.mxu1 %v4611_v11  ;;  %v4880_v11 = vpack.c.bf16 %v4862_v0, %v4860_v63  ;;  %v326_v31 = vadd.f32 %v4787_v17, %v287_v20  ;;  %v4918_v33 = vpack.c.bf16 %v4897_v22, %v4895_v21  ;;  %v4631_v20 = vld [vmem:[%s5938_s3 + $0x28] sm:$0xff]  }
  0x24   : > { %4090 = vmatpush3.bf16.msra.mxu0 %v4612_v12  ;;  %3899 = vmatprep.subr.bf16.mxu1 %v4613_v25  ;;  %v249_v12 = vld [vmem:[%s4768_s20 + $0x60] sm:$0xff]  ;;  %v334_v5 = vadd.f32 %v4787_v17, %v295_v32 }
  0x25   : > { %4091 = vmatprep.subr.bf16.mxu0 %v4614_v29  ;;  %5975 = vst [vmem:[#allocation3_spill] sm:$0xff] %v4880_v11  ;;  %v288_v24 = vmul.f32 %v4782_v16, %v249_v12  ;;  %5977 = vst [vmem:[#allocation5_spill] sm:$0xff] %v4918_v33  ;;  %v4625_v12 = vld [vmem:[%s5938_s3 + $0x168] sm:$0xff]  }
  0x27   : > { %3900 = vmatpush3.bf16.msra.mxu1 %v4613_v25  ;;  %v289_v25 = vmul.f32 %v4782_v16, %v250_v13  ;;  %v327_v37 = vadd.f32 %v4787_v17, %v288_v24  ;;  %v4977_v13 = vmax.f32 %v329_v58, 0.0  ;;  %v1060_v24 = vsel %vm1031_vm1, %v1001_v57, %v1002_v62 }
  0x28   : > { %4092 = vmatpush3.bf16.msra.mxu0 %v4614_v29  ;;  %3901 = vmatprep.subr.bf16.mxu1 %v4615_v38  ;;  %v4912_v29 = vpack.c.bf16 %v4891_v19, %v4889_v18 }
  0x29   : > { %4093 = vmatprep.subr.bf16.mxu0 %v4616_v47  ;;  %v4943_v50 = vmax.f32 %v327_v37, 0.0 }
  0x2a   : > { %5976 = vst [vmem:[#allocation4_spill] sm:$0xff] %v4912_v29 }
  0x2b   : > { %3902 = vmatpush3.bf16.msra.mxu1 %v4615_v38  ;;  %v328_v38 = vadd.f32 %v4787_v17, %v289_v25  ;;  %v331_v25 = vadd.f32 %v4787_v17, %v292_v1  ;;  %v305_v1 = vmul.f32 %v4782_v16, %v266_v39 }
  0x2c   : > { %4094 = vmatpush3.bf16.msra.mxu0 %v4616_v47  ;;  %3935 = vmatprep.subr.bf16.mxu1 %v4617_v59  ;;  %v4936_v47 = vmax.f32 %v326_v31, 0.0  ;;  %v4627_v31 = vld [vmem:[%s5938_s3 + $0x170] sm:$0xff]  }
  0x2d   : > { %4127 = vmatprep.subr.bf16.mxu0 %v4618_v60  ;;  %v4945_v51 = vmax.f32 %v328_v38, 0.0  ;;  %v297_v38 = vmul.f32 %v4782_v16, %v258_v9 }
  0x2e   : > { %3904 = vmatmul.mubr.bf16.vlgmr.msra.gmra.mrb[0].mxu1 %v550_v45  ;;  %v4626_v45 = vld [vmem:[%s5938_s3 + $0x18] sm:$0xff]   ;;  %v4964_v6 = vpack.c.bf16 %v4936_v47, %v4928_v42 }
  0x2f   : > { %4096 = vmatmul.mubr.bf16.vlgmr.msra.gmra.mrb[0].mxu0 %v4867_v3  ;;  %3936 = vmatpush3.bf16.msra.mxu1 %v4617_v59  ;;  %v254_v59 = vld [vmem:[%s4768_s20 + $0x88] sm:$0xff]  ;;  %v4969_v8 = vpack.c.bf16 %v4945_v51, %v4943_v50  ;;  %v336_v9 = vadd.f32 %v4787_v17, %v297_v38  ;;  %v1059_v38 = vsel %vm1031_vm1, %v1002_v62, %v1003_v10  ;;  %v5071_v62 = vmax.f32 %v334_v5, 0.0 }
  0x30   : > { %4128 = vmatpush3.bf16.msra.mxu0 %v4618_v60  ;;  %3907 = vmatprep.mubr.bf16.mxu1 %v4867_v3  ;;  %v4629_v60 = vld [vmem:[%s5938_s3 + $0x20] sm:$0xff]   ;;  %5978 = vst [vmem:[#allocation6_spill] sm:$0xff] %v4964_v6  ;;  %v293_v15 = vmul.f32 %v4782_v16, %v254_v59  ;;  %v5019_v59 = vmax.f32 %v331_v25, 0.0 }
  0x31   : > { %4129 = vmatprep.subr.bf16.mxu0 %v4619_v7  ;;  %4099 = vmatprep.mubr.bf16.mxu0 %v4880_v11  ;;  %5979 = vst [vmem:[#allocation7_spill] sm:$0xff] %v4969_v8 }
  0x32   : > { %3937 = vmatprep.subr.bf16.mxu1 %v4620_v14  ;;  %v332_v46 = vadd.f32 %v4787_v17, %v293_v15  ;;  %v1007_v15 = vrot.slane %v4891_v19, 1 }
  0x33   : > { %3938 = vmatpush3.bf16.msra.mxu1 %v4620_v14  ;;  %v1061_v14 = vsel %vm1031_vm1, %v5945_v53, %v1001_v57  ;;  %v260_v57 = vld [vmem:[%s4768_s20 + $0xb8] sm:$0xff]  ;;  %v5948_v53 = vrot.slane %v4862_v0, 7 }
  0x34   : > { %4130 = vmatpush3.bf16.msra.mxu0 %v4619_v7  ;;  %3939 = vmatprep.subr.bf16.mxu1 %v4623_v23  ;;  %v257_v7 = vld [vmem:[%s4768_s20 + $0xa0] sm:$0xff]  ;;  %v299_v32 = vmul.f32 %v4782_v16, %v260_v57 }
  0x35   : > { %4131 = vmatprep.subr.bf16.mxu0 %v4621_v26  ;;  %v296_v37 = vmul.f32 %v4782_v16, %v257_v7 }
  0x36   : > { %3908 = vmatmul.mubr.bf16.gmra.mrb[4].mxu1 %v4880_v11  ;;  %v5961_v11 = vrot.slane %v4936_v47, 7 }
  0x37   : > { %4100 = vmatmul.mubr.bf16.gmra.mrb[4].mxu0 %v4912_v29  ;;  %3911 = vmatprep.mubr.bf16.mxu1 %v4912_v29  ;;  %v335_v7 = vadd.f32 %v4787_v17, %v296_v37  ;;  %v4635_v37 = vld [vmem:[%s5938_s3 + $0x38] sm:$0xff]  }
  0x38   : > { %4132 = vmatpush3.bf16.msra.mxu0 %v4621_v26  ;;  %4103 = vmatprep.mubr.bf16.mxu0 %v4918_v33  ;;  %v294_v26 = vmul.f32 %v4782_v16, %v255_v4 }
  0x39   : > { %4133 = vmatprep.subr.bf16.mxu0 %v4622_v40  ;;  %3940 = vmatpush3.bf16.msra.mxu1 %v4623_v23  ;;  %v4988_v23 = vmax.f32 %v330_v61, 0.0  ;;  %v304_v61 = vmul.f32 %v4782_v16, %v265_v27  ;;  %v1058_v27 = vsel %vm1031_vm1, %v1003_v10, %v1004_v28 }
  0x3a   : > { %3941 = vmatprep.subr.bf16.mxu1 %v4626_v45  ;;  %v333_v4 = vadd.f32 %v4787_v17, %v294_v26  ;;  %v344_v26 = vadd.f32 %v4787_v17, %v305_v1  ;;  %v261_v1 = vld [vmem:[%s4768_s20 + $0xc0] sm:$0xff]  ;;  %v5103_v44 = vpack.c.bf16 %v1058_v27, %v1059_v38 }
  0x3b   : > { %v5017_v58 = vpack.c.bf16 %v4988_v23, %v4977_v13  ;;  %v343_v25 = vadd.f32 %v4787_v17, %v304_v61  ;;  %v5075_v61 = vmax.f32 %v335_v7, 0.0  ;;  %v338_v7 = vadd.f32 %v4787_v17, %v299_v32 }
  0x3c   : > { %4134 = vmatpush3.bf16.msra.mxu0 %v4622_v40  ;;  %v1005_v40 = vrot.slane %v4862_v0, 1  ;;  %v5062_v41 = vmax.f32 %v344_v26, 0.0  ;;  %v5069_v57 = vmax.f32 %v333_v4, 0.0  ;;  %v262_v26 = vld [vmem:[%s4768_s20 + $0xc8] sm:$0xff]  ;;  %v1010_v32 = vrot.slane %v4928_v42, 1 }
  0x3d   : > { %4135 = vmatprep.subr.bf16.mxu0 %v4624_v49  ;;  %3942 = vmatpush3.bf16.msra.mxu1 %v4626_v45  ;;  %v5010_v45 = vpack.c.bf16 %v1060_v24, %v1061_v14  ;;  %5980 = vst [vmem:[#allocation8_spill] sm:$0xff] %v5017_v58  ;;  %v5946_v24 = vrot.slane %v4895_v21, 1  ;;  %v300_v38 = vmul.f32 %v4782_v16, %v261_v1 }
  0x3e   : > { %3912 = vmatmul.mubr.bf16.gmra.mrb[8].mxu1 %v4918_v33  ;;  %3943 = vmatprep.subr.bf16.mxu1 %v4629_v60  ;;  %v1056_v39 = vsel %vm1031_vm1, %v1005_v40, %v1006_v48  ;;  %v1057_v10 = vsel %vm1031_vm1, %v1004_v28, %v1005_v40  ;;  %v337_v40 = vadd.f32 %v4787_v17, %v298_v52  ;;  %v264_v28 = vld [vmem:[%s4768_s20 + $0xd8] sm:$0xff]  ;;  %v1029_v3 = vrot.slane %v5062_v41, 1 }
  0x3f   : > { %4104 = vmatmul.mubr.bf16.gmra.mrb[8].mxu0 %v4964_v6  ;;  %3915 = vmatprep.mubr.bf16.mxu1 %v4964_v6  ;;  %v1054_v4 = vsel %vm1031_vm1, %v1007_v15, %v5946_v24  ;;  %v5113_v52 = vpack.c.bf16 %v5071_v62, %v5069_v57  ;;  %v301_v24 = vmul.f32 %v4782_v16, %v262_v26  ;;  %v5987_v26 = vrot.slane %v4895_v21, 1 }
  0x40   : > { %4136 = vmatpush3.bf16.msra.mxu0 %v4624_v49  ;;  %4107 = vmatprep.mubr.bf16.mxu0 %v4969_v8  ;;  %v4633_v49 = vld [vmem:[%s5938_s3 + $0x30] sm:$0xff]  }
  0x41   : > { %4137 = vmatprep.subr.bf16.mxu0 %v4625_v12  ;;  %3944 = vmatpush3.bf16.msra.mxu1 %v4629_v60  ;;  %v4628_v60 = vld [vmem:[%s5938_s3 + $0x178] sm:$0xff]   ;;  %5984 = vst [vmem:[#allocation10_spill] sm:$0xff] %v5113_v52 }
  0x42   : > { %3945 = vmatprep.subr.bf16.mxu1 %v4631_v20 }
  0x44   : > { %4138 = vmatpush3.bf16.msra.mxu0 %v4625_v12  ;;  %v5046_v12 = vmax.f32 %v332_v46, 0.0  ;;  %v4630_v46 = vld [vmem:[%s5938_s3 + $0x180] sm:$0xff]  }
  0x45   : > { %4139 = vmatprep.subr.bf16.mxu0 %v4627_v31  ;;  %3946 = vmatpush3.bf16.msra.mxu1 %v4631_v20  ;;  %v5060_v20 = vmax.f32 %v343_v25, 0.0  ;;  %v5081_v25 = vmax.f32 %v336_v9, 0.0  ;;  %v1009_v9 = vrot.slane %v4897_v22, 1 }
  0x46   : > { %3916 = vmatmul.mubr.bf16.gmra.mrb[12].mxu1 %v4969_v8  ;;  %3947 = vmatprep.subr.bf16.mxu1 %v4633_v49  ;;  %v5101_v2 = vpack.c.bf16 %v5046_v12, %v5019_v59 }
  0x47   : > { %4108 = vmatmul.mubr.bf16.gmra.mrb[12].mxu0 %v5017_v58  ;;  %3919 = vmatprep.mubr.bf16.mxu1 %v5017_v58  ;;  %v5089_v5 = vpack.c.bf16 %v5062_v41, %v5060_v20  ;;  %v5962_v8 = vrot.slane %v5060_v20, 1 }
  0x48   : > { %4140 = vmatpush3.bf16.msra.mxu0 %v4627_v31  ;;  %4143 = vmatprep.mubr.msk.bf16.mxu0 %vm5036_vm4, %v5010_v45  ;;  %v1055_v31 = vsel %vm1031_vm1, %v1006_v48, %v1007_v15  ;;  %5983 = vst [vmem:[#allocation9_spill] sm:$0xff] %v5101_v2  ;;  %v5108_v48 = vld [vmem:[%s5938_s3 + $0x80] sm:$0xff]   ;;  %v386_v15 = vrot.slane %v4860_v63, 7  ;;  %v5985_v63 = vrot.slane %v4848_v56, 7 }
  0x49   : > { %4141 = vmatprep.subr.bf16.mxu0 %v4628_v60  ;;  %3948 = vmatpush3.bf16.msra.mxu1 %v4633_v49  ;;  %v5115_v49 = vpack.c.bf16 %v1056_v39, %v1057_v10  ;;  %v5119_v27 = vpack.c.bf16 %v1054_v4, %v1055_v31  ;;  %v4632_v39 = vld [vmem:[%s5938_s3 + $0x188] sm:$0xff]   ;;  %v5131_v10 = vmax.f32 %v337_v40, 0.0  ;;  %v5143_v31 = vpack.c.bf16 %v5081_v25, %v5075_v61 }
  0x4a   : > { %3949 = vmatprep.subr.bf16.mxu1 %v4635_v37  ;;  %v439_v58 = vsel %vm413_vm0, %v5985_v63, %v386_v15  ;;  %v438_v1 = vsel %vm413_vm0, %v386_v15, %v5948_v53  ;;  %v302_v40 = vmul.f32 %v4782_v16, %v263_v43  ;;  %v1053_v15 = vsel %vm1031_vm1, %v5987_v26, %v1009_v9  ;;  %v4634_v43 = vld [vmem:[%s5938_s3 + $0x190] sm:$0xff]  }
  0x4b   : > { %5986 = vst [vmem:[#allocation11_spill] sm:$0xff] %v5143_v31  ;;  %v390_v63 = vrot.slane %v4895_v21, 7  ;;  %v339_v53 = vadd.f32 %v4787_v17, %v300_v38  ;;  %v340_v4 = vadd.f32 %v4787_v17, %v301_v24  ;;  %v5959_v26 = vrot.slane %v4897_v22, 7 }
  0x4c   : > { %4142 = vmatpush3.bf16.msra.mxu0 %v4628_v60  ;;  %v5133_v60 = vmax.f32 %v338_v7, 0.0  ;;  %v5147_v7 = vpack.c.bf16 %v438_v1, %v439_v58  ;;  %v303_v58 = vmul.f32 %v4782_v16, %v264_v28  ;;  %v267_v1 = vld [vmem:[%s4768_s20 + $0xf0] sm:$0xff]  ;;  %v1012_v21 = vrot.slane %v4943_v50, 1 }
  0x4d   : > { %4175 = vmatprep.subr.bf16.mxu0 %v4630_v46  ;;  %3950 = vmatpush3.bf16.msra.mxu1 %v4635_v37  ;;  %v1052_v37 = vsel %vm1031_vm1, %v1009_v9, %v1010_v32  ;;  %v1011_v9 = vrot.slane %v4936_v47, 1  ;;  %v341_v24 = vadd.f32 %v4787_v17, %v302_v40  ;;  %v306_v6 = vmul.f32 %v4782_v16, %v267_v1 }
  0x4e   : > { %3920 = vmatmul.mubr.bf16.gmra.mrb[16].mxu1 %v5101_v2  ;;  %3983 = vmatprep.subr.bf16.mxu1 %v5108_v48  ;;  %v5174_v28 = vpack.c.bf16 %v5133_v60, %v5131_v10  ;;  %v434_v2 = vsel %vm413_vm0, %v390_v63, %v5959_v26  ;;  %v342_v33 = vadd.f32 %v4787_v17, %v303_v58  ;;  %v1014_v26 = vrot.slane %v4977_v13, 1 }
  0x4f   : > { %4144 = vmatmul.mubr.msk.bf16.vlgmr.msra.gmra.mrb[0].mxu0 %vm5036_vm4, %v5103_v44  ;;  %3923 = vmatprep.mubr.bf16.mxu1 %v5113_v52  ;;  %v5989_v52 = vrot.slane %v4891_v19, 7  ;;  %v1051_v40 = vsel %vm1031_vm1, %v1010_v32, %v1011_v9  ;;  %v1033_v16 = vsel %vm1031_vm1, %v5962_v8, %v1029_v3  ;;  %v5210_v32 = vmax.f32 %v339_v53, 0.0 }
  0x50   : > { %4176 = vmatpush3.bf16.msra.mxu0 %v4630_v46  ;;  %4147 = vmatprep.mubr.msk.bf16.mxu0 %vm5036_vm4, %v5115_v49  ;;  %5988 = vst [vmem:[#allocation12_spill] sm:$0xff] %v5174_v28  ;;  %v1013_v46 = vrot.slane %v4945_v51, 1  ;;  %v5221_v58 = vmax.f32 %v341_v24, 0.0  ;;  %v1050_v1 = vsel %vm1031_vm1, %v1011_v9, %v1012_v21  ;;  %v5991_v24 = vrot.slane %v4809_v34, 1 }
  0x51   : > { %4177 = vmatprep.subr.bf16.mxu0 %v4632_v39  ;;  %v435_v38 = vsel %vm413_vm0, %v5989_v52, %v390_v63  ;;  %v5194_v52 = vpack.c.bf16 %v1052_v37, %v1053_v15  ;;  %v345_v63 = vadd.f32 %v4787_v17, %v306_v6  ;;  %v5960_v37 = vrot.slane %v4945_v51, 7 }
  0x52   : > { %v5190_v29 = vpack.c.bf16 %v434_v2, %v435_v38  ;;  %v4636_v2 = vld [vmem:[%s5938_s3 + $0x198] sm:$0xff]   ;;  %v5212_v17 = vmax.f32 %v340_v4, 0.0  ;;  %v1911_v15 = vrot.slane %v4813_v36, 1  ;;  %v1015_v8 = vrot.slane %v4988_v23, 1 }
  0x53   : > { %v5214_v6 = vmax.f32 %v345_v63, 0.0 }
  0x54   : > { %4178 = vmatpush3.bf16.msra.mxu0 %v4632_v39  ;;  %v394_v39 = vrot.slane %v4943_v50, 7  ;;  %v5223_v50 = vmax.f32 %v342_v33, 0.0  ;;  %v1913_v63 = vsel %vm1031_vm1, %v1911_v15, %v5991_v24  ;;  %v5254_v9 = vpack.c.bf16 %v5212_v17, %v5210_v32 }
  0x55   : > { %4179 = vmatprep.subr.bf16.mxu0 %v4634_v43  ;;  %5990 = vst [vmem:[#allocation13_spill] sm:$0xff] %v5214_v6  ;;  %v1030_v33 = vrot.slane %v5214_v6, 1 }
  0x56   : > { %3924 = vmatmul.mubr.bf16.gmra.mrb[20].mxu1 %v5143_v31  ;;  %v430_v53 = vsel %vm413_vm0, %v394_v39, %v5960_v37  ;;  %v431_v4 = vsel %vm413_vm0, %v5961_v11, %v394_v39  ;;  %v1048_v39 = vsel %vm1031_vm1, %v1013_v46, %v1014_v26  ;;  %v1049_v37 = vsel %vm1031_vm1, %v1012_v21, %v1013_v46 }
  0x57   : > { %4148 = vmatmul.mubr.msk.bf16.gmra.mrb[4].mxu0 %vm5036_vm4, %v5119_v27  ;;  %3927 = vmatprep.mubr.bf16.mxu1 %v5174_v28  ;;  %v5239_v38 = vpack.c.bf16 %v430_v53, %v431_v4  ;;  %5992 = vst [vmem:[#allocation14_spill] sm:$0xff] %v5254_v9  ;;  %v1032_v34 = vsel %vm1031_vm1, %v1029_v3, %v1030_v33  ;;  %v1016_v28 = vrot.slane %v5019_v59, 1  ;;  %v1017_v3 = vrot.slane %v5046_v12, 1 }
  0x58   : > { %4151 = vmatprep.mubr.msk.bf16.mxu0 %vm5036_vm4, %v5194_v52  ;;  %4180 = vmatpush3.bf16.msra.mxu0 %v4634_v43  ;;  %v4638_v43 = vld [vmem:[%s5938_s3 + $0x1a0] sm:$0xff]   ;;  %v1912_v53 = vsel %vm1031_vm1, %v1030_v33, %v1911_v15  ;;  %v5260_v4 = vpack.c.bf16 %v1050_v1, %v1051_v40  ;;  %v5264_v21 = vpack.c.bf16 %v5223_v50, %v5221_v58  ;;  %v1018_v40 = vrot.slane %v5069_v57, 1  ;;  %v4640_v15 = vld [vmem:[%s5938_s3 + $0x1a8] sm:$0xff]  }
  0x59   : > { %4181 = vmatprep.subr.bf16.mxu0 %v4636_v2  ;;  %v5266_v46 = vpack.c.bf16 %v1032_v34, %v1033_v16  ;;  %v5268_v24 = vpack.c.bf16 %v1913_v63, %v1912_v53  ;;  %v5270_v11 = vpack.c.bf16 %v1048_v39, %v1049_v37  ;;  %v444_v16 = vadd.s32 4294967295, %v4804_v30  ;;  %v4658_v30 = vld [vmem:[%s5938_s3 + $0x1f0] sm:$0xff]  }
  0x5a   : > { %5993 = vst [vmem:[#allocation15_spill] sm:$0xff] %v5264_v21  ;;  %v1046_v1 = vsel %vm1031_vm1, %v1015_v8, %v1016_v28  ;;  %v1047_v33 = vsel %vm1031_vm1, %v1014_v26, %v1015_v8  ;;  %v1019_v63 = vrot.slane %v5071_v62, 1  ;;  %v410_v39 = vrot.slane %v5060_v20, 7 }
  0x5b   : > { %5994 = vst [vmem:[#allocation16_spill] sm:$0xff] %v5270_v11  ;;  %v1044_v34 = vsel %vm1031_vm1, %v1017_v3, %v1018_v40  ;;  %v1045_v53 = vsel %vm1031_vm1, %v1016_v28, %v1017_v3  ;;  %v411_v37 = vrot.slane %v5062_v41, 7  ;;  %v5308_v26 = vpack.c.bf16 %v1046_v1, %v1047_v33 }
  0x5c   : > { %4182 = vmatpush3.bf16.msra.mxu0 %v4636_v2  ;;  %v4642_v2 = vld [vmem:[%s5938_s3 + $0x1b0] sm:$0xff]   ;;  %v5996_v31 = vrot.slane %v4813_v36, 7  ;;  %v5318_v3 = vpack.c.bf16 %v1044_v34, %v1045_v53  ;;  %v384_v1 = vrot.slane %v4846_v55, 7  ;;  %v1021_v33 = vrot.slane %v5081_v25, 1 }
  0x5d   : > { %4183 = vmatprep.subr.bf16.mxu0 %v4638_v43  ;;  %vm446_vm5 = vcmp.ge.s32.totalorder %v444_v16, 0  ;;  %v5999_v53 = vrot.slane %v4811_v35, 7 }
  0x5e   : > { %3928 = vmatmul.mubr.bf16.gmra.mrb[24].mxu1 %v5254_v9  ;;  %v5995_v9 = vrot.slane %v5223_v50, 7  ;;  %vm5361_vm6 = vmpackc.low %vm4690_vm3, %vm446_vm5 }
  0x5f   : > { %4152 = vmatmul.mubr.msk.bf16.gmra.mrb[8].mxu0 %vm5036_vm4, %v5260_v4  ;;  %3931 = vmatprep.mubr.bf16.mxu1 %v5264_v21  ;;  %v1373_v21 = vrot.slane %v5214_v6, 7  ;;  %v1020_v6 = vrot.slane %v5075_v61, 1  ;;  %v441_v16 = vsel %vm413_vm0, %v5999_v53, %v384_v1  ;;  %v4641_v53 = vld [vmem:[%s5938_s3 + $0x90] sm:$0xff]  }
  0x60   : > { %4155 = vmatprep.mubr.msk.bf16.mxu0 %vm5036_vm4, %v5270_v11  ;;  %4184 = vmatpush3.bf16.msra.mxu0 %v4638_v43  ;;  %v415_v8 = vsel %vm413_vm0, %v5995_v9, %v410_v39  ;;  %v414_v43 = vsel %vm413_vm0, %v410_v39, %v411_v37  ;;  %v1022_v39 = vrot.slane %v5131_v10, 1 }
  0x61   : > { %4185 = vmatprep.subr.bf16.mxu0 %v4640_v15  ;;  %v1374_v28 = vsel %vm413_vm0, %v1373_v21, %v5996_v31  ;;  %v1375_v41 = vsel %vm413_vm0, %v411_v37, %v1373_v21  ;;  %v5321_v11 = vpack.c.bf16 %v414_v43, %v415_v8  ;;  %v4644_v31 = vld [vmem:[%s5938_s3 + $0x1b8] sm:$0xff]   ;;  %v5997_v21 = vmov 0.0|0.0  }
  0x62   : > { %v5323_v9 = vpack.c.bf16 %v1374_v28, %v1375_v41  ;;  %v1042_v55 = vsel %vm1031_vm1, %v1019_v63, %v1020_v6  ;;  %v5998_v37 = vrot.slane %v4848_v56, 7  ;;  %v1040_v8 = vsel %vm1031_vm1, %v1021_v33, %v1022_v39 }
  0x63   : > { %v1041_v43 = vsel %vm1031_vm1, %v1020_v6, %v1021_v33  ;;  %v388_v41 = vrot.slane %v4889_v18, 7  ;;  %v1025_v33 = vrot.slane %v5212_v17, 1 }
  0x64   : > { %4186 = vmatpush3.bf16.msra.mxu0 %v4640_v15  ;;  %v1043_v15 = vsel %vm1031_vm1, %v1018_v40, %v1019_v63  ;;  %v440_v34 = vsel %vm413_vm0, %v384_v1, %v5998_v37  ;;  %v5358_v40 = vld [vmem:[%s5938_s3 + $0x1c0] sm:$0xff]   ;;  %v1024_v63 = vrot.slane %v5210_v32, 1  ;;  %v5371_v6 = vpack.c.bf16 %v1040_v8, %v1041_v43  ;;  %v4639_v1 = vld [vmem:[%s5938_s3 + $0x88] sm:$0xff]  }
  0x65   : > { %4187 = vmatprep.subr.bf16.mxu0 %v4642_v2  ;;  %v5365_v35 = vpack.c.bf16 %v1042_v55, %v1043_v15  ;;  %v5369_v28 = vpack.c.bf16 %v440_v34, %v441_v16  ;;  %v1026_v55 = vrot.slane %v5221_v58, 1  ;;  %v6002_v15 = vrot.slane %v4891_v19, 7 }
  0x66   : > { %3932 = vmatmul.mubr.bf16.gmra.mrb[28].mxu1 %v5089_v5 }
  0x67   : > { %4156 = vmatmul.mubr.msk.bf16.gmra.mrb[12].mxu0 %vm5036_vm4, %v5308_v26  ;;  %3951 = vmatprep.mubr.bf16.mxu1 %v5997_v21  ;;  %v436_v37 = vsel %vm413_vm0, %v388_v41, %v6002_v15  ;;  %v1036_v16 = vsel %vm1031_vm1, %v1025_v33, %v1026_v55  ;;  %v4645_v15 = vld [vmem:[%s5938_s3 + $0xa0] sm:$0xff]  }
  0x68   : > { %4159 = vmatprep.mubr.msk.bf16.mxu0 %vm5036_vm4, %v5318_v3  ;;  %4188 = vmatpush3.bf16.msra.mxu0 %v4642_v2  ;;  %v1023_v2 = vrot.slane %v5133_v60, 1 }
  0x69   : > { %4189 = vmatprep.subr.bf16.mxu0 %v4644_v31 }
  0x6a   : > { %v1038_v18 = vsel %vm1031_vm1, %v1023_v2, %v1024_v63 }
  0x6c   : > { %4190 = vmatpush3.bf16.msra.mxu0 %v4644_v31  ;;  %v1039_v31 = vsel %vm1031_vm1, %v1022_v39, %v1023_v2  ;;  %v1037_v39 = vsel %vm1031_vm1, %v1024_v63, %v1025_v33  ;;  %v392_v2 = vrot.slane %v4928_v42, 7  ;;  %v6004_v63 = vrot.slane %v5060_v20, 1 }
  0x6d   : > { %4223 = vmatprep.subr.bf16.mxu0 %v5358_v40  ;;  %v5412_v19 = vpack.c.bf16 %v1038_v18, %v1039_v31  ;;  %v5417_v43 = vpack.c.bf16 %v1036_v16, %v1037_v39  ;;  %v6005_v33 = vrot.slane %v4936_v47, 7  ;;  %v6006_v31 = vrot.slane %v4897_v22, 7  ;;  %v4647_v22 = vld [vmem:[%s5938_s3 + $0xa8] sm:$0xff]  }
  0x6e   : > { %3952 = vmatmul.mubr.msk.bf16.vlgmr.msra.gmra.mrb[0].mxu1 %vm5361_vm6, %v4844_v54  ;;  %v396_v47 = vrot.slane %v4977_v13, 7  ;;  %v398_v39 = vrot.slane %v5019_v59, 7 }
  0x6f   : > { %4160 = vmatmul.mubr.msk.bf16.gmra.mrb[16].mxu0 %vm5036_vm4, %v5365_v35  ;;  %3984 = vmatpush3.bf16.msra.mxu1 %v5108_v48  ;;  %v6003_v48 = vrot.slane %v4862_v0, 7  ;;  %v1027_v0 = vrot.slane %v5223_v50, 1  ;;  %v432_v18 = vsel %vm413_vm0, %v392_v2, %v6005_v33  ;;  %v433_v20 = vsel %vm413_vm0, %v6006_v31, %v392_v2 }
  0x70   : > { %3955 = vmatprep.mubr.msk.bf16.mxu1 %vm5361_vm6, %v5369_v28  ;;  %4163 = vmatprep.mubr.msk.bf16.mxu0 %vm5036_vm4, %v5371_v6  ;;  %v400_v2 = vrot.slane %v5069_v57, 7  ;;  %v402_v33 = vrot.slane %v5075_v61, 7  ;;  %v404_v31 = vrot.slane %v5131_v10, 7 }
  0x71   : > { %v437_v34 = vsel %vm413_vm0, %v6003_v48, %v388_v41  ;;  %3985 = vmatprep.subr.bf16.mxu1 %v4639_v1  ;;  %v4643_v41 = vld [vmem:[%s5938_s3 + $0x98] sm:$0xff]   ;;  %v1034_v42 = vsel %vm1031_vm1, %v1027_v0, %v6004_v63  ;;  %v5454_v48 = vpack.c.bf16 %v432_v18, %v433_v20  ;;  %v5514_v63 = vld [vmem:[%s5938_s3 + $0xc0] sm:$0xff]   ;;  %v403_v18 = vrot.slane %v5081_v25, 7 }
  0x72   : > { %v5414_v8 = vpack.c.bf16 %v436_v37, %v437_v34  ;;  %v405_v20 = vrot.slane %v5133_v60, 7 }
  0x73   : > { %3986 = vmatpush3.bf16.msra.mxu1 %v4639_v1  ;;  %v1035_v1 = vsel %vm1031_vm1, %v1026_v55, %v1027_v0  ;;  %v397_v55 = vrot.slane %v4988_v23, 7  ;;  %v6007_v23 = vrot.slane %v4945_v51, 7  ;;  %v399_v0 = vrot.slane %v5046_v12, 7  ;;  %v4651_v51 = vld [vmem:[%s5938_s3 + $0xb8] sm:$0xff]  }
  0x74   : > { %3987 = vmatprep.subr.bf16.mxu1 %v4641_v53  ;;  %v5452_v37 = vpack.c.bf16 %v1034_v42, %v1035_v1  ;;  %v422_v61 = vsel %vm413_vm0, %v402_v33, %v403_v18  ;;  %v420_v10 = vsel %vm413_vm0, %v404_v31, %v405_v20  ;;  %v421_v60 = vsel %vm413_vm0, %v403_v18, %v404_v31  ;;  %v4667_v18 = vld [vmem:[%s5938_s3 + $0xf8] sm:$0xff]   ;;  %v6009_v31 = vld [vmem:[#allocation16_spill] sm:$0xff] }
  0x75   : > { %v428_v13 = vsel %vm413_vm0, %v396_v47, %v397_v55  ;;  %v429_v34 = vsel %vm413_vm0, %v6007_v23, %v396_v47  ;;  %v426_v59 = vsel %vm413_vm0, %v398_v39, %v399_v0  ;;  %v427_v12 = vsel %vm413_vm0, %v397_v55, %v398_v39  ;;  %v4650_v47 = vld [vmem:[%s5938_s3 + $0x1d0] sm:$0xff]  }
  0x76   : > { %3956 = vmatmul.mubr.msk.bf16.gmra.mrb[4].mxu1 %vm5361_vm6, %v5147_v7  ;;  %v5482_v16 = vpack.c.bf16 %v428_v13, %v429_v34  ;;  %v5516_v42 = vpack.c.bf16 %v426_v59, %v427_v12  ;;  %v407_v13 = vrot.slane %v5212_v17, 7  ;;  %v408_v23 = vrot.slane %v5221_v58, 7  ;;  %v4652_v34 = vld [vmem:[%s5938_s3 + $0x1d8] sm:$0xff]   ;;  %v4662_v59 = vld [vmem:[%s5938_s3 + $0x200] sm:$0xff]   ;;  %v4655_v12 = vld [vmem:[%s5938_s3 + $0xc8] sm:$0xff]  }
  0x77   : > { %4164 = vmatmul.mubr.msk.bf16.gmra.mrb[20].mxu0 %vm5036_vm4, %v5412_v19  ;;  %3959 = vmatprep.mubr.msk.bf16.mxu1 %vm5361_vm6, %v5414_v8  ;;  %v6008_v58 = vrot.slane %v5223_v50, 7  ;;  %v4656_v50 = vld [vmem:[%s5938_s3 + $0x1e8] sm:$0xff]  }
  0x78   : > { %4167 = vmatprep.mubr.msk.bf16.mxu0 %vm5036_vm4, %v5417_v43  ;;  %3988 = vmatpush3.bf16.msra.mxu1 %v4641_v53  ;;  %v4649_v53 = vld [vmem:[%s5938_s3 + $0xb0] sm:$0xff]   ;;  %v417_v39 = vsel %vm413_vm0, %v407_v13, %v408_v23 }
  0x79   : > { %3989 = vmatprep.subr.bf16.mxu1 %v4643_v41 }
  0x7c   : > { %3990 = vmatpush3.bf16.msra.mxu1 %v4643_v41  ;;  %v401_v41 = vrot.slane %v5071_v62, 7  ;;  %v425_v62 = vsel %vm413_vm0, %v399_v0, %v400_v2  ;;  %v4654_v0 = vld [vmem:[%s5938_s3 + $0x1e0] sm:$0xff]  }
  0x7d   : > { %3991 = vmatprep.subr.bf16.mxu1 %v4645_v15 }
  0x7e   : > { %3960 = vmatmul.mubr.msk.bf16.gmra.mrb[8].mxu1 %vm5361_vm6, %v5190_v29  ;;  %v424_v57 = vsel %vm413_vm0, %v400_v2, %v401_v41  ;;  %v423_v25 = vsel %vm413_vm0, %v401_v41, %v402_v33  ;;  %v4665_v33 = vld [vmem:[%s5938_s3 + $0xf0] sm:$0xff]  }
  0x7f   : > { %4168 = vmatmul.mubr.msk.bf16.gmra.mrb[24].mxu0 %vm5036_vm4, %v5452_v37  ;;  %3963 = vmatprep.mubr.msk.bf16.mxu1 %vm5361_vm6, %v5454_v48  ;;  %v5518_v1 = vpack.c.bf16 %v424_v57, %v425_v62  ;;  %v5552_v55 = vpack.c.bf16 %v422_v61, %v423_v25  ;;  %v4657_v57 = vld [vmem:[%s5938_s3 + $0xd0] sm:$0xff]   ;;  %v4661_v62 = vld [vmem:[%s5938_s3 + $0xe0] sm:$0xff]   ;;  %v6011_v25 = vld [vmem:[#allocation3_spill] sm:$0xff] }
  0x80   : > { %4171 = vmatprep.mubr.msk.bf16.mxu0 %vm5036_vm4, %v5266_v46  ;;  %3992 = vmatpush3.bf16.msra.mxu1 %v4645_v15  ;;  %v4648_v15 = vld [vmem:[%s5938_s3 + $0x1c8] sm:$0xff]   ;;  %v4673_v61 = vld [vmem:[%s5938_s3 + $0x100] sm:$0xff]  }
  0x81   : > { %3993 = vmatprep.subr.bf16.mxu1 %v4647_v22 }
  0x84   : > { %3994 = vmatpush3.bf16.msra.mxu1 %v4647_v22  ;;  %v5554_v22 = vpack.c.bf16 %v420_v10, %v421_v60  ;;  %v6012_v10 = vld [vmem:[#allocation4_spill] sm:$0xff] }
  0x85   : > { %3995 = vmatprep.subr.bf16.mxu1 %v4649_v53  ;;  %v4666_v60 = vld [vmem:[%s5938_s3 + $0x210] sm:$0xff]  }
  0x86   : > { %3964 = vmatmul.mubr.msk.bf16.gmra.mrb[12].mxu1 %vm5361_vm6, %v5239_v38 }
  0x87   : > { %4172 = vmatmul.mubr.msk.bf16.gmra.mrb[28].mxu0 %vm5036_vm4, %v5268_v24  ;;  %3967 = vmatprep.mubr.msk.bf16.mxu1 %vm5361_vm6, %v5482_v16 }
  0x88   : > { %4191 = vmatprep.mubr.msk.bf16.mxu0 %vm5361_vm6, %v5369_v28  ;;  %3996 = vmatpush3.bf16.msra.mxu1 %v4649_v53  ;;  %v416_v53 = vsel %vm413_vm0, %v408_v23, %v6008_v58  ;;  %v4669_v23 = vld [vmem:[%s5938_s3 + $0x220] sm:$0xff]   ;;  %v4671_v58 = vld [vmem:[%s5938_s3 + $0x230] sm:$0xff]  }
  0x89   : > { %3997 = vmatprep.subr.bf16.mxu1 %v4651_v51  ;;  %v5589_v41 = vpack.c.bf16 %v416_v53, %v417_v39  ;;  %v4672_v53 = vld [vmem:[%s5938_s3 + $0x238] sm:$0xff]  }
  0x8a   : > { %v6017_v39 = vld [vmem:[#allocation9_spill] sm:$0xff] }
  0x8c   : > { %3998 = vmatpush3.bf16.msra.mxu1 %v4651_v51  ;;  %v4660_v51 = vld [vmem:[%s5938_s3 + $0x1f8] sm:$0xff]  }
  0x8d   : > { %4031 = vmatprep.subr.bf16.mxu1 %v5514_v63 }
  0x8e   : > { %3968 = vmatmul.mubr.msk.bf16.gmra.mrb[16].mxu1 %vm5361_vm6, %v5516_v42 }
  0x8f   : > { %4192 = vmatmul.mubr.msk.bf16.vlgmr.msra.gmra.mrb[0].mxu0 %vm5361_vm6, %v5147_v7  ;;  %3971 = vmatprep.mubr.msk.bf16.mxu1 %vm5361_vm6, %v5518_v1 }
  0x90   : > { %4224 = vmatpush3.bf16.msra.mxu0 %v5358_v40  ;;  %4195 = vmatprep.mubr.msk.bf16.mxu0 %vm5361_vm6, %v5414_v8  ;;  %v406_v40 = vrot.slane %v5210_v32, 7 }
  0x91   : > { %4225 = vmatprep.subr.bf16.mxu0 %v4648_v15 }
  0x92   : > { %v418_v32 = vsel %vm413_vm0, %v406_v40, %v407_v13  ;;  %v419_v17 = vsel %vm413_vm0, %v405_v20, %v406_v40  ;;  %v6010_v20 = vld [vmem:[#allocation2_spill] sm:$0xff]  ;;  %v6013_v40 = vld [vmem:[#allocation5_spill] sm:$0xff] }
  0x93   : > { %v5587_v2 = vpack.c.bf16 %v418_v32, %v419_v17  ;;  %v6014_v13 = vld [vmem:[#allocation6_spill] sm:$0xff]  ;;  %v6015_v32 = vld [vmem:[#allocation7_spill] sm:$0xff]  ;;  %v6016_v17 = vld [vmem:[#allocation8_spill] sm:$0xff] }
  0x94   : > { %4226 = vmatpush3.bf16.msra.mxu0 %v4648_v15  ;;  %v4664_v15 = vld [vmem:[%s5938_s3 + $0x208] sm:$0xff]  }
  0x95   : > { %4227 = vmatprep.subr.bf16.mxu0 %v4650_v47 }
  0x96   : > { %3972 = vmatmul.mubr.msk.bf16.gmra.mrb[20].mxu1 %vm5361_vm6, %v5552_v55 }
  0x97   : > { %4196 = vmatmul.mubr.msk.bf16.gmra.mrb[4].mxu0 %vm5361_vm6, %v5190_v29  ;;  %3975 = vmatprep.mubr.msk.bf16.mxu1 %vm5361_vm6, %v5554_v22 }
  0x98   : > { %4199 = vmatprep.mubr.msk.bf16.mxu0 %vm5361_vm6, %v5454_v48  ;;  %4228 = vmatpush3.bf16.msra.mxu0 %v4650_v47  ;;  %v4668_v47 = vld [vmem:[%s5938_s3 + $0x218] sm:$0xff]  }
  0x99   : > { %4229 = vmatprep.subr.bf16.mxu0 %v4652_v34 }
  0x9c   : > { %4230 = vmatpush3.bf16.msra.mxu0 %v4652_v34  ;;  %v4670_v34 = vld [vmem:[%s5938_s3 + $0x228] sm:$0xff]  }
  0x9d   : > { %4231 = vmatprep.subr.bf16.mxu0 %v4654_v0 }
  0x9e   : > { %3976 = vmatmul.mubr.msk.bf16.gmra.mrb[24].mxu1 %vm5361_vm6, %v5587_v2 }
  0x9f   : > { %4200 = vmatmul.mubr.msk.bf16.gmra.mrb[8].mxu0 %vm5361_vm6, %v5239_v38  ;;  %3979 = vmatprep.mubr.msk.bf16.mxu1 %vm5361_vm6, %v5589_v41 }
  0xa0   : > { %4203 = vmatprep.mubr.msk.bf16.mxu0 %vm5361_vm6, %v5482_v16  ;;  %4232 = vmatpush3.bf16.msra.mxu0 %v4654_v0  ;;  %v6018_v0 = vld [vmem:[#allocation10_spill] sm:$0xff] }
  0xa1   : > { %4233 = vmatprep.subr.bf16.mxu0 %v4656_v50 }
  0xa4   : > { %4234 = vmatpush3.bf16.msra.mxu0 %v4656_v50  ;;  %v6019_v50 = vld [vmem:[#allocation11_spill] sm:$0xff] }
  0xa5   : > { %4235 = vmatprep.subr.bf16.mxu0 %v4658_v30 }
  0xa6   : > { %3980 = vmatmul.mubr.msk.bf16.gmra.mrb[28].mxu1 %vm5361_vm6, %v5321_v11 }
  0xa7   : > { %4204 = vmatmul.mubr.msk.bf16.gmra.mrb[12].mxu0 %vm5361_vm6, %v5516_v42  ;;  %3999 = vmatprep.mubr.bf16.mxu1 %v5997_v21 }
  0xa8   : > { %4207 = vmatprep.mubr.msk.bf16.mxu0 %vm5361_vm6, %v5518_v1  ;;  %4236 = vmatpush3.bf16.msra.mxu0 %v4658_v30  ;;  %v6020_v30 = vld [vmem:[#allocation12_spill] sm:$0xff] }
  0xa9   : > { %4237 = vmatprep.subr.bf16.mxu0 %v4660_v51 }
  0xac   : > { %4238 = vmatpush3.bf16.msra.mxu0 %v4660_v51  ;;  %v4675_v51 = vld [vmem:[%s5938_s3 + $0x110] sm:$0xff]  }
  0xad   : > { %4271 = vmatprep.subr.bf16.mxu0 %v4662_v59 }
  0xae   : > { %4000 = vmatmul.mubr.msk.bf16.vlgmr.msra.gmra.mrb[0].mxu1 %vm5036_vm4, %v5010_v45  ;;  %v4659_v45 = vld [vmem:[%s5938_s3 + $0xd8] sm:$0xff]  }
  0xaf   : > { %4208 = vmatmul.mubr.msk.bf16.gmra.mrb[16].mxu0 %vm5361_vm6, %v5552_v55  ;;  %4032 = vmatpush3.bf16.msra.mxu1 %v5514_v63  ;;  %v4663_v63 = vld [vmem:[%s5938_s3 + $0xe8] sm:$0xff]  }
  0xb0   : > { %4003 = vmatprep.mubr.msk.bf16.mxu1 %vm5036_vm4, %v5103_v44  ;;  %4211 = vmatprep.mubr.msk.bf16.mxu0 %vm5361_vm6, %v5554_v22 }
  0xb1   : > { %4033 = vmatprep.subr.bf16.mxu1 %v4655_v12 }
  0xb3   : > { %4034 = vmatpush3.bf16.msra.mxu1 %v4655_v12  ;;  %v6023_v12 = vld [vmem:[#allocation13_spill] sm:$0xff] }
  0xb4   : > { %4035 = vmatprep.subr.bf16.mxu1 %v4657_v57 }
  0xb6   : > { %4004 = vmatmul.mubr.msk.bf16.gmra.mrb[4].mxu1 %vm5036_vm4, %v5115_v49 }
  0xb7   : > { %4212 = vmatmul.mubr.msk.bf16.gmra.mrb[20].mxu0 %vm5361_vm6, %v5587_v2  ;;  %4007 = vmatprep.mubr.msk.bf16.mxu1 %vm5036_vm4, %v5119_v27 }
  0xb8   : > { %4215 = vmatprep.mubr.msk.bf16.mxu0 %vm5361_vm6, %v5589_v41  ;;  %4036 = vmatpush3.bf16.msra.mxu1 %v4657_v57  ;;  %v1652_v57 = vpack.c.bf16 %v4813_v36, %v6023_v12  ;;  %v4678_v36 = vld [vmem:[%s5938_s3 + $0x128] sm:$0xff]  }
  0xb9   : > { %4037 = vmatprep.subr.bf16.mxu1 %v4659_v45 }
  0xbc   : > { %4038 = vmatpush3.bf16.msra.mxu1 %v4659_v45 }
  0xbd   : > { %4039 = vmatprep.subr.bf16.mxu1 %v4661_v62 }
  0xbe   : > { %4008 = vmatmul.mubr.msk.bf16.gmra.mrb[8].mxu1 %vm5036_vm4, %v5194_v52 }
  0xbf   : > { %4216 = vmatmul.mubr.msk.bf16.gmra.mrb[24].mxu0 %vm5361_vm6, %v5321_v11  ;;  %4011 = vmatprep.mubr.msk.bf16.mxu1 %vm5036_vm4, %v5260_v4 }
  0xc0   : > { %4219 = vmatprep.mubr.msk.bf16.mxu0 %vm5361_vm6, %v5323_v9  ;;  %4040 = vmatpush3.bf16.msra.mxu1 %v4661_v62 }
  0xc1   : > { %4041 = vmatprep.subr.bf16.mxu1 %v4663_v63 }
  0xc4   : > { %4042 = vmatpush3.bf16.msra.mxu1 %v4663_v63 }
  0xc5   : > { %4043 = vmatprep.subr.bf16.mxu1 %v4665_v33 }
  0xc6   : > { %4012 = vmatmul.mubr.msk.bf16.gmra.mrb[12].mxu1 %vm5036_vm4, %v6009_v31 }
  0xc7   : > { %4220 = vmatmul.mubr.bf16.gmra.mrb[28].mxu0 %v5997_v21  ;;  %4015 = vmatprep.mubr.msk.bf16.mxu1 %vm5036_vm4, %v5308_v26 }
  0xc8   : > { %4239 = vmatprep.mubr.bf16.mxu0 %v6010_v20  ;;  %4044 = vmatpush3.bf16.msra.mxu1 %v4665_v33 }
  0xc9   : > { %4045 = vmatprep.subr.bf16.mxu1 %v4667_v18 }
  0xcc   : > { %4046 = vmatpush3.bf16.msra.mxu1 %v4667_v18 }
  0xcd   : > { %4319 = vmatprep.subr.bf16.mxu1 %v4673_v61 }
  0xce   : > { %4016 = vmatmul.mubr.msk.bf16.gmra.mrb[16].mxu1 %vm5036_vm4, %v5318_v3 }
  0xcf   : > { %4240 = vmatmul.mubr.bf16.vlgmr.msra.gmra.mrb[0].mxu0 %v6011_v25  ;;  %4019 = vmatprep.mubr.msk.bf16.mxu1 %vm5036_vm4, %v5365_v35 }
  0xd0   : > { %4272 = vmatpush3.bf16.msra.mxu0 %v4662_v59  ;;  %4243 = vmatprep.mubr.bf16.mxu0 %v6012_v10  ;;  %v4676_v59 = vld [vmem:[%s5938_s3 + $0x118] sm:$0xff]  }
  0xd1   : > { %4273 = vmatprep.subr.bf16.mxu0 %v4664_v15 }
  0xd4   : > { %4274 = vmatpush3.bf16.msra.mxu0 %v4664_v15 }
  0xd5   : > { %4275 = vmatprep.subr.bf16.mxu0 %v4666_v60 }
  0xd6   : > { %4020 = vmatmul.mubr.msk.bf16.gmra.mrb[20].mxu1 %vm5036_vm4, %v5371_v6 }
  0xd7   : > { %4244 = vmatmul.mubr.bf16.gmra.mrb[4].mxu0 %v6013_v40  ;;  %4023 = vmatprep.mubr.msk.bf16.mxu1 %vm5036_vm4, %v5412_v19 }
  0xd8   : > { %4247 = vmatprep.mubr.bf16.mxu0 %v6014_v13  ;;  %4276 = vmatpush3.bf16.msra.mxu0 %v4666_v60 }
  0xd9   : > { %4277 = vmatprep.subr.bf16.mxu0 %v4668_v47 }
  0xdc   : > { %4278 = vmatpush3.bf16.msra.mxu0 %v4668_v47 }
  0xdd   : > { %4279 = vmatprep.subr.bf16.mxu0 %v4669_v23 }
  0xde   : > { %4024 = vmatmul.mubr.msk.bf16.gmra.mrb[24].mxu1 %vm5036_vm4, %v5417_v43 }
  0xdf   : > { %4248 = vmatmul.mubr.bf16.gmra.mrb[8].mxu0 %v6015_v32  ;;  %4027 = vmatprep.mubr.msk.bf16.mxu1 %vm5036_vm4, %v5452_v37 }
  0xe0   : > { %4251 = vmatprep.mubr.bf16.mxu0 %v6016_v17  ;;  %4280 = vmatpush3.bf16.msra.mxu0 %v4669_v23 }
  0xe1   : > { %4281 = vmatprep.subr.bf16.mxu0 %v4670_v34 }
  0xe4   : > { %4282 = vmatpush3.bf16.msra.mxu0 %v4670_v34 }
  0xe5   : > { %4283 = vmatprep.subr.bf16.mxu0 %v4671_v58 }
  0xe6   : > { %4028 = vmatmul.mubr.msk.bf16.gmra.mrb[28].mxu1 %vm5036_vm4, %v5266_v46 }
  0xe7   : > { %4252 = vmatmul.mubr.bf16.gmra.mrb[12].mxu0 %v6017_v39  ;;  %4047 = vmatprep.mubr.msk.bf16.mxu1 %vm5361_vm6, %v4844_v54  ;;  %v4674_v54 = vld [vmem:[%s5938_s3 + $0x108] sm:$0xff]  }
  0xe8   : > { %4255 = vmatprep.mubr.bf16.mxu0 %v6018_v0  ;;  %4284 = vmatpush3.bf16.msra.mxu0 %v4671_v58 }
  0xe9   : > { %4285 = vmatprep.subr.bf16.mxu0 %v4672_v53 }
  0xec   : > { %4286 = vmatpush3.bf16.msra.mxu0 %v4672_v53 }
  0xee   : > { %4048 = vmatmul.mubr.msk.bf16.vlgmr.msra.gmra.mrb[0].mxu1 %vm5361_vm6, %v5369_v28  ;;  %v6021_v28 = vld [vmem:[#allocation14_spill] sm:$0xff] }
  0xef   : > { %4256 = vmatmul.mubr.bf16.gmra.mrb[16].mxu0 %v6019_v50  ;;  %4327 = vmatpush3.bf16.msra.mxu1 %v4673_v61 }
  0xf0   : > { %4051 = vmatprep.mubr.msk.bf16.mxu1 %vm5361_vm6, %v5147_v7  ;;  %4259 = vmatprep.mubr.bf16.mxu0 %v6020_v30  ;;  %v6022_v7 = vld [vmem:[#allocation15_spill] sm:$0xff] }
  0xf1   : > { %4320 = vmatprep.subr.bf16.mxu1 %v4674_v54 }
  0xf3   : > { %4328 = vmatpush3.bf16.msra.mxu1 %v4674_v54 }
  0xf4   : > { %4321 = vmatprep.subr.bf16.mxu1 %v4675_v51 }
  0xf6   : > { %4052 = vmatmul.mubr.msk.bf16.gmra.mrb[4].mxu1 %vm5361_vm6, %v5414_v8  ;;  %v4677_v8 = vld [vmem:[%s5938_s3 + $0x120] sm:$0xff]  }
  0xf7   : > { %4260 = vmatmul.mubr.bf16.gmra.mrb[20].mxu0 %v6021_v28  ;;  %4055 = vmatprep.mubr.msk.bf16.mxu1 %vm5361_vm6, %v5190_v29  ;;  %v4679_v29 = vld [vmem:[%s5938_s3 + $0x130] sm:$0xff]  }
  0xf8   : > { %4263 = vmatprep.mubr.bf16.mxu0 %v6022_v7  ;;  %4329 = vmatpush3.bf16.msra.mxu1 %v4675_v51 }
  0xf9   : > { %4322 = vmatprep.subr.bf16.mxu1 %v4676_v59 }
  0xfc   : > { %4330 = vmatpush3.bf16.msra.mxu1 %v4676_v59 }
  0xfd   : > { %4323 = vmatprep.subr.bf16.mxu1 %v4677_v8 }
  0xfe   : > { %4056 = vmatmul.mubr.msk.bf16.gmra.mrb[8].mxu1 %vm5361_vm6, %v5454_v48 }
  0xff   : > { %4264 = vmatmul.mubr.bf16.gmra.mrb[24].mxu0 %v5089_v5  ;;  %4059 = vmatprep.mubr.msk.bf16.mxu1 %vm5361_vm6, %v5239_v38  ;;  %v4680_v38 = vld [vmem:[%s5938_s3 + $0x138] sm:$0xff]  }
 0x100   : > { %4267 = vmatprep.mubr.bf16.mxu0 %v1652_v57  ;;  %4331 = vmatpush3.bf16.msra.mxu1 %v4677_v8 }
 0x101   : > { %4324 = vmatprep.subr.bf16.mxu1 %v4678_v36 }
 0x104   : > { %4332 = vmatpush3.bf16.msra.mxu1 %v4678_v36 }
 0x105   : > { %4325 = vmatprep.subr.bf16.mxu1 %v4679_v29 }
 0x106   : > { %4060 = vmatmul.mubr.msk.bf16.gmra.mrb[12].mxu1 %vm5361_vm6, %v5482_v16 }
 0x107   : > { %4268 = vmatmul.mubr.bf16.gmra.mrb[28].mxu0 %v5997_v21  ;;  %4063 = vmatprep.mubr.msk.bf16.mxu1 %vm5361_vm6, %v5516_v42 }
 0x108   : > { %4287 = vmatprep.mubr.msk.bf16.mxu0 %vm5036_vm4, %v5103_v44  ;;  %4333 = vmatpush3.bf16.msra.mxu1 %v4679_v29 }
 0x109   : > { %4326 = vmatprep.subr.bf16.mxu1 %v4680_v38 }
 0x10c   : > { %4334 = vmatpush3.bf16.msra.mxu1 %v4680_v38 }
 0x10e   : > { %4064 = vmatmul.mubr.msk.bf16.gmra.mrb[16].mxu1 %vm5361_vm6, %v5518_v1 }
 0x10f   : > { %4288 = vmatmul.mubr.msk.bf16.vlgmr.msra.gmra.mrb[0].mxu0 %vm5036_vm4, %v5115_v49  ;;  %4067 = vmatprep.mubr.msk.bf16.mxu1 %vm5361_vm6, %v5552_v55 }
 0x110   : > { %4291 = vmatprep.mubr.msk.bf16.mxu0 %vm5036_vm4, %v5119_v27 }
 0x116   : > { %4068 = vmatmul.mubr.msk.bf16.gmra.mrb[20].mxu1 %vm5361_vm6, %v5554_v22 }
 0x117   : > { %4292 = vmatmul.mubr.msk.bf16.gmra.mrb[4].mxu0 %vm5036_vm4, %v5194_v52  ;;  %4071 = vmatprep.mubr.msk.bf16.mxu1 %vm5361_vm6, %v5587_v2 }
 0x118   : > { %4295 = vmatprep.mubr.msk.bf16.mxu0 %vm5036_vm4, %v5260_v4 }
 0x11e   : > { %4072 = vmatmul.mubr.msk.bf16.gmra.mrb[24].mxu1 %vm5361_vm6, %v5589_v41 }
 0x11f   : > { %4296 = vmatmul.mubr.msk.bf16.gmra.mrb[8].mxu0 %vm5036_vm4, %v6009_v31  ;;  %4075 = vmatprep.mubr.msk.bf16.mxu1 %vm5361_vm6, %v5321_v11 }
 0x120   : > { %4299 = vmatprep.mubr.msk.bf16.mxu0 %vm5036_vm4, %v5308_v26 }
 0x126   : > { %4076 = vmatmul.mubr.msk.bf16.gmra.mrb[28].mxu1 %vm5361_vm6, %v5323_v9 }
 0x127   : > { %4300 = vmatmul.mubr.msk.bf16.gmra.mrb[12].mxu0 %vm5036_vm4, %v5318_v3  ;;  %4111 = vmatprep.mubr.bf16.mxu1 %v6017_v39 }
 0x128   : > { %4303 = vmatprep.mubr.msk.bf16.mxu0 %vm5036_vm4, %v5365_v35 }
 0x12e   : > { %4112 = vmatmul.mubr.bf16.vlgmr.msra.gmra.mrb[16].mxu1 %v6018_v0 }
 0x12f   : > { %4304 = vmatmul.mubr.msk.bf16.gmra.mrb[16].mxu0 %vm5036_vm4, %v5371_v6  ;;  %4115 = vmatprep.mubr.bf16.mxu1 %v6019_v50 }
 0x130   : > { %4307 = vmatprep.mubr.msk.bf16.mxu0 %vm5036_vm4, %v5412_v19 }
 0x136   : > { %4116 = vmatmul.mubr.bf16.gmra.mrb[20].mxu1 %v6020_v30 }
 0x137   : > { %4308 = vmatmul.mubr.msk.bf16.gmra.mrb[20].mxu0 %vm5036_vm4, %v5417_v43  ;;  %4119 = vmatprep.mubr.bf16.mxu1 %v6021_v28 }
 0x138   : > { %4311 = vmatprep.mubr.msk.bf16.mxu0 %vm5036_vm4, %v5452_v37 }
 0x13e   : > { %4120 = vmatmul.mubr.bf16.gmra.mrb[24].mxu1 %v6022_v7 }
 0x13f   : > { %4312 = vmatmul.mubr.msk.bf16.gmra.mrb[24].mxu0 %vm5036_vm4, %v5266_v46  ;;  %4123 = vmatprep.mubr.bf16.mxu1 %v5089_v5 }
 0x140   : > { %4315 = vmatprep.mubr.msk.bf16.mxu0 %vm5036_vm4, %v5268_v24 }
 0x146   : > { %4124 = vmatmul.mubr.bf16.gmra.mrb[28].mxu1 %v1652_v57 }
 0x147   : > { %4316 = vmatmul.mubr.bf16.gmra.mrb[28].mxu0 %v5997_v21 }
 0x1c1   : > { %v4049_v44 = vpop.f32.mrb[0].mxu1 }
 0x1c2   : > { %v1478_v11 = vpop.f32.mrb[1].mxu1 }
 0x1c3   : > { %v4050_v49 = vpop.f32.mrb[2].mxu1 }
 0x1c4   : > { %v1481_v27 = vpop.f32.mrb[3].mxu1 }
 0x1c9   : > { %v4053_v52 = vpop.f32.mrb[4].mxu1 }
 0x1ca   : > { %v1494_v4 = vpop.f32.mrb[5].mxu1 }
 0x1cb   : > { %v4054_v26 = vpop.f32.mrb[6].mxu1 }
 0x1cc   : > { %v1497_v3 = vpop.f32.mrb[7].mxu1 }
 0x1d1   : > { %v4057_v9 = vpop.f32.mrb[8].mxu1 }
 0x1d2   : > { %v1510_v46 = vpop.f32.mrb[9].mxu1 }
 0x1d3   : > { %v4058_v56 = vpop.f32.mrb[10].mxu1 }
 0x1d4   : > { %v5874_v5 = vpop.f32.mrb[11].mxu1 }
 0x1d9   : > { %v5876_v35 = vpop.f32.mrb[12].mxu1 }
 0x1da   : > { %v5878_v14 = vpop.f32.mrb[13].mxu1 }
 0x1db   : > { %v5880_v24 = vpop.f32.mrb[14].mxu1 }
 0x1dc   : > { %v5882_v21 = vpop.f32.mrb[15].mxu1 }
 0x1e2   : > { %v4289_v6 = vpop.f32.mrb[0].mxu0 }
 0x1e3   : > { %v4335_v19 = vadd.f32 %v4289_v6, %v4049_v44  ;;  %v2793_v43 = vpop.f32.mrb[1].mxu0 }
 0x1e4   : > { %v4336_v37 = vadd.f32 %v2793_v43, %v1478_v11  ;;  %v4290_v48 = vpop.f32.mrb[2].mxu0 }
 0x1e5   : > { %2954 = vst [vmem:[%s5889_s12 + $0x10] sm:$0xff] %v4335_v19  ;;  %v4337_v16 = vadd.f32 %v4290_v48, %v4050_v49  ;;  %v2796_v42 = vpop.f32.mrb[3].mxu0  ;;  %v3023_v41 = vmul.f32 %v4335_v19, %v4335_v19 }
 0x1e6   : > { %2952 = vst [vmem:[%s5889_s12] sm:$0xff] %v4336_v37  ;;  %v4338_v1 = vadd.f32 %v2796_v42, %v1481_v27  ;;  %v3021_v55 = vmul.f32 %v4336_v37, %v4336_v37 }
 0x1e7   : > { %2955 = vst [vmem:[%s5889_s12 + $0x18] sm:$0xff] %v4337_v16  ;;  %v3024_v31 = vmul.f32 %v4337_v16, %v4337_v16 }
 0x1e8   : > { %2953 = vst [vmem:[%s5889_s12 + $0x8] sm:$0xff] %v4338_v1  ;;  %v2984_v22 = vadd.f32 %v4338_v1, %v4336_v37  ;;  %v3022_v2 = vmul.f32 %v4338_v1, %v4338_v1 }
 0x1ea   : > { %v2985_v45 = vadd.f32 %v4335_v19, %v2984_v22  ;;  %v3053_v62 = vadd.f32 %v3022_v2, %v3021_v55  ;;  %v4293_v63 = vpop.f32.mrb[4].mxu0 }
 0x1eb   : > { %v4339_v33 = vadd.f32 %v4293_v63, %v4053_v52  ;;  %v2809_v18 = vpop.f32.mrb[5].mxu0 }
 0x1ec   : > { %v3054_v20 = vadd.f32 %v3053_v62, %v3023_v41  ;;  %v4340_v15 = vadd.f32 %v2809_v18, %v1494_v4  ;;  %v2986_v61 = vadd.f32 %v4337_v16, %v2985_v45  ;;  %v4294_v25 = vpop.f32.mrb[6].mxu0 }
 0x1ed   : > { %2958 = vst [vmem:[%s5889_s12 + $0x30] sm:$0xff] %v4339_v33  ;;  %v4341_v10 = vadd.f32 %v4294_v25, %v4054_v26  ;;  %v2812_v60 = vpop.f32.mrb[7].mxu0  ;;  %v3027_v58 = vmul.f32 %v4339_v33, %v4339_v33 }
 0x1ee   : > { %2956 = vst [vmem:[%s5889_s12 + $0x20] sm:$0xff] %v4340_v15  ;;  %v2987_v47 = vadd.f32 %v4340_v15, %v2986_v61  ;;  %v3025_v40 = vmul.f32 %v4340_v15, %v4340_v15  ;;  %v3055_v13 = vadd.f32 %v3054_v20, %v3024_v31  ;;  %v4342_v23 = vadd.f32 %v2812_v60, %v1497_v3 }
 0x1ef   : > { %2959 = vst [vmem:[%s5889_s12 + $0x38] sm:$0xff] %v4341_v10  ;;  %v3028_v54 = vmul.f32 %v4341_v10, %v4341_v10 }
 0x1f0   : > { %v3056_v34 = vadd.f32 %v3055_v13, %v3025_v40  ;;  %2957 = vst [vmem:[%s5889_s12 + $0x28] sm:$0xff] %v4342_v23  ;;  %v2988_v32 = vadd.f32 %v4342_v23, %v2987_v47  ;;  %v3026_v17 = vmul.f32 %v4342_v23, %v4342_v23 }
 0x1f2   : > { %v2989_v53 = vadd.f32 %v4339_v33, %v2988_v32  ;;  %v3057_v39 = vadd.f32 %v3056_v34, %v3026_v17  ;;  %v4297_v0 = vpop.f32.mrb[8].mxu0 }
 0x1f3   : > { %v4343_v50 = vadd.f32 %v4297_v0, %v4057_v9  ;;  %v2825_v30 = vpop.f32.mrb[9].mxu0 }
 0x1f4   : > { %v3058_v51 = vadd.f32 %v3057_v39, %v3027_v58  ;;  %v4344_v28 = vadd.f32 %v2825_v30, %v1510_v46  ;;  %v2990_v7 = vadd.f32 %v4341_v10, %v2989_v53  ;;  %v4298_v59 = vpop.f32.mrb[10].mxu0 }
 0x1f5   : > { %2962 = vst [vmem:[%s5889_s12 + $0x50] sm:$0xff] %v4343_v50  ;;  %v4345_v12 = vadd.f32 %v4298_v59, %v4058_v56  ;;  %v2828_v57 = vpop.f32.mrb[11].mxu0  ;;  %v3031_v27 = vmul.f32 %v4343_v50, %v4343_v50 }
 0x1f6   : > { %2960 = vst [vmem:[%s5889_s12 + $0x40] sm:$0xff] %v4344_v28  ;;  %v2991_v8 = vadd.f32 %v4344_v28, %v2990_v7  ;;  %v3029_v36 = vmul.f32 %v4344_v28, %v4344_v28  ;;  %v3059_v29 = vadd.f32 %v3058_v51, %v3028_v54  ;;  %v4346_v38 = vadd.f32 %v2828_v57, %v5874_v5 }
 0x1f7   : > { %2963 = vst [vmem:[%s5889_s12 + $0x58] sm:$0xff] %v4345_v12  ;;  %v3032_v46 = vmul.f32 %v4345_v12, %v4345_v12 }
 0x1f8   : > { %v3060_v44 = vadd.f32 %v3059_v29, %v3029_v36  ;;  %2961 = vst [vmem:[%s5889_s12 + $0x48] sm:$0xff] %v4346_v38  ;;  %v2992_v11 = vadd.f32 %v4346_v38, %v2991_v8  ;;  %v3030_v49 = vmul.f32 %v4346_v38, %v4346_v38 }
 0x1fa   : > { %v2993_v52 = vadd.f32 %v4343_v50, %v2992_v11  ;;  %v3061_v4 = vadd.f32 %v3060_v44, %v3030_v49  ;;  %v4301_v26 = vpop.f32.mrb[12].mxu0 }
 0x1fb   : > { %v4347_v3 = vadd.f32 %v4301_v26, %v5876_v35  ;;  %v2841_v9 = vpop.f32.mrb[13].mxu0 }
 0x1fc   : > { %v3062_v56 = vadd.f32 %v3061_v4, %v3031_v27  ;;  %v4348_v5 = vadd.f32 %v2841_v9, %v5878_v14  ;;  %v2994_v6 = vadd.f32 %v4345_v12, %v2993_v52  ;;  %v4302_v19 = vpop.f32.mrb[14].mxu0 }
 0x1fd   : > { %2966 = vst [vmem:[%s5889_s12 + $0x70] sm:$0xff] %v4347_v3  ;;  %v4349_v43 = vadd.f32 %v4302_v19, %v5880_v24  ;;  %v2844_v37 = vpop.f32.mrb[15].mxu0  ;;  %v3035_v14 = vmul.f32 %v4347_v3, %v4347_v3 }
 0x1fe   : > { %2964 = vst [vmem:[%s5889_s12 + $0x60] sm:$0xff] %v4348_v5  ;;  %v2995_v48 = vadd.f32 %v4348_v5, %v2994_v6  ;;  %v3033_v16 = vmul.f32 %v4348_v5, %v4348_v5  ;;  %v3063_v42 = vadd.f32 %v3062_v56, %v3032_v46  ;;  %v4350_v1 = vadd.f32 %v2844_v37, %v5882_v21 }
 0x1ff   : > { %2967 = vst [vmem:[%s5889_s12 + $0x78] sm:$0xff] %v4349_v43  ;;  %v3036_v31 = vmul.f32 %v4349_v43, %v4349_v43 }
 0x200   : > { %v3064_v35 = vadd.f32 %v3063_v42, %v3033_v16  ;;  %2965 = vst [vmem:[%s5889_s12 + $0x68] sm:$0xff] %v4350_v1  ;;  %v2996_v55 = vadd.f32 %v4350_v1, %v2995_v48  ;;  %v3034_v22 = vmul.f32 %v4350_v1, %v4350_v1 }
 0x201   : > { %v4113_v2 = vpop.f32.mrb[16].mxu1 }
 0x202   : > { %v2997_v41 = vadd.f32 %v4347_v3, %v2996_v55  ;;  %v3065_v45 = vadd.f32 %v3064_v35, %v3034_v22  ;;  %v4305_v62 = vpop.f32.mrb[16].mxu0  ;;  %v1816_v24 = vpop.f32.mrb[17].mxu1 }
 0x203   : > { %v4351_v63 = vadd.f32 %v4305_v62, %v4113_v2  ;;  %v2857_v33 = vpop.f32.mrb[17].mxu0  ;;  %v4114_v18 = vpop.f32.mrb[18].mxu1 }
 0x204   : > { %v3066_v21 = vadd.f32 %v3065_v45, %v3035_v14  ;;  %v4352_v20 = vadd.f32 %v2857_v33, %v1816_v24  ;;  %v2998_v15 = vadd.f32 %v4349_v43, %v2997_v41  ;;  %v4306_v61 = vpop.f32.mrb[18].mxu0  ;;  %v1819_v25 = vpop.f32.mrb[19].mxu1 }
 0x205   : > { %2970 = vst [vmem:[%s5889_s12 + $0x90] sm:$0xff] %v4351_v63  ;;  %v4353_v10 = vadd.f32 %v4306_v61, %v4114_v18  ;;  %v2860_v60 = vpop.f32.mrb[19].mxu0  ;;  %v3039_v53 = vmul.f32 %v4351_v63, %v4351_v63 }
 0x206   : > { %2968 = vst [vmem:[%s5889_s12 + $0x80] sm:$0xff] %v4352_v20  ;;  %v2999_v47 = vadd.f32 %v4352_v20, %v2998_v15  ;;  %v3037_v40 = vmul.f32 %v4352_v20, %v4352_v20  ;;  %v3067_v13 = vadd.f32 %v3066_v21, %v3036_v31  ;;  %v4354_v23 = vadd.f32 %v2860_v60, %v1819_v25 }
 0x207   : > { %2971 = vst [vmem:[%s5889_s12 + $0x98] sm:$0xff] %v4353_v10  ;;  %v3040_v7 = vmul.f32 %v4353_v10, %v4353_v10 }
 0x208   : > { %v3068_v34 = vadd.f32 %v3067_v13, %v3037_v40  ;;  %2969 = vst [vmem:[%s5889_s12 + $0x88] sm:$0xff] %v4354_v23  ;;  %v3000_v32 = vadd.f32 %v4354_v23, %v2999_v47  ;;  %v3038_v17 = vmul.f32 %v4354_v23, %v4354_v23 }
 0x209   : > { %v4117_v58 = vpop.f32.mrb[20].mxu1 }
 0x20a   : > { %v3001_v39 = vadd.f32 %v4351_v63, %v3000_v32  ;;  %v3069_v0 = vadd.f32 %v3068_v34, %v3038_v17  ;;  %v4309_v50 = vpop.f32.mrb[20].mxu0  ;;  %v1832_v30 = vpop.f32.mrb[21].mxu1 }
 0x20b   : > { %v4355_v54 = vadd.f32 %v4309_v50, %v4117_v58  ;;  %v2873_v51 = vpop.f32.mrb[21].mxu0  ;;  %v4118_v28 = vpop.f32.mrb[22].mxu1 }
 0x20c   : > { %v3070_v59 = vadd.f32 %v3069_v0, %v3039_v53  ;;  %v4356_v12 = vadd.f32 %v2873_v51, %v1832_v30  ;;  %v3002_v57 = vadd.f32 %v4353_v10, %v3001_v39  ;;  %v4310_v8 = vpop.f32.mrb[22].mxu0  ;;  %v1835_v36 = vpop.f32.mrb[23].mxu1 }
 0x20d   : > { %2974 = vst [vmem:[%s5889_s12 + $0xb0] sm:$0xff] %v4355_v54  ;;  %v4357_v29 = vadd.f32 %v4310_v8, %v4118_v28  ;;  %v2876_v38 = vpop.f32.mrb[23].mxu0  ;;  %v3043_v9 = vmul.f32 %v4355_v54, %v4355_v54 }
 0x20e   : > { %2972 = vst [vmem:[%s5889_s12 + $0xa0] sm:$0xff] %v4356_v12  ;;  %v3003_v44 = vadd.f32 %v4356_v12, %v3002_v57  ;;  %v3041_v11 = vmul.f32 %v4356_v12, %v4356_v12  ;;  %v3071_v49 = vadd.f32 %v3070_v59, %v3040_v7  ;;  %v4358_v27 = vadd.f32 %v2876_v38, %v1835_v36 }
 0x20f   : > { %2975 = vst [vmem:[%s5889_s12 + $0xb8] sm:$0xff] %v4357_v29  ;;  %v3044_v48 = vmul.f32 %v4357_v29, %v4357_v29 }
 0x210   : > { %v3072_v52 = vadd.f32 %v3071_v49, %v3041_v11  ;;  %2973 = vst [vmem:[%s5889_s12 + $0xa8] sm:$0xff] %v4358_v27  ;;  %v3004_v4 = vadd.f32 %v4358_v27, %v3003_v44  ;;  %v3042_v26 = vmul.f32 %v4358_v27, %v4358_v27 }
 0x211   : > { %v4121_v3 = vpop.f32.mrb[24].mxu1 }
 0x212   : > { %v3005_v46 = vadd.f32 %v4355_v54, %v3004_v4  ;;  %v3073_v56 = vadd.f32 %v3072_v52, %v3042_v26  ;;  %v4313_v5 = vpop.f32.mrb[24].mxu0  ;;  %v1848_v6 = vpop.f32.mrb[25].mxu1 }
 0x213   : > { %v4359_v19 = vadd.f32 %v4313_v5, %v4121_v3  ;;  %v2889_v43 = vpop.f32.mrb[25].mxu0  ;;  %v4122_v37 = vpop.f32.mrb[26].mxu1 }
 0x214   : > { %v3074_v16 = vadd.f32 %v3073_v56, %v3043_v9  ;;  %v4360_v42 = vadd.f32 %v2889_v43, %v1848_v6  ;;  %v3006_v1 = vadd.f32 %v4357_v29, %v3005_v46  ;;  %v4314_v35 = vpop.f32.mrb[26].mxu0  ;;  %v1851_v55 = vpop.f32.mrb[27].mxu1 }
 0x215   : > { %2978 = vst [vmem:[%s5889_s12 + $0xd0] sm:$0xff] %v4359_v19  ;;  %v4361_v22 = vadd.f32 %v4314_v35, %v4122_v37  ;;  %v2892_v2 = vpop.f32.mrb[27].mxu0  ;;  %v3047_v31 = vmul.f32 %v4359_v19, %v4359_v19 }
 0x216   : > { %2976 = vst [vmem:[%s5889_s12 + $0xc0] sm:$0xff] %v4360_v42  ;;  %v3007_v14 = vadd.f32 %v4360_v42, %v3006_v1  ;;  %v3045_v41 = vmul.f32 %v4360_v42, %v4360_v42  ;;  %v3075_v45 = vadd.f32 %v3074_v16, %v3044_v48  ;;  %v4362_v62 = vadd.f32 %v2892_v2, %v1851_v55 }
 0x217   : > { %2979 = vst [vmem:[%s5889_s12 + $0xd8] sm:$0xff] %v4361_v22  ;;  %v3048_v47 = vmul.f32 %v4361_v22, %v4361_v22 }
 0x218   : > { %v3076_v24 = vadd.f32 %v3075_v45, %v3045_v41  ;;  %2977 = vst [vmem:[%s5889_s12 + $0xc8] sm:$0xff] %v4362_v62  ;;  %v3008_v63 = vadd.f32 %v4362_v62, %v3007_v14  ;;  %v3046_v33 = vmul.f32 %v4362_v62, %v4362_v62 }
 0x219   : > { %v4125_v18 = vpop.f32.mrb[28].mxu1 }
 0x21a   : > { %v3009_v21 = vadd.f32 %v4359_v19, %v3008_v63  ;;  %v3077_v20 = vadd.f32 %v3076_v24, %v3046_v33  ;;  %v4317_v15 = vpop.f32.mrb[28].mxu0  ;;  %v1864_v61 = vpop.f32.mrb[29].mxu1 }
 0x21b   : > { %v4363_v25 = vadd.f32 %v4317_v15, %v4125_v18  ;;  %v2905_v10 = vpop.f32.mrb[29].mxu0  ;;  %v4126_v60 = vpop.f32.mrb[30].mxu1 }
 0x21c   : > { %v3078_v40 = vadd.f32 %v3077_v20, %v3047_v31  ;;  %v4364_v13 = vadd.f32 %v2905_v10, %v1864_v61  ;;  %v3010_v23 = vadd.f32 %v4361_v22, %v3009_v21  ;;  %v4318_v34 = vpop.f32.mrb[30].mxu0  ;;  %v1867_v32 = vpop.f32.mrb[31].mxu1 }
 0x21d   : > { %2982 = vst [vmem:[%s5889_s12 + $0xf0] sm:$0xff] %v4363_v25  ;;  %v4365_v17 = vadd.f32 %v4318_v34, %v4126_v60  ;;  %v2908_v58 = vpop.f32.mrb[31].mxu0  ;;  %v3051_v28 = vmul.f32 %v4363_v25, %v4363_v25 }
 0x21e   : > { %2980 = vst [vmem:[%s5889_s12 + $0xe0] sm:$0xff] %v4364_v13  ;;  %v3011_v53 = vadd.f32 %v4364_v13, %v3010_v23  ;;  %v3049_v39 = vmul.f32 %v4364_v13, %v4364_v13  ;;  %v3079_v0 = vadd.f32 %v3078_v40, %v3048_v47  ;;  %v4366_v50 = vadd.f32 %v2908_v58, %v1867_v32 }
 0x21f   : > { %2983 = vst [vmem:[%s5889_s12 + $0xf8] sm:$0xff] %v4365_v17  ;;  %v3052_v12 = vmul.f32 %v4365_v17, %v4365_v17 }
 0x220   : > { %v3080_v30 = vadd.f32 %v3079_v0, %v3049_v39  ;;  %2981 = vst [vmem:[%s5889_s12 + $0xe8] sm:$0xff] %v4366_v50  ;;  %v3012_v54 = vadd.f32 %v4366_v50, %v3011_v53  ;;  %v3050_v51 = vmul.f32 %v4366_v50, %v4366_v50 }
 0x222   : > { %v3013_v7 = vadd.f32 %v4363_v25, %v3012_v54  ;;  %v3081_v59 = vadd.f32 %v3080_v30, %v3050_v51 }
 0x224   : > { %v3014_v57 = vadd.f32 %v4365_v17, %v3013_v7  ;;  %v3082_v8 = vadd.f32 %v3081_v59, %v3051_v28 }
 0x226   : > { %v3015_v36 = vrot.slane %v3014_v57, 4  ;;  %v3083_v29 = vadd.f32 %v3082_v8, %v3052_v12 }
 0x228   : > { %v3016_v38 = vadd.f32 %v3015_v36, %v3014_v57  ;;  %v3084_v44 = vrot.slane %v3083_v29, 4 }
 0x22a   : > { %v3017_v11 = vrot.slane %v3016_v38, 2  ;;  %v3085_v49 = vadd.f32 %v3084_v44, %v3083_v29 }
 0x22c   : > { %v3018_v27 = vadd.f32 %v3017_v11, %v3016_v38  ;;  %v3086_v52 = vrot.slane %v3085_v49, 2 }
 0x22e   : > { %v3019_v4 = vrot.slane %v3018_v27, 1  ;;  %v3087_v26 = vadd.f32 %v3086_v52, %v3085_v49 }
 0x230   : > { %v3088_v3 = vrot.slane %v3087_v26, 1  ;;  %v3020_v9 = vadd.f32 %v3019_v4, %v3018_v27 }
 0x232   : > { %v3089_v46 = vadd.f32 %v3088_v3, %v3087_v26 }
 0x234   : > { %v3091_v56 = vsel %vm3090_vm7, %v3020_v9, %v3089_v46 }
 0x235   : > { %3092 = vst [vmem:[%s235_s15] sm:$0x3] %v3091_v56 }
 0x236 PF: > { %s16_s18 = sadd.s32 1, %s4687_s18  }
 0x237   : > { %p13_p4 = scmp.ge.s32.totalorder %s16_s18, 4  }
 0x239   :  { %15 = sbr.rel (!%p13_p4) target bundleno = 1 (0x1), region = 86 }

</bundles_post_ra>
